<compile_context>
chip_gen: v7x
topology: tpu7x:2x2x1
jax: 0.10.0
libtpu: 0.0.40
codegen_flags: <defaults>
</compile_context>

<pallas_src>
import functools

import jax
import jax.numpy as jnp
from jax.experimental import pallas as pl
from jax.experimental.pallas import tpu as pltpu

LEAKY_SLOPE = 0.2
BN_EPS = 1e-5
CPAD = 128  # every channel / contraction dim is zero-padded to one lane width


# ------------------------------ kernel helpers ------------------------------

def _leaky_relu(y):
    return jnp.maximum(y, LEAKY_SLOPE * y)


def _batchnorm(y, g_ref, b_ref):
    """Training-mode BatchNorm over rows (= N*Ho*Wo), biased variance."""
    mean = jnp.mean(y, axis=0, keepdims=True)
    var = jnp.mean(jnp.square(y - mean), axis=0, keepdims=True)
    return (y - mean) * jax.lax.rsqrt(var + BN_EPS) * g_ref[...] + b_ref[...]


def _to_spatial(y2d, ho, wo, n):
    """(ho*wo*n, C) rows ordered (h, w, n) -> (Hp, Wp, n, C), Hp/Wp even.

    The pad rows/cols are never read by a valid 4x4/stride-2 conv; they only
    make the parity reshapes shape-legal.
    """
    a = y2d.reshape(ho, wo, n, y2d.shape[-1])
    if ho % 2:
        a = jnp.concatenate(
            [a, jnp.zeros((1,) + a.shape[1:], a.dtype)], axis=0)
    if wo % 2:
        a = jnp.concatenate(
            [a, jnp.zeros((a.shape[0], 1) + a.shape[2:], a.dtype)], axis=1)
    return a


def _conv4x4_s2_taps(a, w_ref, ho, wo):
    """Valid 4x4 stride-2 conv as 16 accumulated K=128 tap matmuls.

    a:     (Hp, Wp, N, CPAD) f32, layout (h, w, n, c), Hp/Wp even.
    w_ref: (16, CPAD, CPAD) bf16 ref; tap (i, j) lives at index i*4 + j.
    Returns (ho*wo*N, CPAD) f32 accumulator, rows ordered (h, w, n).
    """
    hp, wp, n, c = a.shape
    rows = ho * wo * n
    acc = jnp.zeros((rows, c), jnp.float32)
    for i in range(4):
        # stride-2 subsample along H: parity reshape + static slice (leading dims)
        ah = a.reshape(hp // 2, 2, wp, n, c)[:, i % 2]
        ah = ah[i // 2: i // 2 + ho]                               # (ho, Wp, N, C)
        for j in range(4):
            aw = ah.reshape(ho, wp // 2, 2, n, c)[:, :, j % 2]
            aw = aw[:, j // 2: j // 2 + wo]                        # (ho, wo, N, C)
            slab = aw.reshape(rows, c).astype(jnp.bfloat16)
            acc = acc + jnp.dot(slab, w_ref[i * 4 + j],
                                preferred_element_type=jnp.float32)
    return acc


# --------------------------------- kernel -----------------------------------

def _disc_kernel(dims,
                 p1_ref, w1_ref, b1_ref,
                 w2_ref, g2_ref, be2_ref,
                 w3_ref, g3_ref, be3_ref,
                 w4_ref, b4_ref,
                 o_ref):
    n, ho1, wo1, ho2, wo2, ho3, wo3 = dims

    # Layer 1: Conv(image_nc->8, k4, s2) + LeakyReLU as one GEMM on packed patches.
    y1 = jnp.dot(p1_ref[...], w1_ref[...], preferred_element_type=jnp.float32)
    y1 = _leaky_relu(y1 + b1_ref[...])                     # (ho1*wo1*n, 128) f32

    # Layer 2: Conv(8->16, k4, s2) + BatchNorm + LeakyReLU (bias folded into BN).
    a1 = _to_spatial(y1, ho1, wo1, n)
    y2 = _leaky_relu(_batchnorm(_conv4x4_s2_taps(a1, w2_ref, ho2, wo2),
                                g2_ref, be2_ref))

    # Layer 3: Conv(16->32, k4, s2) + BatchNorm + LeakyReLU.
    a2 = _to_spatial(y2, ho2, wo2, n)
    y3 = _leaky_relu(_batchnorm(_conv4x4_s2_taps(a2, w3_ref, ho3, wo3),
                                g3_ref, be3_ref))

    # Layer 4 epilogue: 1x1 Conv(32->1) + bias + Sigmoid (real result in column 0).
    z = jnp.dot(y3.astype(jnp.bfloat16), w4_ref[...],
                preferred_element_type=jnp.float32) + b4_ref[...]
    o_ref[...] = pl.reciprocal(1.0 + jnp.exp(-z), approx=True)


# ------------------------------- JAX wrapper ---------------------------------

def init_params(image_nc, key):
    """Synthetic weights with the same shapes/semantics as the torch layers,
    stored kernel-ready: channel dims zero-padded to CPAD, matmul weights bf16."""
    assert 16 * image_nc <= CPAD, "layer-1 patch depth must fit in 128 lanes"
    ks = jax.random.split(key, 6)

    def conv_w(k, kh, kw, cin, cout):
        fan_in = kh * kw * cin
        return jax.random.normal(k, (kh, kw, cin, cout), jnp.float32) / jnp.sqrt(fan_in)

    w1 = conv_w(ks[0], 4, 4, image_nc, 8).reshape(16 * image_nc, 8)
    b1 = 0.01 * jax.random.normal(ks[1], (8,), jnp.float32)
    w2 = conv_w(ks[2], 4, 4, 8, 16)
    w3 = conv_w(ks[3], 4, 4, 16, 32)
    w4 = conv_w(ks[4], 1, 1, 32, 1).reshape(32, 1)
    b4 = 0.01 * jax.random.normal(ks[5], (1,), jnp.float32)
    # conv2/conv3 biases intentionally omitted: a per-channel bias right before
    # BatchNorm is exactly cancelled by the mean subtraction.

    def pad2(m):
        return jnp.zeros((CPAD, CPAD), jnp.float32).at[:m.shape[0], :m.shape[1]].set(m)

    def pad_taps(w):                      # (4,4,cin,cout) -> (16, CPAD, CPAD)
        kh, kw, cin, cout = w.shape
        out = jnp.zeros((kh * kw, CPAD, CPAD), jnp.float32)
        return out.at[:, :cin, :cout].set(w.reshape(kh * kw, cin, cout))

    def pad_vec(v, fill=0.0):
        return jnp.full((1, CPAD), fill, jnp.float32).at[0, :v.shape[0]].set(v)

    return {
        "w1": pad2(w1).astype(jnp.bfloat16), "b1": pad_vec(b1),
        "w2": pad_taps(w2).astype(jnp.bfloat16),
        "g2": pad_vec(jnp.ones((16,), jnp.float32), 1.0),
        "be2": pad_vec(jnp.zeros((16,), jnp.float32)),
        "w3": pad_taps(w3).astype(jnp.bfloat16),
        "g3": pad_vec(jnp.ones((32,), jnp.float32), 1.0),
        "be3": pad_vec(jnp.zeros((32,), jnp.float32)),
        "w4": pad2(w4).astype(jnp.bfloat16), "b4": pad_vec(b4),
    }


def discriminator_forward(x_nchw, params):
    """Reproduces Discriminator.forward (training-mode BN) with one Pallas call."""
    n, cin, h, w = x_nchw.shape
    ho1, wo1 = (h - 4) // 2 + 1, (w - 4) // 2 + 1
    ho2, wo2 = (ho1 - 4) // 2 + 1, (wo1 - 4) // 2 + 1
    ho3, wo3 = (ho2 - 4) // 2 + 1, (wo2 - 4) // 2 + 1
    assert ho3 >= 1 and wo3 >= 1, "input too small for the conv stack"

    # Layer-1 patch packing on the raw input only (cheap, ~4x the input bytes):
    # rows ordered (h, w, n), patch columns ordered (i, j, c), K padded to 128.
    xh = jnp.transpose(x_nchw, (2, 3, 0, 1)).astype(jnp.float32)   # (H, W, N, C)
    cols = []
    for i in range(4):
        for j in range(4):
            cols.append(xh[i:i + 2 * ho1 - 1:2, j:j + 2 * wo1 - 1:2])
    p1 = jnp.concatenate(cols, axis=-1).reshape(n * ho1 * wo1, 16 * cin)
    p1 = jnp.pad(p1, ((0, 0), (0, CPAD - 16 * cin))).astype(jnp.bfloat16)

    dims = (n, ho1, wo1, ho2, wo2, ho3, wo3)
    args = (p1, params["w1"], params["b1"],
            params["w2"], params["g2"], params["be2"],
            params["w3"], params["g3"], params["be3"],
            params["w4"], params["b4"])

    out = pl.pallas_call(
        functools.partial(_disc_kernel, dims),
        out_shape=jax.ShapeDtypeStruct((n * ho3 * wo3, CPAD), jnp.float32),
        in_specs=[pl.BlockSpec(memory_space=pltpu.MemorySpace.VMEM)] * len(args),
        out_specs=pl.BlockSpec(memory_space=pltpu.MemorySpace.VMEM),
    )(*args)

    out = out[:, 0].reshape(ho3, wo3, n)           # real channel is column 0
    out = jnp.transpose(out, (2, 0, 1))            # (N, Hf, Wf), i.e. NCHW w/ C squeezed
    return jnp.squeeze(out)                        # mirrors torch .squeeze()


# ----------------------------------- main ------------------------------------

if __name__ == "__main__":
    image_nc = 3
    key = jax.random.PRNGKey(0)
    k_x, k_p = jax.random.split(key)

    x = jax.random.normal(k_x, (2, image_nc, 32, 32), jnp.float32)
    params = init_params(image_nc, k_p)

    fwd = jax.jit(discriminator_forward)
    out = jax.block_until_ready(fwd(x, params))

    assert out.shape == (2, 2, 2), out.shape
    assert bool(jnp.all(jnp.isfinite(out)))
    # sigmoid outputs (tiny tolerance for the approx-reciprocal EUP path)
    assert bool(jnp.all((out > -1e-2) & (out < 1.0 + 1e-2)))
    print("KERNEL_OK")
</pallas_src>

<mosaic_0001>
module attributes {stable_mosaic.version = 11 : i64} {
  func.func @_disc_kernel(%arg0: memref<450x128xbf16, #tpu.memory_space<vmem>>, %arg1: memref<128x128xbf16, #tpu.memory_space<vmem>>, %arg2: memref<1x128xf32, #tpu.memory_space<vmem>>, %arg3: memref<16x128x128xbf16, #tpu.memory_space<vmem>>, %arg4: memref<1x128xf32, #tpu.memory_space<vmem>>, %arg5: memref<1x128xf32, #tpu.memory_space<vmem>>, %arg6: memref<16x128x128xbf16, #tpu.memory_space<vmem>>, %arg7: memref<1x128xf32, #tpu.memory_space<vmem>>, %arg8: memref<1x128xf32, #tpu.memory_space<vmem>>, %arg9: memref<128x128xbf16, #tpu.memory_space<vmem>>, %arg10: memref<1x128xf32, #tpu.memory_space<vmem>>, %arg11: memref<8x128xf32, #tpu.memory_space<vmem>>) attributes {dimension_semantics = [], scalar_prefetch = 0 : i64, scratch_operands = 0 : i64, tpu.core_type = #tpu.core_type<tc>} {
    %c0 = arith.constant 0 : index
    %c0_0 = arith.constant 0 : index
    %0 = vector.load %arg0[%c0, %c0_0] : memref<450x128xbf16, #tpu.memory_space<vmem>>, vector<450x128xbf16>
    %c0_1 = arith.constant 0 : index
    %c0_2 = arith.constant 0 : index
    %1 = vector.load %arg1[%c0_1, %c0_2] : memref<128x128xbf16, #tpu.memory_space<vmem>>, vector<128x128xbf16>
    %cst = arith.constant dense<0.000000e+00> : vector<450x128xf32>
    %2 = tpu.matmul %0, %1, %cst {dimension_numbers = #tpu.dot_dimension_numbers<[1], [0], [0], [1], [0, 0, 1, 1], [], []>} : vector<450x128xbf16>, vector<128x128xbf16>, vector<450x128xf32> -> vector<450x128xf32>
    %c0_3 = arith.constant 0 : index
    %c0_4 = arith.constant 0 : index
    %3 = vector.load %arg2[%c0_3, %c0_4] : memref<1x128xf32, #tpu.memory_space<vmem>>, vector<1x128xf32>
    %4 = vector.broadcast %3 : vector<1x128xf32> to vector<450x128xf32>
    %5 = arith.addf %2, %4 : vector<450x128xf32>
    %cst_5 = arith.constant 2.000000e-01 : f32
    %6 = vector.broadcast %cst_5 : f32 to vector<450x128xf32>
    %7 = arith.mulf %6, %5 : vector<450x128xf32>
    %8 = arith.maximumf %5, %7 : vector<450x128xf32>
    %9 = vector.shape_cast %8 : vector<450x128xf32> to vector<15x15x2x128xf32>
    %cst_6 = arith.constant 0.000000e+00 : f32
    %10 = vector.broadcast %cst_6 : f32 to vector<1x15x2x128xf32>
    %11 = tpu.concatenate %9, %10 in 0 : vector<15x15x2x128xf32>, vector<1x15x2x128xf32> -> vector<16x15x2x128xf32>
    %cst_7 = arith.constant 0.000000e+00 : f32
    %12 = vector.broadcast %cst_7 : f32 to vector<16x1x2x128xf32>
    %13 = tpu.concatenate %11, %12 in 1 : vector<16x15x2x128xf32>, vector<16x1x2x128xf32> -> vector<16x16x2x128xf32>
    %cst_8 = arith.constant 0.000000e+00 : f32
    %14 = vector.broadcast %cst_8 : f32 to vector<72x128xf32>
    %15 = vector.shape_cast %13 : vector<16x16x2x128xf32> to vector<8x2x16x2x128xf32>
    %16 = vector.extract_strided_slice %15 {offsets = [0, 0, 0, 0, 0], sizes = [8, 1, 16, 2, 128], strides = [1, 1, 1, 1, 1]} : vector<8x2x16x2x128xf32> to vector<8x1x16x2x128xf32>
    %17 = vector.shape_cast %16 : vector<8x1x16x2x128xf32> to vector<8x16x2x128xf32>
    %18 = vector.extract_strided_slice %17 {offsets = [0, 0, 0, 0], sizes = [6, 16, 2, 128], strides = [1, 1, 1, 1]} : vector<8x16x2x128xf32> to vector<6x16x2x128xf32>
    %19 = vector.shape_cast %18 : vector<6x16x2x128xf32> to vector<6x8x2x2x128xf32>
    %20 = vector.extract_strided_slice %19 {offsets = [0, 0, 0, 0, 0], sizes = [6, 8, 1, 2, 128], strides = [1, 1, 1, 1, 1]} : vector<6x8x2x2x128xf32> to vector<6x8x1x2x128xf32>
    %21 = vector.shape_cast %20 : vector<6x8x1x2x128xf32> to vector<6x8x2x128xf32>
    %22 = vector.extract_strided_slice %21 {offsets = [0, 0, 0, 0], sizes = [6, 6, 2, 128], strides = [1, 1, 1, 1]} : vector<6x8x2x128xf32> to vector<6x6x2x128xf32>
    %23 = vector.shape_cast %22 : vector<6x6x2x128xf32> to vector<72x128xf32>
    %24 = arith.truncf %23 : vector<72x128xf32> to vector<72x128xbf16>
    %c0_9 = arith.constant 0 : index
    %c0_10 = arith.constant 0 : index
    %c0_11 = arith.constant 0 : index
    %25 = vector.load %arg3[%c0_9, %c0_10, %c0_11] : memref<16x128x128xbf16, #tpu.memory_space<vmem>>, vector<1x128x128xbf16>
    %26 = vector.shape_cast %25 : vector<1x128x128xbf16> to vector<128x128xbf16>
    %cst_12 = arith.constant dense<0.000000e+00> : vector<72x128xf32>
    %27 = tpu.matmul %24, %26, %cst_12 {dimension_numbers = #tpu.dot_dimension_numbers<[1], [0], [0], [1], [0, 0, 1, 1], [], []>} : vector<72x128xbf16>, vector<128x128xbf16>, vector<72x128xf32> -> vector<72x128xf32>
    %28 = arith.addf %14, %27 : vector<72x128xf32>
    %29 = vector.shape_cast %18 : vector<6x16x2x128xf32> to vector<6x8x2x2x128xf32>
    %30 = vector.extract_strided_slice %29 {offsets = [0, 0, 1, 0, 0], sizes = [6, 8, 1, 2, 128], strides = [1, 1, 1, 1, 1]} : vector<6x8x2x2x128xf32> to vector<6x8x1x2x128xf32>
    %31 = vector.shape_cast %30 : vector<6x8x1x2x128xf32> to vector<6x8x2x128xf32>
    %32 = vector.extract_strided_slice %31 {offsets = [0, 0, 0, 0], sizes = [6, 6, 2, 128], strides = [1, 1, 1, 1]} : vector<6x8x2x128xf32> to vector<6x6x2x128xf32>
    %33 = vector.shape_cast %32 : vector<6x6x2x128xf32> to vector<72x128xf32>
    %34 = arith.truncf %33 : vector<72x128xf32> to vector<72x128xbf16>
    %c1 = arith.constant 1 : index
    %c0_13 = arith.constant 0 : index
    %c0_14 = arith.constant 0 : index
    %35 = vector.load %arg3[%c1, %c0_13, %c0_14] : memref<16x128x128xbf16, #tpu.memory_space<vmem>>, vector<1x128x128xbf16>
    %36 = vector.shape_cast %35 : vector<1x128x128xbf16> to vector<128x128xbf16>
    %cst_15 = arith.constant dense<0.000000e+00> : vector<72x128xf32>
    %37 = tpu.matmul %34, %36, %cst_15 {dimension_numbers = #tpu.dot_dimension_numbers<[1], [0], [0], [1], [0, 0, 1, 1], [], []>} : vector<72x128xbf16>, vector<128x128xbf16>, vector<72x128xf32> -> vector<72x128xf32>
    %38 = arith.addf %28, %37 : vector<72x128xf32>
    %39 = vector.shape_cast %18 : vector<6x16x2x128xf32> to vector<6x8x2x2x128xf32>
    %40 = vector.extract_strided_slice %39 {offsets = [0, 0, 0, 0, 0], sizes = [6, 8, 1, 2, 128], strides = [1, 1, 1, 1, 1]} : vector<6x8x2x2x128xf32> to vector<6x8x1x2x128xf32>
    %41 = vector.shape_cast %40 : vector<6x8x1x2x128xf32> to vector<6x8x2x128xf32>
    %42 = vector.extract_strided_slice %41 {offsets = [0, 1, 0, 0], sizes = [6, 6, 2, 128], strides = [1, 1, 1, 1]} : vector<6x8x2x128xf32> to vector<6x6x2x128xf32>
    %43 = vector.shape_cast %42 : vector<6x6x2x128xf32> to vector<72x128xf32>
    %44 = arith.truncf %43 : vector<72x128xf32> to vector<72x128xbf16>
    %c2 = arith.constant 2 : index
    %c0_16 = arith.constant 0 : index
    %c0_17 = arith.constant 0 : index
    %45 = vector.load %arg3[%c2, %c0_16, %c0_17] : memref<16x128x128xbf16, #tpu.memory_space<vmem>>, vector<1x128x128xbf16>
    %46 = vector.shape_cast %45 : vector<1x128x128xbf16> to vector<128x128xbf16>
    %cst_18 = arith.constant dense<0.000000e+00> : vector<72x128xf32>
    %47 = tpu.matmul %44, %46, %cst_18 {dimension_numbers = #tpu.dot_dimension_numbers<[1], [0], [0], [1], [0, 0, 1, 1], [], []>} : vector<72x128xbf16>, vector<128x128xbf16>, vector<72x128xf32> -> vector<72x128xf32>
    %48 = arith.addf %38, %47 : vector<72x128xf32>
    %49 = vector.shape_cast %18 : vector<6x16x2x128xf32> to vector<6x8x2x2x128xf32>
    %50 = vector.extract_strided_slice %49 {offsets = [0, 0, 1, 0, 0], sizes = [6, 8, 1, 2, 128], strides = [1, 1, 1, 1, 1]} : vector<6x8x2x2x128xf32> to vector<6x8x1x2x128xf32>
    %51 = vector.shape_cast %50 : vector<6x8x1x2x128xf32> to vector<6x8x2x128xf32>
    %52 = vector.extract_strided_slice %51 {offsets = [0, 1, 0, 0], sizes = [6, 6, 2, 128], strides = [1, 1, 1, 1]} : vector<6x8x2x128xf32> to vector<6x6x2x128xf32>
    %53 = vector.shape_cast %52 : vector<6x6x2x128xf32> to vector<72x128xf32>
    %54 = arith.truncf %53 : vector<72x128xf32> to vector<72x128xbf16>
    %c3 = arith.constant 3 : index
    %c0_19 = arith.constant 0 : index
    %c0_20 = arith.constant 0 : index
    %55 = vector.load %arg3[%c3, %c0_19, %c0_20] : memref<16x128x128xbf16, #tpu.memory_space<vmem>>, vector<1x128x128xbf16>
    %56 = vector.shape_cast %55 : vector<1x128x128xbf16> to vector<128x128xbf16>
    %cst_21 = arith.constant dense<0.000000e+00> : vector<72x128xf32>
    %57 = tpu.matmul %54, %56, %cst_21 {dimension_numbers = #tpu.dot_dimension_numbers<[1], [0], [0], [1], [0, 0, 1, 1], [], []>} : vector<72x128xbf16>, vector<128x128xbf16>, vector<72x128xf32> -> vector<72x128xf32>
    %58 = arith.addf %48, %57 : vector<72x128xf32>
    %59 = vector.shape_cast %13 : vector<16x16x2x128xf32> to vector<8x2x16x2x128xf32>
    %60 = vector.extract_strided_slice %59 {offsets = [0, 1, 0, 0, 0], sizes = [8, 1, 16, 2, 128], strides = [1, 1, 1, 1, 1]} : vector<8x2x16x2x128xf32> to vector<8x1x16x2x128xf32>
    %61 = vector.shape_cast %60 : vector<8x1x16x2x128xf32> to vector<8x16x2x128xf32>
    %62 = vector.extract_strided_slice %61 {offsets = [0, 0, 0, 0], sizes = [6, 16, 2, 128], strides = [1, 1, 1, 1]} : vector<8x16x2x128xf32> to vector<6x16x2x128xf32>
    %63 = vector.shape_cast %62 : vector<6x16x2x128xf32> to vector<6x8x2x2x128xf32>
    %64 = vector.extract_strided_slice %63 {offsets = [0, 0, 0, 0, 0], sizes = [6, 8, 1, 2, 128], strides = [1, 1, 1, 1, 1]} : vector<6x8x2x2x128xf32> to vector<6x8x1x2x128xf32>
    %65 = vector.shape_cast %64 : vector<6x8x1x2x128xf32> to vector<6x8x2x128xf32>
    %66 = vector.extract_strided_slice %65 {offsets = [0, 0, 0, 0], sizes = [6, 6, 2, 128], strides = [1, 1, 1, 1]} : vector<6x8x2x128xf32> to vector<6x6x2x128xf32>
    %67 = vector.shape_cast %66 : vector<6x6x2x128xf32> to vector<72x128xf32>
    %68 = arith.truncf %67 : vector<72x128xf32> to vector<72x128xbf16>
    %c4 = arith.constant 4 : index
    %c0_22 = arith.constant 0 : index
    %c0_23 = arith.constant 0 : index
    %69 = vector.load %arg3[%c4, %c0_22, %c0_23] : memref<16x128x128xbf16, #tpu.memory_space<vmem>>, vector<1x128x128xbf16>
    %70 = vector.shape_cast %69 : vector<1x128x128xbf16> to vector<128x128xbf16>
    %cst_24 = arith.constant dense<0.000000e+00> : vector<72x128xf32>
    %71 = tpu.matmul %68, %70, %cst_24 {dimension_numbers = #tpu.dot_dimension_numbers<[1], [0], [0], [1], [0, 0, 1, 1], [], []>} : vector<72x128xbf16>, vector<128x128xbf16>, vector<72x128xf32> -> vector<72x128xf32>
    %72 = arith.addf %58, %71 : vector<72x128xf32>
    %73 = vector.shape_cast %62 : vector<6x16x2x128xf32> to vector<6x8x2x2x128xf32>
    %74 = vector.extract_strided_slice %73 {offsets = [0, 0, 1, 0, 0], sizes = [6, 8, 1, 2, 128], strides = [1, 1, 1, 1, 1]} : vector<6x8x2x2x128xf32> to vector<6x8x1x2x128xf32>
    %75 = vector.shape_cast %74 : vector<6x8x1x2x128xf32> to vector<6x8x2x128xf32>
    %76 = vector.extract_strided_slice %75 {offsets = [0, 0, 0, 0], sizes = [6, 6, 2, 128], strides = [1, 1, 1, 1]} : vector<6x8x2x128xf32> to vector<6x6x2x128xf32>
    %77 = vector.shape_cast %76 : vector<6x6x2x128xf32> to vector<72x128xf32>
    %78 = arith.truncf %77 : vector<72x128xf32> to vector<72x128xbf16>
    %c5 = arith.constant 5 : index
    %c0_25 = arith.constant 0 : index
    %c0_26 = arith.constant 0 : index
    %79 = vector.load %arg3[%c5, %c0_25, %c0_26] : memref<16x128x128xbf16, #tpu.memory_space<vmem>>, vector<1x128x128xbf16>
    %80 = vector.shape_cast %79 : vector<1x128x128xbf16> to vector<128x128xbf16>
    %cst_27 = arith.constant dense<0.000000e+00> : vector<72x128xf32>
    %81 = tpu.matmul %78, %80, %cst_27 {dimension_numbers = #tpu.dot_dimension_numbers<[1], [0], [0], [1], [0, 0, 1, 1], [], []>} : vector<72x128xbf16>, vector<128x128xbf16>, vector<72x128xf32> -> vector<72x128xf32>
    %82 = arith.addf %72, %81 : vector<72x128xf32>
    %83 = vector.shape_cast %62 : vector<6x16x2x128xf32> to vector<6x8x2x2x128xf32>
    %84 = vector.extract_strided_slice %83 {offsets = [0, 0, 0, 0, 0], sizes = [6, 8, 1, 2, 128], strides = [1, 1, 1, 1, 1]} : vector<6x8x2x2x128xf32> to vector<6x8x1x2x128xf32>
    %85 = vector.shape_cast %84 : vector<6x8x1x2x128xf32> to vector<6x8x2x128xf32>
    %86 = vector.extract_strided_slice %85 {offsets = [0, 1, 0, 0], sizes = [6, 6, 2, 128], strides = [1, 1, 1, 1]} : vector<6x8x2x128xf32> to vector<6x6x2x128xf32>
    %87 = vector.shape_cast %86 : vector<6x6x2x128xf32> to vector<72x128xf32>
    %88 = arith.truncf %87 : vector<72x128xf32> to vector<72x128xbf16>
    %c6 = arith.constant 6 : index
    %c0_28 = arith.constant 0 : index
    %c0_29 = arith.constant 0 : index
    %89 = vector.load %arg3[%c6, %c0_28, %c0_29] : memref<16x128x128xbf16, #tpu.memory_space<vmem>>, vector<1x128x128xbf16>
    %90 = vector.shape_cast %89 : vector<1x128x128xbf16> to vector<128x128xbf16>
    %cst_30 = arith.constant dense<0.000000e+00> : vector<72x128xf32>
    %91 = tpu.matmul %88, %90, %cst_30 {dimension_numbers = #tpu.dot_dimension_numbers<[1], [0], [0], [1], [0, 0, 1, 1], [], []>} : vector<72x128xbf16>, vector<128x128xbf16>, vector<72x128xf32> -> vector<72x128xf32>
    %92 = arith.addf %82, %91 : vector<72x128xf32>
    %93 = vector.shape_cast %62 : vector<6x16x2x128xf32> to vector<6x8x2x2x128xf32>
    %94 = vector.extract_strided_slice %93 {offsets = [0, 0, 1, 0, 0], sizes = [6, 8, 1, 2, 128], strides = [1, 1, 1, 1, 1]} : vector<6x8x2x2x128xf32> to vector<6x8x1x2x128xf32>
    %95 = vector.shape_cast %94 : vector<6x8x1x2x128xf32> to vector<6x8x2x128xf32>
    %96 = vector.extract_strided_slice %95 {offsets = [0, 1, 0, 0], sizes = [6, 6, 2, 128], strides = [1, 1, 1, 1]} : vector<6x8x2x128xf32> to vector<6x6x2x128xf32>
    %97 = vector.shape_cast %96 : vector<6x6x2x128xf32> to vector<72x128xf32>
    %98 = arith.truncf %97 : vector<72x128xf32> to vector<72x128xbf16>
    %c7 = arith.constant 7 : index
    %c0_31 = arith.constant 0 : index
    %c0_32 = arith.constant 0 : index
    %99 = vector.load %arg3[%c7, %c0_31, %c0_32] : memref<16x128x128xbf16, #tpu.memory_space<vmem>>, vector<1x128x128xbf16>
    %100 = vector.shape_cast %99 : vector<1x128x128xbf16> to vector<128x128xbf16>
    %cst_33 = arith.constant dense<0.000000e+00> : vector<72x128xf32>
    %101 = tpu.matmul %98, %100, %cst_33 {dimension_numbers = #tpu.dot_dimension_numbers<[1], [0], [0], [1], [0, 0, 1, 1], [], []>} : vector<72x128xbf16>, vector<128x128xbf16>, vector<72x128xf32> -> vector<72x128xf32>
    %102 = arith.addf %92, %101 : vector<72x128xf32>
    %103 = vector.shape_cast %13 : vector<16x16x2x128xf32> to vector<8x2x16x2x128xf32>
    %104 = vector.extract_strided_slice %103 {offsets = [0, 0, 0, 0, 0], sizes = [8, 1, 16, 2, 128], strides = [1, 1, 1, 1, 1]} : vector<8x2x16x2x128xf32> to vector<8x1x16x2x128xf32>
    %105 = vector.shape_cast %104 : vector<8x1x16x2x128xf32> to vector<8x16x2x128xf32>
    %106 = vector.extract_strided_slice %105 {offsets = [1, 0, 0, 0], sizes = [6, 16, 2, 128], strides = [1, 1, 1, 1]} : vector<8x16x2x128xf32> to vector<6x16x2x128xf32>
    %107 = vector.shape_cast %106 : vector<6x16x2x128xf32> to vector<6x8x2x2x128xf32>
    %108 = vector.extract_strided_slice %107 {offsets = [0, 0, 0, 0, 0], sizes = [6, 8, 1, 2, 128], strides = [1, 1, 1, 1, 1]} : vector<6x8x2x2x128xf32> to vector<6x8x1x2x128xf32>
    %109 = vector.shape_cast %108 : vector<6x8x1x2x128xf32> to vector<6x8x2x128xf32>
    %110 = vector.extract_strided_slice %109 {offsets = [0, 0, 0, 0], sizes = [6, 6, 2, 128], strides = [1, 1, 1, 1]} : vector<6x8x2x128xf32> to vector<6x6x2x128xf32>
    %111 = vector.shape_cast %110 : vector<6x6x2x128xf32> to vector<72x128xf32>
    %112 = arith.truncf %111 : vector<72x128xf32> to vector<72x128xbf16>
    %c8 = arith.constant 8 : index
    %c0_34 = arith.constant 0 : index
    %c0_35 = arith.constant 0 : index
    %113 = vector.load %arg3[%c8, %c0_34, %c0_35] : memref<16x128x128xbf16, #tpu.memory_space<vmem>>, vector<1x128x128xbf16>
    %114 = vector.shape_cast %113 : vector<1x128x128xbf16> to vector<128x128xbf16>
    %cst_36 = arith.constant dense<0.000000e+00> : vector<72x128xf32>
    %115 = tpu.matmul %112, %114, %cst_36 {dimension_numbers = #tpu.dot_dimension_numbers<[1], [0], [0], [1], [0, 0, 1, 1], [], []>} : vector<72x128xbf16>, vector<128x128xbf16>, vector<72x128xf32> -> vector<72x128xf32>
    %116 = arith.addf %102, %115 : vector<72x128xf32>
    %117 = vector.shape_cast %106 : vector<6x16x2x128xf32> to vector<6x8x2x2x128xf32>
    %118 = vector.extract_strided_slice %117 {offsets = [0, 0, 1, 0, 0], sizes = [6, 8, 1, 2, 128], strides = [1, 1, 1, 1, 1]} : vector<6x8x2x2x128xf32> to vector<6x8x1x2x128xf32>
    %119 = vector.shape_cast %118 : vector<6x8x1x2x128xf32> to vector<6x8x2x128xf32>
    %120 = vector.extract_strided_slice %119 {offsets = [0, 0, 0, 0], sizes = [6, 6, 2, 128], strides = [1, 1, 1, 1]} : vector<6x8x2x128xf32> to vector<6x6x2x128xf32>
    %121 = vector.shape_cast %120 : vector<6x6x2x128xf32> to vector<72x128xf32>
    %122 = arith.truncf %121 : vector<72x128xf32> to vector<72x128xbf16>
    %c9 = arith.constant 9 : index
    %c0_37 = arith.constant 0 : index
    %c0_38 = arith.constant 0 : index
    %123 = vector.load %arg3[%c9, %c0_37, %c0_38] : memref<16x128x128xbf16, #tpu.memory_space<vmem>>, vector<1x128x128xbf16>
    %124 = vector.shape_cast %123 : vector<1x128x128xbf16> to vector<128x128xbf16>
    %cst_39 = arith.constant dense<0.000000e+00> : vector<72x128xf32>
    %125 = tpu.matmul %122, %124, %cst_39 {dimension_numbers = #tpu.dot_dimension_numbers<[1], [0], [0], [1], [0, 0, 1, 1], [], []>} : vector<72x128xbf16>, vector<128x128xbf16>, vector<72x128xf32> -> vector<72x128xf32>
    %126 = arith.addf %116, %125 : vector<72x128xf32>
    %127 = vector.shape_cast %106 : vector<6x16x2x128xf32> to vector<6x8x2x2x128xf32>
    %128 = vector.extract_strided_slice %127 {offsets = [0, 0, 0, 0, 0], sizes = [6, 8, 1, 2, 128], strides = [1, 1, 1, 1, 1]} : vector<6x8x2x2x128xf32> to vector<6x8x1x2x128xf32>
    %129 = vector.shape_cast %128 : vector<6x8x1x2x128xf32> to vector<6x8x2x128xf32>
    %130 = vector.extract_strided_slice %129 {offsets = [0, 1, 0, 0], sizes = [6, 6, 2, 128], strides = [1, 1, 1, 1]} : vector<6x8x2x128xf32> to vector<6x6x2x128xf32>
    %131 = vector.shape_cast %130 : vector<6x6x2x128xf32> to vector<72x128xf32>
    %132 = arith.truncf %131 : vector<72x128xf32> to vector<72x128xbf16>
    %c10 = arith.constant 10 : index
    %c0_40 = arith.constant 0 : index
    %c0_41 = arith.constant 0 : index
    %133 = vector.load %arg3[%c10, %c0_40, %c0_41] : memref<16x128x128xbf16, #tpu.memory_space<vmem>>, vector<1x128x128xbf16>
    %134 = vector.shape_cast %133 : vector<1x128x128xbf16> to vector<128x128xbf16>
    %cst_42 = arith.constant dense<0.000000e+00> : vector<72x128xf32>
    %135 = tpu.matmul %132, %134, %cst_42 {dimension_numbers = #tpu.dot_dimension_numbers<[1], [0], [0], [1], [0, 0, 1, 1], [], []>} : vector<72x128xbf16>, vector<128x128xbf16>, vector<72x128xf32> -> vector<72x128xf32>
    %136 = arith.addf %126, %135 : vector<72x128xf32>
    %137 = vector.shape_cast %106 : vector<6x16x2x128xf32> to vector<6x8x2x2x128xf32>
    %138 = vector.extract_strided_slice %137 {offsets = [0, 0, 1, 0, 0], sizes = [6, 8, 1, 2, 128], strides = [1, 1, 1, 1, 1]} : vector<6x8x2x2x128xf32> to vector<6x8x1x2x128xf32>
    %139 = vector.shape_cast %138 : vector<6x8x1x2x128xf32> to vector<6x8x2x128xf32>
    %140 = vector.extract_strided_slice %139 {offsets = [0, 1, 0, 0], sizes = [6, 6, 2, 128], strides = [1, 1, 1, 1]} : vector<6x8x2x128xf32> to vector<6x6x2x128xf32>
    %141 = vector.shape_cast %140 : vector<6x6x2x128xf32> to vector<72x128xf32>
    %142 = arith.truncf %141 : vector<72x128xf32> to vector<72x128xbf16>
    %c11 = arith.constant 11 : index
    %c0_43 = arith.constant 0 : index
    %c0_44 = arith.constant 0 : index
    %143 = vector.load %arg3[%c11, %c0_43, %c0_44] : memref<16x128x128xbf16, #tpu.memory_space<vmem>>, vector<1x128x128xbf16>
    %144 = vector.shape_cast %143 : vector<1x128x128xbf16> to vector<128x128xbf16>
    %cst_45 = arith.constant dense<0.000000e+00> : vector<72x128xf32>
    %145 = tpu.matmul %142, %144, %cst_45 {dimension_numbers = #tpu.dot_dimension_numbers<[1], [0], [0], [1], [0, 0, 1, 1], [], []>} : vector<72x128xbf16>, vector<128x128xbf16>, vector<72x128xf32> -> vector<72x128xf32>
    %146 = arith.addf %136, %145 : vector<72x128xf32>
    %147 = vector.shape_cast %13 : vector<16x16x2x128xf32> to vector<8x2x16x2x128xf32>
    %148 = vector.extract_strided_slice %147 {offsets = [0, 1, 0, 0, 0], sizes = [8, 1, 16, 2, 128], strides = [1, 1, 1, 1, 1]} : vector<8x2x16x2x128xf32> to vector<8x1x16x2x128xf32>
    %149 = vector.shape_cast %148 : vector<8x1x16x2x128xf32> to vector<8x16x2x128xf32>
    %150 = vector.extract_strided_slice %149 {offsets = [1, 0, 0, 0], sizes = [6, 16, 2, 128], strides = [1, 1, 1, 1]} : vector<8x16x2x128xf32> to vector<6x16x2x128xf32>
    %151 = vector.shape_cast %150 : vector<6x16x2x128xf32> to vector<6x8x2x2x128xf32>
    %152 = vector.extract_strided_slice %151 {offsets = [0, 0, 0, 0, 0], sizes = [6, 8, 1, 2, 128], strides = [1, 1, 1, 1, 1]} : vector<6x8x2x2x128xf32> to vector<6x8x1x2x128xf32>
    %153 = vector.shape_cast %152 : vector<6x8x1x2x128xf32> to vector<6x8x2x128xf32>
    %154 = vector.extract_strided_slice %153 {offsets = [0, 0, 0, 0], sizes = [6, 6, 2, 128], strides = [1, 1, 1, 1]} : vector<6x8x2x128xf32> to vector<6x6x2x128xf32>
    %155 = vector.shape_cast %154 : vector<6x6x2x128xf32> to vector<72x128xf32>
    %156 = arith.truncf %155 : vector<72x128xf32> to vector<72x128xbf16>
    %c12 = arith.constant 12 : index
    %c0_46 = arith.constant 0 : index
    %c0_47 = arith.constant 0 : index
    %157 = vector.load %arg3[%c12, %c0_46, %c0_47] : memref<16x128x128xbf16, #tpu.memory_space<vmem>>, vector<1x128x128xbf16>
    %158 = vector.shape_cast %157 : vector<1x128x128xbf16> to vector<128x128xbf16>
    %cst_48 = arith.constant dense<0.000000e+00> : vector<72x128xf32>
    %159 = tpu.matmul %156, %158, %cst_48 {dimension_numbers = #tpu.dot_dimension_numbers<[1], [0], [0], [1], [0, 0, 1, 1], [], []>} : vector<72x128xbf16>, vector<128x128xbf16>, vector<72x128xf32> -> vector<72x128xf32>
    %160 = arith.addf %146, %159 : vector<72x128xf32>
    %161 = vector.shape_cast %150 : vector<6x16x2x128xf32> to vector<6x8x2x2x128xf32>
    %162 = vector.extract_strided_slice %161 {offsets = [0, 0, 1, 0, 0], sizes = [6, 8, 1, 2, 128], strides = [1, 1, 1, 1, 1]} : vector<6x8x2x2x128xf32> to vector<6x8x1x2x128xf32>
    %163 = vector.shape_cast %162 : vector<6x8x1x2x128xf32> to vector<6x8x2x128xf32>
    %164 = vector.extract_strided_slice %163 {offsets = [0, 0, 0, 0], sizes = [6, 6, 2, 128], strides = [1, 1, 1, 1]} : vector<6x8x2x128xf32> to vector<6x6x2x128xf32>
    %165 = vector.shape_cast %164 : vector<6x6x2x128xf32> to vector<72x128xf32>
    %166 = arith.truncf %165 : vector<72x128xf32> to vector<72x128xbf16>
    %c13 = arith.constant 13 : index
    %c0_49 = arith.constant 0 : index
    %c0_50 = arith.constant 0 : index
    %167 = vector.load %arg3[%c13, %c0_49, %c0_50] : memref<16x128x128xbf16, #tpu.memory_space<vmem>>, vector<1x128x128xbf16>
    %168 = vector.shape_cast %167 : vector<1x128x128xbf16> to vector<128x128xbf16>
    %cst_51 = arith.constant dense<0.000000e+00> : vector<72x128xf32>
    %169 = tpu.matmul %166, %168, %cst_51 {dimension_numbers = #tpu.dot_dimension_numbers<[1], [0], [0], [1], [0, 0, 1, 1], [], []>} : vector<72x128xbf16>, vector<128x128xbf16>, vector<72x128xf32> -> vector<72x128xf32>
    %170 = arith.addf %160, %169 : vector<72x128xf32>
    %171 = vector.shape_cast %150 : vector<6x16x2x128xf32> to vector<6x8x2x2x128xf32>
    %172 = vector.extract_strided_slice %171 {offsets = [0, 0, 0, 0, 0], sizes = [6, 8, 1, 2, 128], strides = [1, 1, 1, 1, 1]} : vector<6x8x2x2x128xf32> to vector<6x8x1x2x128xf32>
    %173 = vector.shape_cast %172 : vector<6x8x1x2x128xf32> to vector<6x8x2x128xf32>
    %174 = vector.extract_strided_slice %173 {offsets = [0, 1, 0, 0], sizes = [6, 6, 2, 128], strides = [1, 1, 1, 1]} : vector<6x8x2x128xf32> to vector<6x6x2x128xf32>
    %175 = vector.shape_cast %174 : vector<6x6x2x128xf32> to vector<72x128xf32>
    %176 = arith.truncf %175 : vector<72x128xf32> to vector<72x128xbf16>
    %c14 = arith.constant 14 : index
    %c0_52 = arith.constant 0 : index
    %c0_53 = arith.constant 0 : index
    %177 = vector.load %arg3[%c14, %c0_52, %c0_53] : memref<16x128x128xbf16, #tpu.memory_space<vmem>>, vector<1x128x128xbf16>
    %178 = vector.shape_cast %177 : vector<1x128x128xbf16> to vector<128x128xbf16>
    %cst_54 = arith.constant dense<0.000000e+00> : vector<72x128xf32>
    %179 = tpu.matmul %176, %178, %cst_54 {dimension_numbers = #tpu.dot_dimension_numbers<[1], [0], [0], [1], [0, 0, 1, 1], [], []>} : vector<72x128xbf16>, vector<128x128xbf16>, vector<72x128xf32> -> vector<72x128xf32>
    %180 = arith.addf %170, %179 : vector<72x128xf32>
    %181 = vector.shape_cast %150 : vector<6x16x2x128xf32> to vector<6x8x2x2x128xf32>
    %182 = vector.extract_strided_slice %181 {offsets = [0, 0, 1, 0, 0], sizes = [6, 8, 1, 2, 128], strides = [1, 1, 1, 1, 1]} : vector<6x8x2x2x128xf32> to vector<6x8x1x2x128xf32>
    %183 = vector.shape_cast %182 : vector<6x8x1x2x128xf32> to vector<6x8x2x128xf32>
    %184 = vector.extract_strided_slice %183 {offsets = [0, 1, 0, 0], sizes = [6, 6, 2, 128], strides = [1, 1, 1, 1]} : vector<6x8x2x128xf32> to vector<6x6x2x128xf32>
    %185 = vector.shape_cast %184 : vector<6x6x2x128xf32> to vector<72x128xf32>
    %186 = arith.truncf %185 : vector<72x128xf32> to vector<72x128xbf16>
    %c15 = arith.constant 15 : index
    %c0_55 = arith.constant 0 : index
    %c0_56 = arith.constant 0 : index
    %187 = vector.load %arg3[%c15, %c0_55, %c0_56] : memref<16x128x128xbf16, #tpu.memory_space<vmem>>, vector<1x128x128xbf16>
    %188 = vector.shape_cast %187 : vector<1x128x128xbf16> to vector<128x128xbf16>
    %cst_57 = arith.constant dense<0.000000e+00> : vector<72x128xf32>
    %189 = tpu.matmul %186, %188, %cst_57 {dimension_numbers = #tpu.dot_dimension_numbers<[1], [0], [0], [1], [0, 0, 1, 1], [], []>} : vector<72x128xbf16>, vector<128x128xbf16>, vector<72x128xf32> -> vector<72x128xf32>
    %190 = arith.addf %180, %189 : vector<72x128xf32>
    %cst_58 = arith.constant dense<0.000000e+00> : vector<128xf32>
    %191 = vector.multi_reduction <add>, %190, %cst_58 [0] : vector<72x128xf32> to vector<128xf32>
    %192 = vector.shape_cast %191 : vector<128xf32> to vector<1x128xf32>
    %cst_59 = arith.constant 7.200000e+01 : f32
    %193 = vector.broadcast %cst_59 : f32 to vector<1x128xf32>
    %194 = arith.divf %192, %193 : vector<1x128xf32>
    %195 = vector.broadcast %194 : vector<1x128xf32> to vector<72x128xf32>
    %196 = arith.subf %190, %195 : vector<72x128xf32>
    %197 = arith.mulf %196, %196 : vector<72x128xf32>
    %cst_60 = arith.constant dense<0.000000e+00> : vector<128xf32>
    %198 = vector.multi_reduction <add>, %197, %cst_60 [0] : vector<72x128xf32> to vector<128xf32>
    %199 = vector.shape_cast %198 : vector<128xf32> to vector<1x128xf32>
    %cst_61 = arith.constant 7.200000e+01 : f32
    %200 = vector.broadcast %cst_61 : f32 to vector<1x128xf32>
    %201 = arith.divf %199, %200 : vector<1x128xf32>
    %202 = vector.broadcast %194 : vector<1x128xf32> to vector<72x128xf32>
    %203 = arith.subf %190, %202 : vector<72x128xf32>
    %cst_62 = arith.constant 9.99999974E-6 : f32
    %204 = vector.broadcast %cst_62 : f32 to vector<1x128xf32>
    %205 = arith.addf %201, %204 : vector<1x128xf32>
    %206 = math.rsqrt %205 : vector<1x128xf32>
    %207 = vector.broadcast %206 : vector<1x128xf32> to vector<72x128xf32>
    %208 = arith.mulf %203, %207 : vector<72x128xf32>
    %c0_63 = arith.constant 0 : index
    %c0_64 = arith.constant 0 : index
    %209 = vector.load %arg4[%c0_63, %c0_64] : memref<1x128xf32, #tpu.memory_space<vmem>>, vector<1x128xf32>
    %210 = vector.broadcast %209 : vector<1x128xf32> to vector<72x128xf32>
    %211 = arith.mulf %208, %210 : vector<72x128xf32>
    %c0_65 = arith.constant 0 : index
    %c0_66 = arith.constant 0 : index
    %212 = vector.load %arg5[%c0_65, %c0_66] : memref<1x128xf32, #tpu.memory_space<vmem>>, vector<1x128xf32>
    %213 = vector.broadcast %212 : vector<1x128xf32> to vector<72x128xf32>
    %214 = arith.addf %211, %213 : vector<72x128xf32>
    %cst_67 = arith.constant 2.000000e-01 : f32
    %215 = vector.broadcast %cst_67 : f32 to vector<72x128xf32>
    %216 = arith.mulf %215, %214 : vector<72x128xf32>
    %217 = arith.maximumf %214, %216 : vector<72x128xf32>
    %218 = vector.shape_cast %217 : vector<72x128xf32> to vector<6x6x2x128xf32>
    %cst_68 = arith.constant 0.000000e+00 : f32
    %219 = vector.broadcast %cst_68 : f32 to vector<8x128xf32>
    %220 = vector.shape_cast %218 : vector<6x6x2x128xf32> to vector<3x2x6x2x128xf32>
    %221 = vector.extract_strided_slice %220 {offsets = [0, 0, 0, 0, 0], sizes = [3, 1, 6, 2, 128], strides = [1, 1, 1, 1, 1]} : vector<3x2x6x2x128xf32> to vector<3x1x6x2x128xf32>
    %222 = vector.shape_cast %221 : vector<3x1x6x2x128xf32> to vector<3x6x2x128xf32>
    %223 = vector.extract_strided_slice %222 {offsets = [0, 0, 0, 0], sizes = [2, 6, 2, 128], strides = [1, 1, 1, 1]} : vector<3x6x2x128xf32> to vector<2x6x2x128xf32>
    %224 = vector.shape_cast %223 : vector<2x6x2x128xf32> to vector<2x3x2x2x128xf32>
    %225 = vector.extract_strided_slice %224 {offsets = [0, 0, 0, 0, 0], sizes = [2, 3, 1, 2, 128], strides = [1, 1, 1, 1, 1]} : vector<2x3x2x2x128xf32> to vector<2x3x1x2x128xf32>
    %226 = vector.shape_cast %225 : vector<2x3x1x2x128xf32> to vector<2x3x2x128xf32>
    %227 = vector.extract_strided_slice %226 {offsets = [0, 0, 0, 0], sizes = [2, 2, 2, 128], strides = [1, 1, 1, 1]} : vector<2x3x2x128xf32> to vector<2x2x2x128xf32>
    %228 = vector.shape_cast %227 : vector<2x2x2x128xf32> to vector<8x128xf32>
    %229 = arith.truncf %228 : vector<8x128xf32> to vector<8x128xbf16>
    %c0_69 = arith.constant 0 : index
    %c0_70 = arith.constant 0 : index
    %c0_71 = arith.constant 0 : index
    %230 = vector.load %arg6[%c0_69, %c0_70, %c0_71] : memref<16x128x128xbf16, #tpu.memory_space<vmem>>, vector<1x128x128xbf16>
    %231 = vector.shape_cast %230 : vector<1x128x128xbf16> to vector<128x128xbf16>
    %cst_72 = arith.constant dense<0.000000e+00> : vector<8x128xf32>
    %232 = tpu.matmul %229, %231, %cst_72 {dimension_numbers = #tpu.dot_dimension_numbers<[1], [0], [0], [1], [0, 0, 1, 1], [], []>} : vector<8x128xbf16>, vector<128x128xbf16>, vector<8x128xf32> -> vector<8x128xf32>
    %233 = arith.addf %219, %232 : vector<8x128xf32>
    %234 = vector.shape_cast %223 : vector<2x6x2x128xf32> to vector<2x3x2x2x128xf32>
    %235 = vector.extract_strided_slice %234 {offsets = [0, 0, 1, 0, 0], sizes = [2, 3, 1, 2, 128], strides = [1, 1, 1, 1, 1]} : vector<2x3x2x2x128xf32> to vector<2x3x1x2x128xf32>
    %236 = vector.shape_cast %235 : vector<2x3x1x2x128xf32> to vector<2x3x2x128xf32>
    %237 = vector.extract_strided_slice %236 {offsets = [0, 0, 0, 0], sizes = [2, 2, 2, 128], strides = [1, 1, 1, 1]} : vector<2x3x2x128xf32> to vector<2x2x2x128xf32>
    %238 = vector.shape_cast %237 : vector<2x2x2x128xf32> to vector<8x128xf32>
    %239 = arith.truncf %238 : vector<8x128xf32> to vector<8x128xbf16>
    %c1_73 = arith.constant 1 : index
    %c0_74 = arith.constant 0 : index
    %c0_75 = arith.constant 0 : index
    %240 = vector.load %arg6[%c1_73, %c0_74, %c0_75] : memref<16x128x128xbf16, #tpu.memory_space<vmem>>, vector<1x128x128xbf16>
    %241 = vector.shape_cast %240 : vector<1x128x128xbf16> to vector<128x128xbf16>
    %cst_76 = arith.constant dense<0.000000e+00> : vector<8x128xf32>
    %242 = tpu.matmul %239, %241, %cst_76 {dimension_numbers = #tpu.dot_dimension_numbers<[1], [0], [0], [1], [0, 0, 1, 1], [], []>} : vector<8x128xbf16>, vector<128x128xbf16>, vector<8x128xf32> -> vector<8x128xf32>
    %243 = arith.addf %233, %242 : vector<8x128xf32>
    %244 = vector.shape_cast %223 : vector<2x6x2x128xf32> to vector<2x3x2x2x128xf32>
    %245 = vector.extract_strided_slice %244 {offsets = [0, 0, 0, 0, 0], sizes = [2, 3, 1, 2, 128], strides = [1, 1, 1, 1, 1]} : vector<2x3x2x2x128xf32> to vector<2x3x1x2x128xf32>
    %246 = vector.shape_cast %245 : vector<2x3x1x2x128xf32> to vector<2x3x2x128xf32>
    %247 = vector.extract_strided_slice %246 {offsets = [0, 1, 0, 0], sizes = [2, 2, 2, 128], strides = [1, 1, 1, 1]} : vector<2x3x2x128xf32> to vector<2x2x2x128xf32>
    %248 = vector.shape_cast %247 : vector<2x2x2x128xf32> to vector<8x128xf32>
    %249 = arith.truncf %248 : vector<8x128xf32> to vector<8x128xbf16>
    %c2_77 = arith.constant 2 : index
    %c0_78 = arith.constant 0 : index
    %c0_79 = arith.constant 0 : index
    %250 = vector.load %arg6[%c2_77, %c0_78, %c0_79] : memref<16x128x128xbf16, #tpu.memory_space<vmem>>, vector<1x128x128xbf16>
    %251 = vector.shape_cast %250 : vector<1x128x128xbf16> to vector<128x128xbf16>
    %cst_80 = arith.constant dense<0.000000e+00> : vector<8x128xf32>
    %252 = tpu.matmul %249, %251, %cst_80 {dimension_numbers = #tpu.dot_dimension_numbers<[1], [0], [0], [1], [0, 0, 1, 1], [], []>} : vector<8x128xbf16>, vector<128x128xbf16>, vector<8x128xf32> -> vector<8x128xf32>
    %253 = arith.addf %243, %252 : vector<8x128xf32>
    %254 = vector.shape_cast %223 : vector<2x6x2x128xf32> to vector<2x3x2x2x128xf32>
    %255 = vector.extract_strided_slice %254 {offsets = [0, 0, 1, 0, 0], sizes = [2, 3, 1, 2, 128], strides = [1, 1, 1, 1, 1]} : vector<2x3x2x2x128xf32> to vector<2x3x1x2x128xf32>
    %256 = vector.shape_cast %255 : vector<2x3x1x2x128xf32> to vector<2x3x2x128xf32>
    %257 = vector.extract_strided_slice %256 {offsets = [0, 1, 0, 0], sizes = [2, 2, 2, 128], strides = [1, 1, 1, 1]} : vector<2x3x2x128xf32> to vector<2x2x2x128xf32>
    %258 = vector.shape_cast %257 : vector<2x2x2x128xf32> to vector<8x128xf32>
    %259 = arith.truncf %258 : vector<8x128xf32> to vector<8x128xbf16>
    %c3_81 = arith.constant 3 : index
    %c0_82 = arith.constant 0 : index
    %c0_83 = arith.constant 0 : index
    %260 = vector.load %arg6[%c3_81, %c0_82, %c0_83] : memref<16x128x128xbf16, #tpu.memory_space<vmem>>, vector<1x128x128xbf16>
    %261 = vector.shape_cast %260 : vector<1x128x128xbf16> to vector<128x128xbf16>
    %cst_84 = arith.constant dense<0.000000e+00> : vector<8x128xf32>
    %262 = tpu.matmul %259, %261, %cst_84 {dimension_numbers = #tpu.dot_dimension_numbers<[1], [0], [0], [1], [0, 0, 1, 1], [], []>} : vector<8x128xbf16>, vector<128x128xbf16>, vector<8x128xf32> -> vector<8x128xf32>
    %263 = arith.addf %253, %262 : vector<8x128xf32>
    %264 = vector.shape_cast %218 : vector<6x6x2x128xf32> to vector<3x2x6x2x128xf32>
    %265 = vector.extract_strided_slice %264 {offsets = [0, 1, 0, 0, 0], sizes = [3, 1, 6, 2, 128], strides = [1, 1, 1, 1, 1]} : vector<3x2x6x2x128xf32> to vector<3x1x6x2x128xf32>
    %266 = vector.shape_cast %265 : vector<3x1x6x2x128xf32> to vector<3x6x2x128xf32>
    %267 = vector.extract_strided_slice %266 {offsets = [0, 0, 0, 0], sizes = [2, 6, 2, 128], strides = [1, 1, 1, 1]} : vector<3x6x2x128xf32> to vector<2x6x2x128xf32>
    %268 = vector.shape_cast %267 : vector<2x6x2x128xf32> to vector<2x3x2x2x128xf32>
    %269 = vector.extract_strided_slice %268 {offsets = [0, 0, 0, 0, 0], sizes = [2, 3, 1, 2, 128], strides = [1, 1, 1, 1, 1]} : vector<2x3x2x2x128xf32> to vector<2x3x1x2x128xf32>
    %270 = vector.shape_cast %269 : vector<2x3x1x2x128xf32> to vector<2x3x2x128xf32>
    %271 = vector.extract_strided_slice %270 {offsets = [0, 0, 0, 0], sizes = [2, 2, 2, 128], strides = [1, 1, 1, 1]} : vector<2x3x2x128xf32> to vector<2x2x2x128xf32>
    %272 = vector.shape_cast %271 : vector<2x2x2x128xf32> to vector<8x128xf32>
    %273 = arith.truncf %272 : vector<8x128xf32> to vector<8x128xbf16>
    %c4_85 = arith.constant 4 : index
    %c0_86 = arith.constant 0 : index
    %c0_87 = arith.constant 0 : index
    %274 = vector.load %arg6[%c4_85, %c0_86, %c0_87] : memref<16x128x128xbf16, #tpu.memory_space<vmem>>, vector<1x128x128xbf16>
    %275 = vector.shape_cast %274 : vector<1x128x128xbf16> to vector<128x128xbf16>
    %cst_88 = arith.constant dense<0.000000e+00> : vector<8x128xf32>
    %276 = tpu.matmul %273, %275, %cst_88 {dimension_numbers = #tpu.dot_dimension_numbers<[1], [0], [0], [1], [0, 0, 1, 1], [], []>} : vector<8x128xbf16>, vector<128x128xbf16>, vector<8x128xf32> -> vector<8x128xf32>
    %277 = arith.addf %263, %276 : vector<8x128xf32>
    %278 = vector.shape_cast %267 : vector<2x6x2x128xf32> to vector<2x3x2x2x128xf32>
    %279 = vector.extract_strided_slice %278 {offsets = [0, 0, 1, 0, 0], sizes = [2, 3, 1, 2, 128], strides = [1, 1, 1, 1, 1]} : vector<2x3x2x2x128xf32> to vector<2x3x1x2x128xf32>
    %280 = vector.shape_cast %279 : vector<2x3x1x2x128xf32> to vector<2x3x2x128xf32>
    %281 = vector.extract_strided_slice %280 {offsets = [0, 0, 0, 0], sizes = [2, 2, 2, 128], strides = [1, 1, 1, 1]} : vector<2x3x2x128xf32> to vector<2x2x2x128xf32>
    %282 = vector.shape_cast %281 : vector<2x2x2x128xf32> to vector<8x128xf32>
    %283 = arith.truncf %282 : vector<8x128xf32> to vector<8x128xbf16>
    %c5_89 = arith.constant 5 : index
    %c0_90 = arith.constant 0 : index
    %c0_91 = arith.constant 0 : index
    %284 = vector.load %arg6[%c5_89, %c0_90, %c0_91] : memref<16x128x128xbf16, #tpu.memory_space<vmem>>, vector<1x128x128xbf16>
    %285 = vector.shape_cast %284 : vector<1x128x128xbf16> to vector<128x128xbf16>
    %cst_92 = arith.constant dense<0.000000e+00> : vector<8x128xf32>
    %286 = tpu.matmul %283, %285, %cst_92 {dimension_numbers = #tpu.dot_dimension_numbers<[1], [0], [0], [1], [0, 0, 1, 1], [], []>} : vector<8x128xbf16>, vector<128x128xbf16>, vector<8x128xf32> -> vector<8x128xf32>
    %287 = arith.addf %277, %286 : vector<8x128xf32>
    %288 = vector.shape_cast %267 : vector<2x6x2x128xf32> to vector<2x3x2x2x128xf32>
    %289 = vector.extract_strided_slice %288 {offsets = [0, 0, 0, 0, 0], sizes = [2, 3, 1, 2, 128], strides = [1, 1, 1, 1, 1]} : vector<2x3x2x2x128xf32> to vector<2x3x1x2x128xf32>
    %290 = vector.shape_cast %289 : vector<2x3x1x2x128xf32> to vector<2x3x2x128xf32>
    %291 = vector.extract_strided_slice %290 {offsets = [0, 1, 0, 0], sizes = [2, 2, 2, 128], strides = [1, 1, 1, 1]} : vector<2x3x2x128xf32> to vector<2x2x2x128xf32>
    %292 = vector.shape_cast %291 : vector<2x2x2x128xf32> to vector<8x128xf32>
    %293 = arith.truncf %292 : vector<8x128xf32> to vector<8x128xbf16>
    %c6_93 = arith.constant 6 : index
    %c0_94 = arith.constant 0 : index
    %c0_95 = arith.constant 0 : index
    %294 = vector.load %arg6[%c6_93, %c0_94, %c0_95] : memref<16x128x128xbf16, #tpu.memory_space<vmem>>, vector<1x128x128xbf16>
    %295 = vector.shape_cast %294 : vector<1x128x128xbf16> to vector<128x128xbf16>
    %cst_96 = arith.constant dense<0.000000e+00> : vector<8x128xf32>
    %296 = tpu.matmul %293, %295, %cst_96 {dimension_numbers = #tpu.dot_dimension_numbers<[1], [0], [0], [1], [0, 0, 1, 1], [], []>} : vector<8x128xbf16>, vector<128x128xbf16>, vector<8x128xf32> -> vector<8x128xf32>
    %297 = arith.addf %287, %296 : vector<8x128xf32>
    %298 = vector.shape_cast %267 : vector<2x6x2x128xf32> to vector<2x3x2x2x128xf32>
    %299 = vector.extract_strided_slice %298 {offsets = [0, 0, 1, 0, 0], sizes = [2, 3, 1, 2, 128], strides = [1, 1, 1, 1, 1]} : vector<2x3x2x2x128xf32> to vector<2x3x1x2x128xf32>
    %300 = vector.shape_cast %299 : vector<2x3x1x2x128xf32> to vector<2x3x2x128xf32>
    %301 = vector.extract_strided_slice %300 {offsets = [0, 1, 0, 0], sizes = [2, 2, 2, 128], strides = [1, 1, 1, 1]} : vector<2x3x2x128xf32> to vector<2x2x2x128xf32>
    %302 = vector.shape_cast %301 : vector<2x2x2x128xf32> to vector<8x128xf32>
    %303 = arith.truncf %302 : vector<8x128xf32> to vector<8x128xbf16>
    %c7_97 = arith.constant 7 : index
    %c0_98 = arith.constant 0 : index
    %c0_99 = arith.constant 0 : index
    %304 = vector.load %arg6[%c7_97, %c0_98, %c0_99] : memref<16x128x128xbf16, #tpu.memory_space<vmem>>, vector<1x128x128xbf16>
    %305 = vector.shape_cast %304 : vector<1x128x128xbf16> to vector<128x128xbf16>
    %cst_100 = arith.constant dense<0.000000e+00> : vector<8x128xf32>
    %306 = tpu.matmul %303, %305, %cst_100 {dimension_numbers = #tpu.dot_dimension_numbers<[1], [0], [0], [1], [0, 0, 1, 1], [], []>} : vector<8x128xbf16>, vector<128x128xbf16>, vector<8x128xf32> -> vector<8x128xf32>
    %307 = arith.addf %297, %306 : vector<8x128xf32>
    %308 = vector.shape_cast %218 : vector<6x6x2x128xf32> to vector<3x2x6x2x128xf32>
    %309 = vector.extract_strided_slice %308 {offsets = [0, 0, 0, 0, 0], sizes = [3, 1, 6, 2, 128], strides = [1, 1, 1, 1, 1]} : vector<3x2x6x2x128xf32> to vector<3x1x6x2x128xf32>
    %310 = vector.shape_cast %309 : vector<3x1x6x2x128xf32> to vector<3x6x2x128xf32>
    %311 = vector.extract_strided_slice %310 {offsets = [1, 0, 0, 0], sizes = [2, 6, 2, 128], strides = [1, 1, 1, 1]} : vector<3x6x2x128xf32> to vector<2x6x2x128xf32>
    %312 = vector.shape_cast %311 : vector<2x6x2x128xf32> to vector<2x3x2x2x128xf32>
    %313 = vector.extract_strided_slice %312 {offsets = [0, 0, 0, 0, 0], sizes = [2, 3, 1, 2, 128], strides = [1, 1, 1, 1, 1]} : vector<2x3x2x2x128xf32> to vector<2x3x1x2x128xf32>
    %314 = vector.shape_cast %313 : vector<2x3x1x2x128xf32> to vector<2x3x2x128xf32>
    %315 = vector.extract_strided_slice %314 {offsets = [0, 0, 0, 0], sizes = [2, 2, 2, 128], strides = [1, 1, 1, 1]} : vector<2x3x2x128xf32> to vector<2x2x2x128xf32>
    %316 = vector.shape_cast %315 : vector<2x2x2x128xf32> to vector<8x128xf32>
    %317 = arith.truncf %316 : vector<8x128xf32> to vector<8x128xbf16>
    %c8_101 = arith.constant 8 : index
    %c0_102 = arith.constant 0 : index
    %c0_103 = arith.constant 0 : index
    %318 = vector.load %arg6[%c8_101, %c0_102, %c0_103] : memref<16x128x128xbf16, #tpu.memory_space<vmem>>, vector<1x128x128xbf16>
    %319 = vector.shape_cast %318 : vector<1x128x128xbf16> to vector<128x128xbf16>
    %cst_104 = arith.constant dense<0.000000e+00> : vector<8x128xf32>
    %320 = tpu.matmul %317, %319, %cst_104 {dimension_numbers = #tpu.dot_dimension_numbers<[1], [0], [0], [1], [0, 0, 1, 1], [], []>} : vector<8x128xbf16>, vector<128x128xbf16>, vector<8x128xf32> -> vector<8x128xf32>
    %321 = arith.addf %307, %320 : vector<8x128xf32>
    %322 = vector.shape_cast %311 : vector<2x6x2x128xf32> to vector<2x3x2x2x128xf32>
    %323 = vector.extract_strided_slice %322 {offsets = [0, 0, 1, 0, 0], sizes = [2, 3, 1, 2, 128], strides = [1, 1, 1, 1, 1]} : vector<2x3x2x2x128xf32> to vector<2x3x1x2x128xf32>
    %324 = vector.shape_cast %323 : vector<2x3x1x2x128xf32> to vector<2x3x2x128xf32>
    %325 = vector.extract_strided_slice %324 {offsets = [0, 0, 0, 0], sizes = [2, 2, 2, 128], strides = [1, 1, 1, 1]} : vector<2x3x2x128xf32> to vector<2x2x2x128xf32>
    %326 = vector.shape_cast %325 : vector<2x2x2x128xf32> to vector<8x128xf32>
    %327 = arith.truncf %326 : vector<8x128xf32> to vector<8x128xbf16>
    %c9_105 = arith.constant 9 : index
    %c0_106 = arith.constant 0 : index
    %c0_107 = arith.constant 0 : index
    %328 = vector.load %arg6[%c9_105, %c0_106, %c0_107] : memref<16x128x128xbf16, #tpu.memory_space<vmem>>, vector<1x128x128xbf16>
    %329 = vector.shape_cast %328 : vector<1x128x128xbf16> to vector<128x128xbf16>
    %cst_108 = arith.constant dense<0.000000e+00> : vector<8x128xf32>
    %330 = tpu.matmul %327, %329, %cst_108 {dimension_numbers = #tpu.dot_dimension_numbers<[1], [0], [0], [1], [0, 0, 1, 1], [], []>} : vector<8x128xbf16>, vector<128x128xbf16>, vector<8x128xf32> -> vector<8x128xf32>
    %331 = arith.addf %321, %330 : vector<8x128xf32>
    %332 = vector.shape_cast %311 : vector<2x6x2x128xf32> to vector<2x3x2x2x128xf32>
    %333 = vector.extract_strided_slice %332 {offsets = [0, 0, 0, 0, 0], sizes = [2, 3, 1, 2, 128], strides = [1, 1, 1, 1, 1]} : vector<2x3x2x2x128xf32> to vector<2x3x1x2x128xf32>
    %334 = vector.shape_cast %333 : vector<2x3x1x2x128xf32> to vector<2x3x2x128xf32>
    %335 = vector.extract_strided_slice %334 {offsets = [0, 1, 0, 0], sizes = [2, 2, 2, 128], strides = [1, 1, 1, 1]} : vector<2x3x2x128xf32> to vector<2x2x2x128xf32>
    %336 = vector.shape_cast %335 : vector<2x2x2x128xf32> to vector<8x128xf32>
    %337 = arith.truncf %336 : vector<8x128xf32> to vector<8x128xbf16>
    %c10_109 = arith.constant 10 : index
    %c0_110 = arith.constant 0 : index
    %c0_111 = arith.constant 0 : index
    %338 = vector.load %arg6[%c10_109, %c0_110, %c0_111] : memref<16x128x128xbf16, #tpu.memory_space<vmem>>, vector<1x128x128xbf16>
    %339 = vector.shape_cast %338 : vector<1x128x128xbf16> to vector<128x128xbf16>
    %cst_112 = arith.constant dense<0.000000e+00> : vector<8x128xf32>
    %340 = tpu.matmul %337, %339, %cst_112 {dimension_numbers = #tpu.dot_dimension_numbers<[1], [0], [0], [1], [0, 0, 1, 1], [], []>} : vector<8x128xbf16>, vector<128x128xbf16>, vector<8x128xf32> -> vector<8x128xf32>
    %341 = arith.addf %331, %340 : vector<8x128xf32>
    %342 = vector.shape_cast %311 : vector<2x6x2x128xf32> to vector<2x3x2x2x128xf32>
    %343 = vector.extract_strided_slice %342 {offsets = [0, 0, 1, 0, 0], sizes = [2, 3, 1, 2, 128], strides = [1, 1, 1, 1, 1]} : vector<2x3x2x2x128xf32> to vector<2x3x1x2x128xf32>
    %344 = vector.shape_cast %343 : vector<2x3x1x2x128xf32> to vector<2x3x2x128xf32>
    %345 = vector.extract_strided_slice %344 {offsets = [0, 1, 0, 0], sizes = [2, 2, 2, 128], strides = [1, 1, 1, 1]} : vector<2x3x2x128xf32> to vector<2x2x2x128xf32>
    %346 = vector.shape_cast %345 : vector<2x2x2x128xf32> to vector<8x128xf32>
    %347 = arith.truncf %346 : vector<8x128xf32> to vector<8x128xbf16>
    %c11_113 = arith.constant 11 : index
    %c0_114 = arith.constant 0 : index
    %c0_115 = arith.constant 0 : index
    %348 = vector.load %arg6[%c11_113, %c0_114, %c0_115] : memref<16x128x128xbf16, #tpu.memory_space<vmem>>, vector<1x128x128xbf16>
    %349 = vector.shape_cast %348 : vector<1x128x128xbf16> to vector<128x128xbf16>
    %cst_116 = arith.constant dense<0.000000e+00> : vector<8x128xf32>
    %350 = tpu.matmul %347, %349, %cst_116 {dimension_numbers = #tpu.dot_dimension_numbers<[1], [0], [0], [1], [0, 0, 1, 1], [], []>} : vector<8x128xbf16>, vector<128x128xbf16>, vector<8x128xf32> -> vector<8x128xf32>
    %351 = arith.addf %341, %350 : vector<8x128xf32>
    %352 = vector.shape_cast %218 : vector<6x6x2x128xf32> to vector<3x2x6x2x128xf32>
    %353 = vector.extract_strided_slice %352 {offsets = [0, 1, 0, 0, 0], sizes = [3, 1, 6, 2, 128], strides = [1, 1, 1, 1, 1]} : vector<3x2x6x2x128xf32> to vector<3x1x6x2x128xf32>
    %354 = vector.shape_cast %353 : vector<3x1x6x2x128xf32> to vector<3x6x2x128xf32>
    %355 = vector.extract_strided_slice %354 {offsets = [1, 0, 0, 0], sizes = [2, 6, 2, 128], strides = [1, 1, 1, 1]} : vector<3x6x2x128xf32> to vector<2x6x2x128xf32>
    %356 = vector.shape_cast %355 : vector<2x6x2x128xf32> to vector<2x3x2x2x128xf32>
    %357 = vector.extract_strided_slice %356 {offsets = [0, 0, 0, 0, 0], sizes = [2, 3, 1, 2, 128], strides = [1, 1, 1, 1, 1]} : vector<2x3x2x2x128xf32> to vector<2x3x1x2x128xf32>
    %358 = vector.shape_cast %357 : vector<2x3x1x2x128xf32> to vector<2x3x2x128xf32>
    %359 = vector.extract_strided_slice %358 {offsets = [0, 0, 0, 0], sizes = [2, 2, 2, 128], strides = [1, 1, 1, 1]} : vector<2x3x2x128xf32> to vector<2x2x2x128xf32>
    %360 = vector.shape_cast %359 : vector<2x2x2x128xf32> to vector<8x128xf32>
    %361 = arith.truncf %360 : vector<8x128xf32> to vector<8x128xbf16>
    %c12_117 = arith.constant 12 : index
    %c0_118 = arith.constant 0 : index
    %c0_119 = arith.constant 0 : index
    %362 = vector.load %arg6[%c12_117, %c0_118, %c0_119] : memref<16x128x128xbf16, #tpu.memory_space<vmem>>, vector<1x128x128xbf16>
    %363 = vector.shape_cast %362 : vector<1x128x128xbf16> to vector<128x128xbf16>
    %cst_120 = arith.constant dense<0.000000e+00> : vector<8x128xf32>
    %364 = tpu.matmul %361, %363, %cst_120 {dimension_numbers = #tpu.dot_dimension_numbers<[1], [0], [0], [1], [0, 0, 1, 1], [], []>} : vector<8x128xbf16>, vector<128x128xbf16>, vector<8x128xf32> -> vector<8x128xf32>
    %365 = arith.addf %351, %364 : vector<8x128xf32>
    %366 = vector.shape_cast %355 : vector<2x6x2x128xf32> to vector<2x3x2x2x128xf32>
    %367 = vector.extract_strided_slice %366 {offsets = [0, 0, 1, 0, 0], sizes = [2, 3, 1, 2, 128], strides = [1, 1, 1, 1, 1]} : vector<2x3x2x2x128xf32> to vector<2x3x1x2x128xf32>
    %368 = vector.shape_cast %367 : vector<2x3x1x2x128xf32> to vector<2x3x2x128xf32>
    %369 = vector.extract_strided_slice %368 {offsets = [0, 0, 0, 0], sizes = [2, 2, 2, 128], strides = [1, 1, 1, 1]} : vector<2x3x2x128xf32> to vector<2x2x2x128xf32>
    %370 = vector.shape_cast %369 : vector<2x2x2x128xf32> to vector<8x128xf32>
    %371 = arith.truncf %370 : vector<8x128xf32> to vector<8x128xbf16>
    %c13_121 = arith.constant 13 : index
    %c0_122 = arith.constant 0 : index
    %c0_123 = arith.constant 0 : index
    %372 = vector.load %arg6[%c13_121, %c0_122, %c0_123] : memref<16x128x128xbf16, #tpu.memory_space<vmem>>, vector<1x128x128xbf16>
    %373 = vector.shape_cast %372 : vector<1x128x128xbf16> to vector<128x128xbf16>
    %cst_124 = arith.constant dense<0.000000e+00> : vector<8x128xf32>
    %374 = tpu.matmul %371, %373, %cst_124 {dimension_numbers = #tpu.dot_dimension_numbers<[1], [0], [0], [1], [0, 0, 1, 1], [], []>} : vector<8x128xbf16>, vector<128x128xbf16>, vector<8x128xf32> -> vector<8x128xf32>
    %375 = arith.addf %365, %374 : vector<8x128xf32>
    %376 = vector.shape_cast %355 : vector<2x6x2x128xf32> to vector<2x3x2x2x128xf32>
    %377 = vector.extract_strided_slice %376 {offsets = [0, 0, 0, 0, 0], sizes = [2, 3, 1, 2, 128], strides = [1, 1, 1, 1, 1]} : vector<2x3x2x2x128xf32> to vector<2x3x1x2x128xf32>
    %378 = vector.shape_cast %377 : vector<2x3x1x2x128xf32> to vector<2x3x2x128xf32>
    %379 = vector.extract_strided_slice %378 {offsets = [0, 1, 0, 0], sizes = [2, 2, 2, 128], strides = [1, 1, 1, 1]} : vector<2x3x2x128xf32> to vector<2x2x2x128xf32>
    %380 = vector.shape_cast %379 : vector<2x2x2x128xf32> to vector<8x128xf32>
    %381 = arith.truncf %380 : vector<8x128xf32> to vector<8x128xbf16>
    %c14_125 = arith.constant 14 : index
    %c0_126 = arith.constant 0 : index
    %c0_127 = arith.constant 0 : index
    %382 = vector.load %arg6[%c14_125, %c0_126, %c0_127] : memref<16x128x128xbf16, #tpu.memory_space<vmem>>, vector<1x128x128xbf16>
    %383 = vector.shape_cast %382 : vector<1x128x128xbf16> to vector<128x128xbf16>
    %cst_128 = arith.constant dense<0.000000e+00> : vector<8x128xf32>
    %384 = tpu.matmul %381, %383, %cst_128 {dimension_numbers = #tpu.dot_dimension_numbers<[1], [0], [0], [1], [0, 0, 1, 1], [], []>} : vector<8x128xbf16>, vector<128x128xbf16>, vector<8x128xf32> -> vector<8x128xf32>
    %385 = arith.addf %375, %384 : vector<8x128xf32>
    %386 = vector.shape_cast %355 : vector<2x6x2x128xf32> to vector<2x3x2x2x128xf32>
    %387 = vector.extract_strided_slice %386 {offsets = [0, 0, 1, 0, 0], sizes = [2, 3, 1, 2, 128], strides = [1, 1, 1, 1, 1]} : vector<2x3x2x2x128xf32> to vector<2x3x1x2x128xf32>
    %388 = vector.shape_cast %387 : vector<2x3x1x2x128xf32> to vector<2x3x2x128xf32>
    %389 = vector.extract_strided_slice %388 {offsets = [0, 1, 0, 0], sizes = [2, 2, 2, 128], strides = [1, 1, 1, 1]} : vector<2x3x2x128xf32> to vector<2x2x2x128xf32>
    %390 = vector.shape_cast %389 : vector<2x2x2x128xf32> to vector<8x128xf32>
    %391 = arith.truncf %390 : vector<8x128xf32> to vector<8x128xbf16>
    %c15_129 = arith.constant 15 : index
    %c0_130 = arith.constant 0 : index
    %c0_131 = arith.constant 0 : index
    %392 = vector.load %arg6[%c15_129, %c0_130, %c0_131] : memref<16x128x128xbf16, #tpu.memory_space<vmem>>, vector<1x128x128xbf16>
    %393 = vector.shape_cast %392 : vector<1x128x128xbf16> to vector<128x128xbf16>
    %cst_132 = arith.constant dense<0.000000e+00> : vector<8x128xf32>
    %394 = tpu.matmul %391, %393, %cst_132 {dimension_numbers = #tpu.dot_dimension_numbers<[1], [0], [0], [1], [0, 0, 1, 1], [], []>} : vector<8x128xbf16>, vector<128x128xbf16>, vector<8x128xf32> -> vector<8x128xf32>
    %395 = arith.addf %385, %394 : vector<8x128xf32>
    %cst_133 = arith.constant dense<0.000000e+00> : vector<128xf32>
    %396 = vector.multi_reduction <add>, %395, %cst_133 [0] : vector<8x128xf32> to vector<128xf32>
    %397 = vector.shape_cast %396 : vector<128xf32> to vector<1x128xf32>
    %cst_134 = arith.constant 8.000000e+00 : f32
    %398 = vector.broadcast %cst_134 : f32 to vector<1x128xf32>
    %399 = arith.divf %397, %398 : vector<1x128xf32>
    %400 = vector.broadcast %399 : vector<1x128xf32> to vector<8x128xf32>
    %401 = arith.subf %395, %400 : vector<8x128xf32>
    %402 = arith.mulf %401, %401 : vector<8x128xf32>
    %cst_135 = arith.constant dense<0.000000e+00> : vector<128xf32>
    %403 = vector.multi_reduction <add>, %402, %cst_135 [0] : vector<8x128xf32> to vector<128xf32>
    %404 = vector.shape_cast %403 : vector<128xf32> to vector<1x128xf32>
    %cst_136 = arith.constant 8.000000e+00 : f32
    %405 = vector.broadcast %cst_136 : f32 to vector<1x128xf32>
    %406 = arith.divf %404, %405 : vector<1x128xf32>
    %407 = vector.broadcast %399 : vector<1x128xf32> to vector<8x128xf32>
    %408 = arith.subf %395, %407 : vector<8x128xf32>
    %cst_137 = arith.constant 9.99999974E-6 : f32
    %409 = vector.broadcast %cst_137 : f32 to vector<1x128xf32>
    %410 = arith.addf %406, %409 : vector<1x128xf32>
    %411 = math.rsqrt %410 : vector<1x128xf32>
    %412 = vector.broadcast %411 : vector<1x128xf32> to vector<8x128xf32>
    %413 = arith.mulf %408, %412 : vector<8x128xf32>
    %c0_138 = arith.constant 0 : index
    %c0_139 = arith.constant 0 : index
    %414 = vector.load %arg7[%c0_138, %c0_139] : memref<1x128xf32, #tpu.memory_space<vmem>>, vector<1x128xf32>
    %415 = vector.broadcast %414 : vector<1x128xf32> to vector<8x128xf32>
    %416 = arith.mulf %413, %415 : vector<8x128xf32>
    %c0_140 = arith.constant 0 : index
    %c0_141 = arith.constant 0 : index
    %417 = vector.load %arg8[%c0_140, %c0_141] : memref<1x128xf32, #tpu.memory_space<vmem>>, vector<1x128xf32>
    %418 = vector.broadcast %417 : vector<1x128xf32> to vector<8x128xf32>
    %419 = arith.addf %416, %418 : vector<8x128xf32>
    %cst_142 = arith.constant 2.000000e-01 : f32
    %420 = vector.broadcast %cst_142 : f32 to vector<8x128xf32>
    %421 = arith.mulf %420, %419 : vector<8x128xf32>
    %422 = arith.maximumf %419, %421 : vector<8x128xf32>
    %423 = arith.truncf %422 : vector<8x128xf32> to vector<8x128xbf16>
    %c0_143 = arith.constant 0 : index
    %c0_144 = arith.constant 0 : index
    %424 = vector.load %arg9[%c0_143, %c0_144] : memref<128x128xbf16, #tpu.memory_space<vmem>>, vector<128x128xbf16>
    %cst_145 = arith.constant dense<0.000000e+00> : vector<8x128xf32>
    %425 = tpu.matmul %423, %424, %cst_145 {dimension_numbers = #tpu.dot_dimension_numbers<[1], [0], [0], [1], [0, 0, 1, 1], [], []>} : vector<8x128xbf16>, vector<128x128xbf16>, vector<8x128xf32> -> vector<8x128xf32>
    %c0_146 = arith.constant 0 : index
    %c0_147 = arith.constant 0 : index
    %426 = vector.load %arg10[%c0_146, %c0_147] : memref<1x128xf32, #tpu.memory_space<vmem>>, vector<1x128xf32>
    %427 = vector.broadcast %426 : vector<1x128xf32> to vector<8x128xf32>
    %428 = arith.addf %425, %427 : vector<8x128xf32>
    %cst_148 = arith.constant 0.000000e+00 : f32
    %429 = vector.broadcast %cst_148 : f32 to vector<8x128xf32>
    %430 = arith.subf %429, %428 : vector<8x128xf32>
    %431 = math.exp %430 : vector<8x128xf32>
    %cst_149 = arith.constant 1.000000e+00 : f32
    %432 = vector.broadcast %cst_149 : f32 to vector<8x128xf32>
    %433 = arith.addf %432, %431 : vector<8x128xf32>
    %434 = tpu.reciprocal %433 {approx = true} : vector<8x128xf32> -> vector<8x128xf32>
    %c0_150 = arith.constant 0 : index
    %c0_151 = arith.constant 0 : index
    %435 = vector.load %arg11[%c0_150, %c0_151] : memref<8x128xf32, #tpu.memory_space<vmem>>, vector<8x128xf32>
    tpu.vector_store %arg11[%c0_150, %c0_151], %434 {strides = array<i32>} : memref<8x128xf32, #tpu.memory_space<vmem>>, vector<8x128xf32>,
    return
  }
}

</mosaic_0001>

<bundles_post_ra>
// kernel: squeeze.1
= control target key start
LH: loop header
LB: loop body
LE: loop exit
PB: predicated region body
PF: predicated region fallthrough
CT: control target
= control target key end

     0   :  { %vm7_vm0 = vcmask 15360   ;;  %s43_s8 = smov 122   ;;  %s44_s9 = smov 124   ;;  %s68_s0 = inlined_call_operand.vmem [shape: f32[8], index: 0, kind: input, shape index: {}]   ;;  %s69_s1 = inlined_call_operand.vmem [shape: f32[2,2,2], index: 1, kind: output, shape index: {}]  }
   0x1   :  { %v4_v0 = vld [vmem:[%s68_s0] sm:$0x1]  ;;  %s42_s0 = smov 126  }
   0x2   :  { %5 = vst [vmem:[#allocation1] sm:$0x1] %v4_v0 }
   0x9   :  { %v9_v1 = vld [vmem:[#allocation1] sm:$0x1]  }
   0xa   :  { %v21_v2 = vld [vmem:[#allocation1] sm:$0x1]   ;;  %10 = vrot.lane.b32.xlu0 %v9_v1, %s42_s0 }
   0xb   :  { %22 = vrot.lane.b32.xlu1 %v21_v2, %s43_s8  ;;  %v6_v3 = vld [vmem:[#allocation1] sm:$0x1]  }
   0xc   :  { %v15_v4 = vld [vmem:[#allocation1] sm:$0x1]   ;;  %8 = vst.msk [vmem:[#allocation0] sm:$0x1] %vm7_vm0, %v6_v3  }
   0xe   :  { %16 = vrot.lane.b32.xlu0 %v15_v4, %s44_s9 }
  0x7c   :  { %v11_v5 = vpop.permute.xlu0 %10  }
  0x7d   :  { %v23_v6 = vpop.permute.xlu1 %22   ;;  %14 = vst.msk [vmem:[#allocation0 + $0x1] sm:$0x1] %vm7_vm0, %v11_v5  }
  0x7e   :  { %26 = vst.msk [vmem:[#allocation0 + $0x9] sm:$0x1] %vm7_vm0, %v23_v6  }
  0x80   :  { %v17_v7 = vpop.permute.xlu0 %16  }
  0x81   :  { %20 = vst.msk [vmem:[#allocation0 + $0x8] sm:$0x1] %vm7_vm0, %v17_v7  }
  0x84   :  { %v30_v8 = vld [vmem:[#allocation0] sm:$0x3] }
  0x85   :  { %32 = vst [vmem:[%s69_s1] sm:$0x3] %v30_v8 }
  0x88   :  { %v34_v9 = vld [vmem:[#allocation0 + $0x8] sm:$0x3] }
  0x89   :  { %38 = vst [vmem:[%s69_s1 + $0x2] sm:$0x3] %v34_v9 }

// kernel: discriminator_forward.1
= control target key start
LH: loop header
LB: loop body
LE: loop exit
PB: predicated region body
PF: predicated region fallthrough
CT: control target
= control target key end

     0   :  { %v14305_v0 = vmov 0.0   ;;  %vm11057_vm0 = vmmov 0   ;;  %v11058_v46 = vmov 1983009808   ;;  %v762_v48 = vlaneseq  ;;  %s14293_s1 = inlined_call_operand.vmem [shape: bf16[128,128], index: 1, kind: input, shape index: {}]   ;;  %s14294_s0 = inlined_call_operand.vmem [shape: bf16[450,128], index: 0, kind: input, shape index: {}]   ;;  %s14295_s3 = inlined_call_operand.vmem [shape: bf16[16,128,128], index: 3, kind: input, shape index: {}]   ;;  %s14296_s2 = inlined_call_operand.vmem [shape: f32[1,128], index: 2, kind: input, shape index: {}]   ;;  %s14297_s6 = inlined_call_operand.vmem [shape: bf16[16,128,128], index: 6, kind: input, shape index: {}]   ;;  %s14298_s4 = inlined_call_operand.vmem [shape: f32[1,128], index: 4, kind: input, shape index: {}]   ;;  %s14299_s5 = inlined_call_operand.vmem [shape: f32[1,128], index: 5, kind: input, shape index: {}]   ;;  %s14300_s9 = inlined_call_operand.vmem [shape: bf16[128,128], index: 9, kind: input, shape index: {}]   ;;  %s14301_s7 = inlined_call_operand.vmem [shape: f32[1,128], index: 7, kind: input, shape index: {}]   ;;  %s14302_s8 = inlined_call_operand.vmem [shape: f32[1,128], index: 8, kind: input, shape index: {}]   ;;  %s14303_s10 = inlined_call_operand.vmem [shape: f32[1,128], index: 10, kind: input, shape index: {}]   ;;  %s14304_s11 = inlined_call_operand.vmem [shape: f32[8,128], index: 11, kind: output, shape index: {}]  }
   0x1   :  { %9318 = vmatprep.subr.bf16.mxu0 %v14305_v0  ;;  %v10745_v1 = vld [vmem:[%s14293_s1] sm:$0xff]   ;;  %9334 = vmatprep.mubr.msk.bf16.mxu0 %vm11057_vm0, %v14305_v0  ;;  %v10746_v2 = vld [vmem:[%s14293_s1 + $0x8] sm:$0xff]   ;;  %v10747_v3 = vld [vmem:[%s14293_s1 + $0x10] sm:$0xff]   ;;  %v760_v47 = vunpack.c.l.s4 %v11058_v46 }
   0x2   :  { %10366 = vmatprep.subr.bf16.mxu1 %v14305_v0  ;;  %9434 = vmatprep.mubr.msk.bf16.mxu1 %vm11057_vm0, %v14305_v0  ;;  %v10748_v4 = vld [vmem:[%s14293_s1 + $0x18] sm:$0xff]   ;;  %v10749_v5 = vld [vmem:[%s14293_s1 + $0x20] sm:$0xff]   ;;  %v10750_v6 = vld [vmem:[%s14293_s1 + $0x28] sm:$0xff]   ;;  %v763_v52 = vshrl.u32 %v762_v48, 7 }
   0x3   :  { %9319 = vmatpush3.bf16.msra.mxu0 %v10745_v1  ;;  %10374 = vmatpush3.bf16.msra.mxu1 %v10745_v1  ;;  %v10751_v7 = vld [vmem:[%s14293_s1 + $0x30] sm:$0xff]   ;;  %v10752_v8 = vld [vmem:[%s14293_s1 + $0x38] sm:$0xff]   ;;  %v10753_v9 = vld [vmem:[%s14294_s0] sm:$0xff]   ;;  %v761_v51 = vunpack.c.0.s8 %v760_v47 }
   0x4   :  { %9320 = vmatprep.subr.bf16.mxu0 %v14305_v0  ;;  %10367 = vmatprep.subr.bf16.mxu1 %v14305_v0  ;;  %v10754_v10 = vld [vmem:[%s14294_s0 + $0x8] sm:$0xff]   ;;  %v10755_v11 = vld [vmem:[%s14294_s0 + $0x10] sm:$0xff]   ;;  %v10756_v12 = vld [vmem:[%s14294_s0 + $0x18] sm:$0xff]  }
   0x5   :  { %v10757_v13 = vld [vmem:[%s14294_s0 + $0x20] sm:$0xff]   ;;  %v10758_v14 = vld [vmem:[%s14294_s0 + $0x28] sm:$0xff]   ;;  %v10759_v15 = vld [vmem:[%s14294_s0 + $0x30] sm:$0xff]   ;;  %v11349_v59 = vsub.s32 %v761_v51, %v763_v52 }
   0x6   :  { %v10760_v16 = vld [vmem:[%s14294_s0 + $0x38] sm:$0xff]   ;;  %v10761_v17 = vld [vmem:[%s14294_s0 + $0x40] sm:$0xff]   ;;  %v10762_v18 = vld [vmem:[%s14294_s0 + $0x48] sm:$0xff]  }
   0x7   :  { %9321 = vmatpush3.bf16.msra.mxu0 %v10746_v2  ;;  %10375 = vmatpush3.bf16.msra.mxu1 %v10746_v2  ;;  %v10763_v19 = vld [vmem:[%s14294_s0 + $0x50] sm:$0xff]   ;;  %v10764_v20 = vld [vmem:[%s14294_s0 + $0x58] sm:$0xff]   ;;  %v10765_v21 = vld [vmem:[%s14294_s0 + $0x60] sm:$0xff]  }
   0x8   :  { %9322 = vmatprep.subr.bf16.mxu0 %v14305_v0  ;;  %10368 = vmatprep.subr.bf16.mxu1 %v14305_v0  ;;  %v10766_v22 = vld [vmem:[%s14294_s0 + $0x68] sm:$0xff]   ;;  %v10779_v24 = vld [vmem:[%s14295_s3 + $0x40] sm:$0xff]   ;;  %v10767_v26 = vld [vmem:[%s14294_s0 + $0x70] sm:$0xff]  }
   0x9   :  { %v10778_v23 = vld [vmem:[%s14294_s0 + $0xc8] sm:$0xff]   ;;  %v10781_v27 = vld [vmem:[%s14294_s0 + $0xd0] sm:$0xff]   ;;  %v10768_v29 = vld [vmem:[%s14294_s0 + $0x78] sm:$0xff]  }
   0xa   :  { %v10780_v25 = vld [vmem:[%s14295_s3 + $0x48] sm:$0xff]   ;;  %v10782_v28 = vld [vmem:[%s14295_s3 + $0x50] sm:$0xff]   ;;  %v10783_v30 = vld [vmem:[%s14295_s3 + $0x58] sm:$0xff]  }
   0xb   :  { %9323 = vmatpush3.bf16.msra.mxu0 %v10747_v3  ;;  %10376 = vmatpush3.bf16.msra.mxu1 %v10747_v3  ;;  %v10784_v31 = vld [vmem:[%s14294_s0 + $0xd8] sm:$0xff]   ;;  %v10785_v32 = vld [vmem:[%s14295_s3 + $0x60] sm:$0xff]   ;;  %v10786_v34 = vld [vmem:[%s14295_s3 + $0x68] sm:$0xff]  }
   0xc   :  { %9324 = vmatprep.subr.bf16.mxu0 %v14305_v0  ;;  %10369 = vmatprep.subr.bf16.mxu1 %v14305_v0  ;;  %v10769_v33 = vld [vmem:[%s14294_s0 + $0x80] sm:$0xff]   ;;  %v10788_v36 = vld [vmem:[%s14295_s3 + $0x70] sm:$0xff]   ;;  %v10770_v37 = vld [vmem:[%s14294_s0 + $0x88] sm:$0xff]  }
   0xd   :  { %v10787_v35 = vld [vmem:[%s14294_s0 + $0xe0] ss:$0 sps:$4 sm:$0x11]   ;;  %v10789_v38 = vld [vmem:[%s14295_s3 + $0x78] sm:$0xff]   ;;  %v10771_v39 = vld [vmem:[%s14294_s0 + $0x90] sm:$0xff]  }
   0xe   :  { %v10772_v40 = vld [vmem:[%s14294_s0 + $0x98] sm:$0xff]   ;;  %v10773_v41 = vld [vmem:[%s14294_s0 + $0xa0] sm:$0xff]   ;;  %v10774_v42 = vld [vmem:[%s14294_s0 + $0xa8] sm:$0xff]  }
   0xf   :  { %9325 = vmatpush3.bf16.msra.mxu0 %v10748_v4  ;;  %10377 = vmatpush3.bf16.msra.mxu1 %v10748_v4  ;;  %v10775_v43 = vld [vmem:[%s14294_s0 + $0xb0] sm:$0xff]   ;;  %v10776_v44 = vld [vmem:[%s14294_s0 + $0xb8] sm:$0xff]   ;;  %v10777_v45 = vld [vmem:[%s14294_s0 + $0xc0] sm:$0xff]  }
  0x10   :  { %9326 = vmatprep.subr.bf16.mxu0 %v14305_v0  ;;  %10370 = vmatprep.subr.bf16.mxu1 %v14305_v0  ;;  %v11345_v49 = vld [vmem:[%s14296_s2] ss:$0 sm:$0xff] }
  0x13   :  { %9327 = vmatpush3.bf16.msra.mxu0 %v10749_v5  ;;  %10378 = vmatpush3.bf16.msra.mxu1 %v10749_v5 }
  0x14   :  { %9328 = vmatprep.subr.bf16.mxu0 %v14305_v0  ;;  %10371 = vmatprep.subr.bf16.mxu1 %v14305_v0 }
  0x17   :  { %9329 = vmatpush3.bf16.msra.mxu0 %v10750_v6  ;;  %10379 = vmatpush3.bf16.msra.mxu1 %v10750_v6 }
  0x18   :  { %9330 = vmatprep.subr.bf16.mxu0 %v14305_v0  ;;  %10372 = vmatprep.subr.bf16.mxu1 %v14305_v0 }
  0x1b   :  { %9331 = vmatpush3.bf16.msra.mxu0 %v10751_v7  ;;  %10380 = vmatpush3.bf16.msra.mxu1 %v10751_v7 }
  0x1c   :  { %9332 = vmatprep.subr.bf16.mxu0 %v14305_v0  ;;  %10373 = vmatprep.subr.bf16.mxu1 %v14305_v0 }
  0x1f   :  { %9333 = vmatpush3.bf16.msra.mxu0 %v10752_v8  ;;  %10381 = vmatpush3.bf16.msra.mxu1 %v10752_v8 }
  0x20   :  { %9450 = vmatprep.subr.bf16.mxu1 %v14305_v0  ;;  %10026 = vmatprep.subr.bf16.mxu0 %v14305_v0 }
  0x22   :  { %9335 = vmatmul.mubr.bf16.vlgmr.msra.gmra.mrb[0].mxu0 %v10753_v9  ;;  %9435 = vmatmul.mubr.bf16.vlgmr.msra.gmra.mrb[0].mxu1 %v10778_v23 }
  0x23   :  { %9338 = vmatprep.mubr.msk.bf16.mxu0 %vm11057_vm0, %v14305_v0  ;;  %9451 = vmatpush3.bf16.msra.mxu1 %v10779_v24 }
  0x24   :  { %9438 = vmatprep.mubr.msk.bf16.mxu1 %vm11057_vm0, %v14305_v0  ;;  %9452 = vmatprep.subr.bf16.mxu1 %v14305_v0 }
  0x27   :  { %9453 = vmatpush3.bf16.msra.mxu1 %v10780_v25 }
  0x28   :  { %9454 = vmatprep.subr.bf16.mxu1 %v14305_v0 }
  0x2a   :  { %9339 = vmatmul.mubr.bf16.gmra.mrb[4].mxu0 %v10754_v10  ;;  %9439 = vmatmul.mubr.bf16.gmra.mrb[4].mxu1 %v10781_v27 }
  0x2b   :  { %9342 = vmatprep.mubr.msk.bf16.mxu0 %vm11057_vm0, %v14305_v0  ;;  %9442 = vmatprep.mubr.msk.bf16.mxu1 %vm11057_vm0, %v14305_v0 }
  0x2c   :  { %9455 = vmatpush3.bf16.msra.mxu1 %v10782_v28 }
  0x2d   :  { %9456 = vmatprep.subr.bf16.mxu1 %v14305_v0 }
  0x30   :  { %9457 = vmatpush3.bf16.msra.mxu1 %v10783_v30 }
  0x31   :  { %9458 = vmatprep.subr.bf16.mxu1 %v14305_v0 }
  0x32   :  { %9343 = vmatmul.mubr.bf16.gmra.mrb[8].mxu0 %v10755_v11  ;;  %9443 = vmatmul.mubr.bf16.gmra.mrb[8].mxu1 %v10784_v31 }
  0x33   :  { %9346 = vmatprep.mubr.msk.bf16.mxu0 %vm11057_vm0, %v14305_v0  ;;  %9446 = vmatprep.mubr.msk.bf16.mxu1 %vm11057_vm0, %v14305_v0 }
  0x34   :  { %9459 = vmatpush3.bf16.msra.mxu1 %v10785_v32 }
  0x35   :  { %9460 = vmatprep.subr.bf16.mxu1 %v14305_v0 }
  0x38   :  { %9461 = vmatpush3.bf16.msra.mxu1 %v10786_v34 }
  0x39   :  { %9462 = vmatprep.subr.bf16.mxu1 %v14305_v0 }
  0x3a   :  { %9347 = vmatmul.mubr.bf16.gmra.mrb[12].mxu0 %v10756_v12  ;;  %9447 = vmatmul.mubr.bf16.gmra.mrb[12].mxu1 %v10787_v35 }
  0x3b   :  { %9350 = vmatprep.mubr.msk.bf16.mxu0 %vm11057_vm0, %v14305_v0  ;;  %9466 = vmatprep.mubr.msk.bf16.mxu1 %vm11057_vm0, %v14305_v0 }
  0x3c   :  { %9463 = vmatpush3.bf16.msra.mxu1 %v10788_v36 }
  0x3d   :  { %9464 = vmatprep.subr.bf16.mxu1 %v14305_v0 }
  0x40   :  { %9465 = vmatpush3.bf16.msra.mxu1 %v10789_v38 }
  0x41   :  { %9486 = vmatprep.subr.bf16.mxu1 %v14305_v0 }
  0x42   :  { %9351 = vmatmul.mubr.bf16.gmra.mrb[16].mxu0 %v10757_v13 }
  0x43   :  { %9354 = vmatprep.mubr.msk.bf16.mxu0 %vm11057_vm0, %v14305_v0 }
  0x4a   :  { %9355 = vmatmul.mubr.bf16.gmra.mrb[20].mxu0 %v10758_v14 }
  0x4b   :  { %9358 = vmatprep.mubr.msk.bf16.mxu0 %vm11057_vm0, %v14305_v0 }
  0x52   :  { %9359 = vmatmul.mubr.bf16.gmra.mrb[24].mxu0 %v10759_v15 }
  0x53   :  { %9362 = vmatprep.mubr.msk.bf16.mxu0 %vm11057_vm0, %v14305_v0 }
  0x5a   :  { %9363 = vmatmul.mubr.bf16.gmra.mrb[28].mxu0 %v10760_v16 }
  0x5b   :  { %9366 = vmatprep.mubr.msk.bf16.mxu0 %vm11057_vm0, %v14305_v0 }
  0x62   :  { %9367 = vmatmul.mubr.bf16.gmra.mrb[32].mxu0 %v10761_v17 }
  0x63   :  { %9370 = vmatprep.mubr.msk.bf16.mxu0 %vm11057_vm0, %v14305_v0 }
  0x6a   :  { %9371 = vmatmul.mubr.bf16.gmra.mrb[36].mxu0 %v10762_v18 }
  0x6b   :  { %9374 = vmatprep.mubr.msk.bf16.mxu0 %vm11057_vm0, %v14305_v0 }
  0x72   :  { %9375 = vmatmul.mubr.bf16.gmra.mrb[40].mxu0 %v10763_v19 }
  0x73   :  { %9378 = vmatprep.mubr.msk.bf16.mxu0 %vm11057_vm0, %v14305_v0 }
  0x7a   :  { %9379 = vmatmul.mubr.bf16.gmra.mrb[44].mxu0 %v10764_v20 }
  0x7b   :  { %9382 = vmatprep.mubr.msk.bf16.mxu0 %vm11057_vm0, %v14305_v0 }
  0x82   :  { %9383 = vmatmul.mubr.bf16.gmra.mrb[48].mxu0 %v10765_v21 }
  0x83   :  { %9386 = vmatprep.mubr.msk.bf16.mxu0 %vm11057_vm0, %v14305_v0 }
  0x8a   :  { %9387 = vmatmul.mubr.bf16.gmra.mrb[52].mxu0 %v10766_v22 }
  0x8b   :  { %9390 = vmatprep.mubr.msk.bf16.mxu0 %vm11057_vm0, %v14305_v0 }
  0x92   :  { %9391 = vmatmul.mubr.bf16.gmra.mrb[56].mxu0 %v10767_v26 }
  0x93   :  { %9394 = vmatprep.mubr.msk.bf16.mxu0 %vm11057_vm0, %v14305_v0 }
  0x9a   :  { %9395 = vmatmul.mubr.bf16.gmra.mrb[60].mxu0 %v10768_v29 }
  0x9b   :  { %9398 = vmatprep.mubr.msk.bf16.mxu0 %vm11057_vm0, %v14305_v0 }
  0xa2   :  { %9399 = vmatmul.mubr.bf16.gmra.mrb[64].mxu0 %v10769_v33 }
  0xa3   :  { %9402 = vmatprep.mubr.msk.bf16.mxu0 %vm11057_vm0, %v14305_v0 }
  0xaa   :  { %9403 = vmatmul.mubr.bf16.gmra.mrb[68].mxu0 %v10770_v37 }
  0xab   :  { %9406 = vmatprep.mubr.msk.bf16.mxu0 %vm11057_vm0, %v14305_v0 }
  0xb2   :  { %9407 = vmatmul.mubr.bf16.gmra.mrb[72].mxu0 %v10771_v39 }
  0xb3   :  { %9410 = vmatprep.mubr.msk.bf16.mxu0 %vm11057_vm0, %v14305_v0 }
  0xba   :  { %9411 = vmatmul.mubr.bf16.gmra.mrb[76].mxu0 %v10772_v40 }
  0xbb   :  { %9414 = vmatprep.mubr.msk.bf16.mxu0 %vm11057_vm0, %v14305_v0 }
  0xc2   :  { %9415 = vmatmul.mubr.bf16.gmra.mrb[80].mxu0 %v10773_v41 }
  0xc3   :  { %9418 = vmatprep.mubr.msk.bf16.mxu0 %vm11057_vm0, %v14305_v0 }
  0xca   :  { %9419 = vmatmul.mubr.bf16.gmra.mrb[84].mxu0 %v10774_v42 }
  0xcb   :  { %9422 = vmatprep.mubr.msk.bf16.mxu0 %vm11057_vm0, %v14305_v0 }
  0xd2   :  { %9423 = vmatmul.mubr.bf16.gmra.mrb[88].mxu0 %v10775_v43 }
  0xd3   :  { %9426 = vmatprep.mubr.msk.bf16.mxu0 %vm11057_vm0, %v14305_v0 }
  0xda   :  { %9427 = vmatmul.mubr.bf16.gmra.mrb[92].mxu0 %v10776_v44 }
  0xdb   :  { %9430 = vmatprep.mubr.msk.bf16.mxu0 %vm11057_vm0, %v14305_v0 }
  0xe2   :  { %9431 = vmatmul.mubr.bf16.gmra.mrb[96].mxu0 %v10777_v45 }
  0xe3   :  { %10042 = vmatprep.mubr.msk.bf16.mxu0 %vm11057_vm0, %v14305_v0 }
  0xf5   :  { %v373_v50 = vpop.f32.mrb[0].mxu0 }
  0xf6   :  { %v374_v53 = vadd.f32 %v11345_v49, %v373_v50  ;;  %v9336_v54 = vpop.f32.mrb[1].mxu0 }
  0xf7   :  { %v376_v55 = vpop.f32.mrb[2].mxu0 }
  0xf8   :  { %v599_v56 = vmul.f32 0.2, %v374_v53  ;;  %v377_v57 = vadd.f32 %v11345_v49, %v376_v55  ;;  %v9337_v58 = vpop.f32.mrb[3].mxu0 }
  0xfa   :  { %v652_v60 = vmax.f32 %v374_v53, %v599_v56  ;;  %v600_v61 = vmul.f32 0.2, %v377_v57 }
  0xfc   :  { %v758_v62 = vcombine.high %v652_v60, %v652_v60  ;;  %v653_v63 = vmax.f32 %v377_v57, %v600_v61  ;;  %v765_v1 = vrot.slane %v652_v60, %v11349_v59 }
  0xfd   :  { %v381_v2 = vpop.f32.mrb[4].mxu0 }
  0xfe   :  { %v772_v3 = vrot.slane %v758_v62, %v11349_v59  ;;  %v775_v4 = vcombine.high %v653_v63, %v653_v63  ;;  %v782_v5 = vrot.slane %v653_v63, %v11349_v59  ;;  %v382_v6 = vadd.f32 %v11345_v49, %v381_v2  ;;  %v9340_v7 = vpop.f32.mrb[5].mxu0 }
  0xff   :  { %v384_v8 = vpop.f32.mrb[6].mxu0 }
 0x100   :  { %v1643_v9 = vcombine.low %v765_v1, %v772_v3  ;;  %v8075_v10 = vcombine.high %v765_v1, %v772_v3  ;;  %v789_v11 = vrot.slane %v775_v4, %v11349_v59  ;;  %v2250_v12 = vcombine.low %v772_v3, %v782_v5  ;;  %v9341_v13 = vpop.f32.mrb[7].mxu0 }
 0x101   :  { %v8149_v14 = vcombine.high %v772_v3, %v782_v5  ;;  %v601_v15 = vmul.f32 0.2, %v382_v6  ;;  %v385_v16 = vadd.f32 %v11345_v49, %v384_v8 }
 0x102   :  { %v1644_v17 = vcombine.low %v782_v5, %v789_v11  ;;  %v8076_v18 = vcombine.high %v782_v5, %v789_v11  ;;  %v11358_v21 = vrot.slane %v1643_v9, %v11349_v59  ;;  %v11361_v22 = vrot.slane %v8075_v10, %v11349_v59 }
 0x103   :  { %v654_v19 = vmax.f32 %v382_v6, %v601_v15  ;;  %v602_v20 = vmul.f32 0.2, %v385_v16  ;;  %v11387_v42 = vrot.slane %v2250_v12, %v11349_v59  ;;  %v11402_v50 = vrot.slane %v8149_v14, %v11349_v59 }
 0x104   :  { %v11364_v23 = vrot.slane %v1644_v17, %v11349_v59  ;;  %v11367_v24 = vrot.slane %v8076_v18, %v11349_v59 }
 0x105   :  { %v792_v25 = vcombine.high %v654_v19, %v654_v19  ;;  %v11370_v26 = vrot.slane %v654_v19, %v11349_v59  ;;  %v655_v27 = vmax.f32 %v385_v16, %v602_v20  ;;  %v389_v28 = vpop.f32.mrb[8].mxu0 }
 0x106   :  { %v390_v29 = vadd.f32 %v11345_v49, %v389_v28  ;;  %v9344_v30 = vpop.f32.mrb[9].mxu0  ;;  %v1842_v31 = vcombine.low %v11361_v22, %v11367_v24  ;;  %v1659_v32 = vcombine.low %v11358_v21, %v11364_v23 }
 0x107   :  { %v11378_v33 = vrot.slane %v792_v25, %v11349_v59  ;;  %v2251_v34 = vcombine.low %v789_v11, %v11370_v26  ;;  %v8150_v35 = vcombine.high %v789_v11, %v11370_v26  ;;  %v392_v36 = vpop.f32.mrb[10].mxu0  ;;  %v809_v37 = vcombine.high %v655_v27, %v655_v27 }
 0x108   :  { %v11383_v38 = vrot.slane %v655_v27, %v11349_v59  ;;  %v603_v39 = vmul.f32 0.2, %v390_v29  ;;  %v393_v40 = vadd.f32 %v11345_v49, %v392_v36  ;;  %v9345_v41 = vpop.f32.mrb[11].mxu0 }
 0x109   :  { %v1660_v43 = vcombine.low %v11370_v26, %v11378_v33  ;;  %v11392_v44 = vrot.slane %v2251_v34, %v11349_v59  ;;  %v11395_v45 = vrot.slane %v8150_v35, %v11349_v59  ;;  %v823_v53 = vrot.slane %v809_v37, %v11349_v59 }
 0x10a   :  { %v2267_v46 = vcombine.low %v11378_v33, %v11383_v38  ;;  %v8151_v47 = vcombine.high %v11378_v33, %v11383_v38  ;;  %v656_v48 = vmax.f32 %v390_v29, %v603_v39  ;;  %v604_v51 = vmul.f32 0.2, %v393_v40 }
 0x10b   :  { %v2266_v52 = vcombine.low %v11387_v42, %v11392_v44  ;;  %v2579_v58 = vcombine.low %v11402_v50, %v11395_v45  ;;  %v10792_v44 = vld [vmem:[%s14295_s3 + $0x10] sm:$0xff]  }
 0x10c   :  { %v826_v54 = vcombine.high %v656_v48, %v656_v48  ;;  %v833_v55 = vrot.slane %v656_v48, %v11349_v59  ;;  %v657_v56 = vmax.f32 %v393_v40, %v604_v51 }
 0x10d   :  { %v397_v57 = vpop.f32.mrb[12].mxu0 }
 0x10e   :  { %v840_v60 = vrot.slane %v826_v54, %v11349_v59  ;;  %v8191_v61 = vcombine.high %v823_v53, %v833_v55  ;;  %v398_v62 = vadd.f32 %v11345_v49, %v397_v57  ;;  %v9348_v63 = vpop.f32.mrb[13].mxu0  ;;  %v843_v1 = vcombine.high %v657_v56, %v657_v56 }
 0x10f   :  { %v850_v2 = vrot.slane %v657_v56, %v11349_v59  ;;  %v400_v3 = vpop.f32.mrb[14].mxu0  ;;  %v8077_v53 = vcombine.high %v11370_v26, %v11378_v33 }
 0x110   :  { %v3189_v4 = vcombine.low %v833_v55, %v840_v60  ;;  %v8257_v5 = vcombine.high %v833_v55, %v840_v60  ;;  %v605_v6 = vmul.f32 0.2, %v398_v62  ;;  %v9349_v7 = vpop.f32.mrb[15].mxu0  ;;  %v857_v8 = vrot.slane %v843_v1, %v11349_v59 }
 0x111   :  { %v8192_v9 = vcombine.high %v840_v60, %v850_v2  ;;  %v3815_v10 = vcombine.low %v840_v60, %v850_v2  ;;  %v401_v11 = vadd.f32 %v11345_v49, %v400_v3  ;;  %v11416_v13 = vrot.slane %v8191_v61, %v11349_v59 }
 0x112   :  { %v658_v12 = vmax.f32 %v398_v62, %v605_v6  ;;  %v3190_v15 = vcombine.low %v850_v2, %v857_v8  ;;  %v8258_v16 = vcombine.high %v850_v2, %v857_v8  ;;  %v11422_v17 = vrot.slane %v3189_v4, %v11349_v59 }
 0x113   :  { %v11419_v14 = vrot.slane %v8192_v9, %v11349_v59  ;;  %v606_v20 = vmul.f32 0.2, %v401_v11  ;;  %v11426_v25 = vrot.slane %v8257_v5, %v11349_v59  ;;  %v11445_v54 = vrot.slane %v3815_v10, %v11349_v59 }
 0x114   :  { %v860_v18 = vcombine.high %v658_v12, %v658_v12  ;;  %v867_v19 = vrot.slane %v658_v12, %v11349_v59  ;;  %v11429_v27 = vrot.slane %v3190_v15, %v11349_v59  ;;  %v11432_v28 = vrot.slane %v8258_v16, %v11349_v59 }
 0x115   :  { %v405_v29 = vpop.f32.mrb[16].mxu0  ;;  %v2892_v30 = vcombine.low %v11416_v13, %v11419_v14  ;;  %v659_v37 = vmax.f32 %v401_v11, %v606_v20  ;;  %v1668_v6 = vrot.slane %v1660_v43, %v11349_v59  ;;  %v1851_v7 = vrot.slane %v8077_v53, %v11349_v59 }
 0x116   :  { %v874_v34 = vrot.slane %v860_v18, %v11349_v59  ;;  %v8193_v35 = vcombine.high %v857_v8, %v867_v19  ;;  %v3816_v36 = vcombine.low %v857_v8, %v867_v19  ;;  %v9352_v39 = vpop.f32.mrb[17].mxu0  ;;  %v406_v40 = vadd.f32 %v11345_v49, %v405_v29 }
 0x117   :  { %v408_v41 = vpop.f32.mrb[18].mxu0  ;;  %v3205_v48 = vcombine.low %v11422_v17, %v11429_v27  ;;  %v3518_v51 = vcombine.low %v11426_v25, %v11432_v28  ;;  %v877_v60 = vcombine.high %v659_v37, %v659_v37  ;;  %v884_v61 = vrot.slane %v659_v37, %v11349_v59 }
 0x118   :  { %v8259_v55 = vcombine.high %v867_v19, %v874_v34  ;;  %v11448_v56 = vrot.slane %v3816_v36, %v11349_v59  ;;  %v9353_v57 = vpop.f32.mrb[19].mxu0  ;;  %v607_v62 = vmul.f32 0.2, %v406_v40  ;;  %v409_v63 = vadd.f32 %v11345_v49, %v408_v41 }
 0x119   :  { %v3206_v1 = vcombine.low %v867_v19, %v874_v34  ;;  %v11454_v3 = vcombine.low %v874_v34, %v884_v61  ;;  %v11465_v8 = vrot.slane %v2267_v46, %v11349_v59  ;;  %v11471_v9 = vrot.slane %v8151_v47, %v11349_v59 }
 0x11a   :  { %v660_v4 = vmax.f32 %v406_v40, %v607_v62  ;;  %v608_v5 = vmul.f32 0.2, %v409_v63  ;;  %v891_v10 = vrot.slane %v877_v60, %v11349_v59  ;;  %v11479_v16 = vrot.slane %v8259_v55, %v11349_v59 }
 0x11b   :  { %v11476_v15 = vrot.slane %v3206_v1, %v11349_v59  ;;  %v11483_v33 = vrot.slane %v8193_v35, %v11349_v59  ;;  %v3840_v34 = vrot.slane %v11454_v3, %v11349_v59 }
 0x11c   :  { %v893_v11 = vcombine.high %v660_v4, %v660_v4  ;;  %v900_v26 = vrot.slane %v660_v4, %v11349_v59  ;;  %v661_v43 = vmax.f32 %v409_v63, %v608_v5 }
 0x11d   :  { %v413_v12 = vpop.f32.mrb[20].mxu0 }
 0x11e   :  { %v414_v46 = vadd.f32 %v11345_v49, %v413_v12  ;;  %v9356_v18 = vpop.f32.mrb[21].mxu0  ;;  %v907_v38 = vrot.slane %v893_v11, %v11349_v59  ;;  %v1661_v47 = vcombine.low %v891_v10, %v900_v26  ;;  %v8078_v19 = vcombine.high %v891_v10, %v900_v26  ;;  %v10790_v12 = vld [vmem:[%s14295_s3] sm:$0xff]  }
 0x11f   :  { %v910_v20 = vcombine.high %v661_v43, %v661_v43  ;;  %v416_v29 = vpop.f32.mrb[22].mxu0  ;;  %v11489_v36 = vrot.slane %v661_v43, %v11349_v59 }
 0x120   :  { %v609_v37 = vmul.f32 0.2, %v414_v46  ;;  %v417_v39 = vadd.f32 %v11345_v49, %v416_v29  ;;  %v9357_v40 = vpop.f32.mrb[23].mxu0  ;;  %v11493_v41 = vrot.slane %v1661_v47, %v11349_v59  ;;  %v11496_v35 = vrot.slane %v8078_v19, %v11349_v59 }
 0x121   :  { %v2268_v53 = vcombine.low %v900_v26, %v907_v38  ;;  %v8152_v55 = vcombine.high %v900_v26, %v907_v38  ;;  %v11499_v57 = vrot.slane %v910_v20, %v11349_v59  ;;  %v8079_v62 = vcombine.high %v907_v38, %v11489_v36 }
 0x122   :  { %v662_v60 = vmax.f32 %v414_v46, %v609_v37  ;;  %v610_v61 = vmul.f32 0.2, %v417_v39  ;;  %v1859_v4 = vcombine.low %v1851_v7, %v11496_v35  ;;  %v1676_v5 = vcombine.low %v1668_v6, %v11493_v41 }
 0x123   :  { %v11503_v63 = vrot.slane %v2268_v53, %v11349_v59  ;;  %v11506_v1 = vrot.slane %v8152_v55, %v11349_v59  ;;  %v11512_v43 = vrot.slane %v8079_v62, %v11349_v59  ;;  %v1677_v7 = vcombine.low %v907_v38, %v11489_v36  ;;  %v10791_v55 = vld [vmem:[%s14295_s3 + $0x8] sm:$0xff]  }
 0x124   :  { %v927_v10 = vcombine.high %v662_v60, %v662_v60  ;;  %v934_v11 = vrot.slane %v662_v60, %v11349_v59  ;;  %v663_v26 = vmax.f32 %v417_v39, %v610_v61  ;;  %v1988_v18 = vpack.c.bf16 %v1859_v4, %v1842_v31 }
 0x125   :  { %v421_v46 = vpop.f32.mrb[24].mxu0  ;;  %v11523_v6 = vpack.c.bf16 %v1676_v5, %v1659_v32  ;;  %v2283_v47 = vcombine.low %v11465_v8, %v11503_v63  ;;  %v11536_v31 = vrot.slane %v1677_v7, %v11349_v59 }
 0x126   :  { %v941_v19 = vrot.slane %v927_v10, %v11349_v59  ;;  %v944_v20 = vcombine.high %v663_v26, %v663_v26  ;;  %v951_v29 = vrot.slane %v663_v26, %v11349_v59  ;;  %v422_v37 = vadd.f32 %v11345_v49, %v421_v46  ;;  %v9360_v39 = vpop.f32.mrb[25].mxu0  ;;  %9467 = vmatmul.mubr.bf16.vlgmr.msra.gmra.mrb[16].mxu1 %v1988_v18 }
 0x127   :  { %v424_v22 = vpop.f32.mrb[26].mxu0  ;;  %v8080_v24 = vcombine.high %v11499_v57, %v934_v11  ;;  %v1678_v23 = vcombine.low %v11499_v57, %v934_v11  ;;  %9470 = vmatprep.mubr.msk.bf16.mxu1 %vm11057_vm0, %v14305_v0  ;;  %9487 = vmatpush3.bf16.msra.mxu1 %v10790_v12  ;;  %v2284_v26 = vcombine.low %v11489_v36, %v11499_v57 }
 0x128   :  { %v2285_v32 = vcombine.low %v934_v11, %v941_v19  ;;  %v8154_v8 = vcombine.high %v934_v11, %v941_v19  ;;  %v958_v38 = vrot.slane %v944_v20, %v11349_v59  ;;  %v611_v40 = vmul.f32 0.2, %v422_v37  ;;  %v9361_v53 = vpop.f32.mrb[27].mxu0  ;;  %9488 = vmatprep.subr.bf16.mxu1 %v14305_v0 }
 0x129   :  { %v425_v60 = vadd.f32 %v11345_v49, %v424_v22  ;;  %v11546_v61 = vrot.slane %v8080_v24, %v11349_v59  ;;  %v11550_v62 = vrot.slane %v1678_v23, %v11349_v59  ;;  %v11557_v11 = vpack.c.bf16 %v2283_v47, %v2266_v52 }
 0x12a   :  { %v8194_v5 = vcombine.high %v951_v29, %v958_v38  ;;  %v664_v10 = vmax.f32 %v422_v37, %v611_v40  ;;  %v11566_v7 = vrot.slane %v2285_v32, %v11349_v59  ;;  %v11576_v52 = vrot.slane %v2284_v26, %v11349_v59  ;;  %v10793_v26 = vld [vmem:[%s14295_s3 + $0x18] sm:$0xff]  }
 0x12b   :  { %14356 = vst [vmem:[#allocation2_spill] sm:$0xff] %v11557_v11  ;;  %v612_v12 = vmul.f32 0.2, %v425_v60  ;;  %v1876_v46 = vcombine.low %v11512_v43, %v11546_v61  ;;  %v1693_v18 = vcombine.low %v11536_v31, %v11550_v62  ;;  %9489 = vmatpush3.bf16.msra.mxu1 %v10791_v55  ;;  %v2596_v37 = vcombine.low %v11471_v9, %v11506_v1 }
 0x12c   :  { %v11569_v19 = vrot.slane %v8194_v5, %v11349_v59  ;;  %v961_v20 = vcombine.high %v664_v10, %v664_v10  ;;  %v968_v42 = vrot.slane %v664_v10, %v11349_v59  ;;  %9490 = vmatprep.subr.bf16.mxu1 %v14305_v0  ;;  %v8153_v39 = vcombine.high %v11489_v36, %v11499_v57 }
 0x12d   :  { %v665_v47 = vmax.f32 %v425_v60, %v612_v12  ;;  %v429_v29 = vpop.f32.mrb[28].mxu0  ;;  %v11584_v22 = vrot.slane %v8154_v8, %v11349_v59 }
 0x12e   :  { %14357 = vst [vmem:[#allocation3_spill] sm:$0xff] %v11569_v19  ;;  %v2909_v24 = vcombine.low %v11483_v33, %v11569_v19  ;;  %v11589_v23 = vrot.slane %v961_v20, %v11349_v59  ;;  %v3207_v32 = vcombine.low %v958_v38, %v968_v42  ;;  %v8260_v40 = vcombine.high %v958_v38, %v968_v42  ;;  %v9364_v53 = vpop.f32.mrb[29].mxu0 }
 0x12f   :  { %v978_v55 = vcombine.high %v665_v47, %v665_v47  ;;  %v11592_v60 = vrot.slane %v665_v47, %v11349_v59  ;;  %v430_v9 = vadd.f32 %v11345_v49, %v429_v29  ;;  %v432_v5 = vpop.f32.mrb[30].mxu0  ;;  %9491 = vmatpush3.bf16.msra.mxu1 %v10792_v44  ;;  %v11617_v29 = vpack.c.bf16 %v2596_v37, %v2579_v58  ;;  %v10794_v37 = vld [vmem:[%s14295_s3 + $0x20] sm:$0xff]  }
 0x130   :  { %v11598_v57 = vrot.slane %v3207_v32, %v11349_v59  ;;  %v11601_v33 = vrot.slane %v8260_v40, %v11349_v59  ;;  %v3833_v8 = vcombine.low %v968_v42, %v11589_v23  ;;  %v433_v38 = vadd.f32 %v11345_v49, %v432_v5  ;;  %v9365_v10 = vpop.f32.mrb[31].mxu0  ;;  %9492 = vmatprep.subr.bf16.mxu1 %v14305_v0 }
 0x131   :  { %v11609_v12 = vrot.slane %v978_v55, %v11349_v59  ;;  %v613_v20 = vmul.f32 0.2, %v430_v9  ;;  %14360 = vst [vmem:[#allocation6_spill] sm:$0xff] %v11617_v29  ;;  %v11623_v40 = vrot.slane %v8153_v39, %v11349_v59  ;;  %v11628_v53 = vpack.c.bf16 %v2909_v24, %v2892_v30 }
 0x132   :  { %14358 = vst [vmem:[#allocation4_spill] sm:$0xff] %v11598_v57  ;;  %14359 = vst [vmem:[#allocation5_spill] sm:$0xff] %v11601_v33  ;;  %v11620_v44 = vrot.slane %v3833_v8, %v11349_v59  ;;  %v614_v32 = vmul.f32 0.2, %v433_v38  ;;  %v8195_v5 = vcombine.high %v968_v42, %v11589_v23  ;;  %v3222_v50 = vcombine.low %v11476_v15, %v11598_v57 }
 0x133   :  { %14362 = vst [vmem:[#allocation8_spill] sm:$0xff] %v11628_v53  ;;  %v666_v55 = vmax.f32 %v430_v9, %v613_v20  ;;  %v8196_v45 = vcombine.high %v11592_v60, %v11609_v12  ;;  %9493 = vmatpush3.bf16.msra.mxu1 %v10793_v26  ;;  %v3223_v30 = vcombine.low %v11589_v23, %v11592_v60 }
 0x134   :  { %14361 = vst [vmem:[#allocation7_spill] sm:$0xff] %v11620_v44  ;;  %v667_v58 = vmax.f32 %v433_v38, %v614_v32  ;;  %9494 = vmatprep.subr.bf16.mxu1 %v14305_v0  ;;  %v11649_v24 = vrot.slane %v8195_v5, %v11349_v59  ;;  %v11659_v20 = vpack.c.bf16 %v3222_v50, %v3205_v48  ;;  %v10795_v48 = vld [vmem:[%s14295_s3 + $0x28] sm:$0xff]  }
 0x135   :  { %v995_v42 = vcombine.high %v666_v55, %v666_v55  ;;  %v11645_v39 = vrot.slane %v666_v55, %v11349_v59  ;;  %v437_v15 = vpop.f32.mrb[32].mxu0  ;;  %v11652_v9 = vrot.slane %v8196_v45, %v11349_v59  ;;  %v11720_v28 = vcombine.low %v3840_v34, %v11620_v44 }
 0x136   :  { %14363 = vst [vmem:[#allocation9_spill] sm:$0xff] %v11649_v24  ;;  %v1011_v8 = vcombine.high %v667_v58, %v667_v58  ;;  %v1018_v38 = vrot.slane %v667_v58, %v11349_v59  ;;  %v438_v10 = vadd.f32 %v11345_v49, %v437_v15  ;;  %v9368_v26 = vpop.f32.mrb[33].mxu0  ;;  %14365 = vst [vmem:[#allocation11_spill] sm:$0xff] %v11659_v20 }
 0x137   :  { %14364 = vst [vmem:[#allocation10_spill] sm:$0xff] %v11652_v9  ;;  %v11662_v32 = vrot.slane %v995_v42, %v11349_v59  ;;  %v3224_v55 = vcombine.low %v11609_v12, %v11645_v39  ;;  %v440_v45 = vpop.f32.mrb[34].mxu0  ;;  %9495 = vmatpush3.bf16.msra.mxu1 %v10794_v37  ;;  %v3535_v37 = vcombine.low %v11479_v16, %v11601_v33 }
 0x138   :  { %v11671_v15 = vrot.slane %v1011_v8, %v11349_v59  ;;  %v615_v26 = vmul.f32 0.2, %v438_v10  ;;  %v441_v17 = vadd.f32 %v11345_v49, %v440_v45  ;;  %v9369_v27 = vpop.f32.mrb[35].mxu0  ;;  %9496 = vmatprep.subr.bf16.mxu1 %v14305_v0  ;;  %v11683_v8 = vrot.slane %v3223_v30, %v11349_v59 }
 0x139   :  { %v11686_v14 = vrot.slane %v3224_v55, %v11349_v59  ;;  %v11699_v30 = vpack.c.bf16 %v3535_v37, %v3518_v51  ;;  %v8261_v16 = vcombine.high %v11589_v23, %v11592_v60  ;;  %v10797_v37 = vld [vmem:[%s14295_s3 + $0x38] sm:$0xff]  }
 0x13a   :  { %14366 = vst [vmem:[#allocation12_spill] sm:$0xff] %v11683_v8  ;;  %v1694_v45 = vcombine.low %v1018_v38, %v11671_v15  ;;  %v8081_v27 = vcombine.high %v1018_v38, %v11671_v15  ;;  %v668_v47 = vmax.f32 %v438_v10, %v615_v26  ;;  %v616_v50 = vmul.f32 0.2, %v441_v17  ;;  %v10796_v26 = vld [vmem:[%s14295_s3 + $0x30] sm:$0xff]  }
 0x13b   :  { %14367 = vst [vmem:[#allocation13_spill] sm:$0xff] %v11686_v14  ;;  %14368 = vst [vmem:[#allocation14_spill] sm:$0xff] %v11699_v30  ;;  %9497 = vmatpush3.bf16.msra.mxu1 %v10795_v48 }
 0x13c   :  { %v1028_v55 = vcombine.high %v668_v47, %v668_v47  ;;  %v11704_v42 = vrot.slane %v668_v47, %v11349_v59  ;;  %v669_v38 = vmax.f32 %v441_v17, %v616_v50  ;;  %v11707_v10 = vrot.slane %v8081_v27, %v11349_v59  ;;  %9498 = vmatprep.subr.bf16.mxu1 %v14305_v0 }
 0x13d   :  { %v445_v4 = vpop.f32.mrb[36].mxu0  ;;  %v11714_v25 = vrot.slane %v1694_v45, %v11349_v59 }
 0x13e   :  { %v1042_v51 = vrot.slane %v1028_v55, %v11349_v59  ;;  %v1045_v23 = vcombine.high %v669_v38, %v669_v38  ;;  %v11724_v47 = vrot.slane %v669_v38, %v11349_v59  ;;  %v446_v17 = vadd.f32 %v11345_v49, %v445_v4  ;;  %v9372_v48 = vpop.f32.mrb[37].mxu0 }
 0x13f   :  { %v448_v50 = vpop.f32.mrb[38].mxu0  ;;  %v2301_v3 = vcombine.low %v11671_v15, %v11704_v42  ;;  %v8155_v34 = vcombine.high %v11671_v15, %v11704_v42  ;;  %9499 = vmatpush3.bf16.msra.mxu1 %v10796_v26 }
 0x140   :  { %v11736_v27 = vrot.slane %v1045_v23, %v11349_v59  ;;  %v617_v55 = vmul.f32 0.2, %v446_v17  ;;  %v449_v4 = vadd.f32 %v11345_v49, %v448_v50  ;;  %v9373_v38 = vpop.f32.mrb[39].mxu0  ;;  %v8082_v48 = vcombine.high %v11704_v42, %v1042_v51  ;;  %9500 = vmatprep.subr.bf16.mxu1 %v14305_v0 }
 0x141   :  { %v1695_v45 = vcombine.low %v11704_v42, %v1042_v51  ;;  %v2302_v15 = vcombine.low %v1042_v51, %v11724_v47  ;;  %v11747_v23 = vrot.slane %v2301_v3, %v11349_v59  ;;  %v8156_v21 = vcombine.high %v1042_v51, %v11724_v47 }
 0x142   :  { %14369 = vst [vmem:[#allocation15_spill] sm:$0xff] %v11736_v27  ;;  %v670_v50 = vmax.f32 %v446_v17, %v617_v55  ;;  %v618_v38 = vmul.f32 0.2, %v449_v4  ;;  %v11751_v58 = vrot.slane %v8082_v48, %v11349_v59  ;;  %v11774_v3 = vrot.slane %v8261_v16, %v11349_v59 }
 0x143   :  { %v11754_v26 = vrot.slane %v1695_v45, %v11349_v59  ;;  %v11759_v42 = vrot.slane %v2302_v15, %v11349_v59  ;;  %9501 = vmatpush3.bf16.msra.mxu1 %v10797_v37 }
 0x144   :  { %v1062_v13 = vcombine.high %v670_v50, %v670_v50  ;;  %v11764_v51 = vrot.slane %v670_v50, %v11349_v59  ;;  %v671_v17 = vmax.f32 %v449_v4, %v618_v38  ;;  %v1893_v55 = vcombine.low %v11707_v10, %v11751_v58  ;;  %9522 = vmatprep.subr.bf16.mxu1 %v14305_v0 }
 0x145   :  { %v453_v45 = vpop.f32.mrb[40].mxu0  ;;  %v1710_v48 = vcombine.low %v11714_v25, %v11754_v26  ;;  %v2317_v15 = vcombine.low %v11747_v23, %v11759_v42  ;;  %14371 = vst [vmem:[#allocation17_spill] sm:$0xff] %v11774_v3 }
 0x146   :  { %14370 = vst [vmem:[#allocation16_spill] sm:$0xff] %v11764_v51  ;;  %v1076_v50 = vrot.slane %v1062_v13, %v11349_v59  ;;  %v1079_v38 = vcombine.high %v671_v17, %v671_v17  ;;  %v9376_v2 = vpop.f32.mrb[41].mxu0  ;;  %v1086_v0 = vrot.slane %v671_v17, %v11349_v59  ;;  %v454_v5 = vadd.f32 %v11345_v49, %v453_v45 }
 0x147   :  { %v456_v36 = vpop.f32.mrb[42].mxu0  ;;  %v1989_v16 = vpack.c.bf16 %v1893_v55, %v1876_v46  ;;  %v11789_v13 = vpack.c.bf16 %v1710_v48, %v1693_v18  ;;  %v14372_v17 = vcombine.low %v11576_v52, %v11566_v7  ;;  %v14374_v46 = vcombine.high %v11609_v12, %v11645_v39 }
 0x148   :  { %v11792_v4 = vrot.slane %v1079_v38, %v11349_v59  ;;  %v457_v37 = vadd.f32 %v11345_v49, %v456_v36  ;;  %v9377_v2 = vpop.f32.mrb[43].mxu0  ;;  %v8197_v30 = vcombine.high %v1076_v50, %v1086_v0  ;;  %v619_v18 = vmul.f32 0.2, %v454_v5 }
 0x149   :  { %v11798_v45 = vpack.c.bf16 %v2317_v15, %v14372_v17  ;;  %v11804_v55 = vrot.slane %v14374_v46, %v11349_v59  ;;  %9471 = vmatmul.mubr.bf16.gmra.mrb[20].mxu1 %v1989_v16  ;;  %v11807_v48 = vrot.slane %v8155_v34, %v11349_v59  ;;  %v11810_v36 = vrot.slane %v8156_v21, %v11349_v59 }
 0x14a   :  { %v3240_v38 = vcombine.low %v1086_v0, %v11792_v4  ;;  %v8263_v15 = vcombine.high %v1086_v0, %v11792_v4  ;;  %v620_v2 = vmul.f32 0.2, %v457_v37  ;;  %v14378_v17 = vmov 0.0  }
 0x14b   :  { %14373 = vst [vmem:[#allocation18_spill] sm:$0xff] %v11798_v45  ;;  %14375 = vst [vmem:[#allocation19_spill] sm:$0xff] %v11804_v55  ;;  %9474 = vmatprep.mubr.msk.bf16.mxu1 %vm11057_vm0, %v14378_v17  ;;  %v8083_v46 = vcombine.high %v11724_v47, %v11736_v27  ;;  %v672_v50 = vmax.f32 %v454_v5, %v619_v18  ;;  %v2630_v16 = vcombine.low %v11807_v48, %v11810_v36 }
 0x14c   :  { %14376 = vst [vmem:[#allocation20_spill] sm:$0xff] %v11807_v48  ;;  %14377 = vst [vmem:[#allocation21_spill] sm:$0xff] %v11810_v36  ;;  %v11823_v21 = vrot.slane %v8197_v30, %v11349_v59  ;;  %v673_v20 = vmax.f32 %v457_v37, %v620_v2  ;;  %v11826_v0 = vrot.slane %v3240_v38, %v11349_v59 }
 0x14d   :  { %v3552_v53 = vcombine.low %v11774_v3, %v11804_v55  ;;  %v11831_v29 = vrot.slane %v8263_v15, %v11349_v59  ;;  %v1096_v5 = vcombine.high %v672_v50, %v672_v50  ;;  %v11834_v18 = vrot.slane %v672_v50, %v11349_v59  ;;  %v461_v36 = vpop.f32.mrb[44].mxu0 }
 0x14e   :  { %14379 = vst [vmem:[#allocation22_spill] sm:$0xff] %v11823_v21  ;;  %14380 = vst [vmem:[#allocation23_spill] sm:$0xff] %v11826_v0  ;;  %v14382_v34 = vcombine.low %v11623_v40, %v11584_v22  ;;  %v1113_v38 = vcombine.high %v673_v20, %v673_v20  ;;  %v11844_v2 = vrot.slane %v673_v20, %v11349_v59  ;;  %v9380_v45 = vpop.f32.mrb[45].mxu0 }
 0x14f   :  { %14381 = vst [vmem:[#allocation24_spill] sm:$0xff] %v11831_v29  ;;  %v462_v15 = vadd.f32 %v11345_v49, %v461_v36  ;;  %v11850_v11 = vrot.slane %v1096_v5, %v11349_v59  ;;  %v464_v57 = vpop.f32.mrb[46].mxu0  ;;  %v14387_v5 = vcombine.low %v11445_v54, %v11448_v56  ;;  %v11880_v56 = vrot.slane %v8083_v46, %v11349_v59 }
 0x150   :  { %v11839_v30 = vpack.c.bf16 %v2630_v16, %v14382_v34  ;;  %14384 = vst [vmem:[#allocation26_spill] sm:$0xff] %v11844_v2  ;;  %v8198_v16 = vcombine.high %v11792_v4, %v11834_v18  ;;  %v11859_v37 = vrot.slane %v1113_v38, %v11349_v59  ;;  %v465_v36 = vadd.f32 %v11345_v49, %v464_v57  ;;  %v9381_v50 = vpop.f32.mrb[47].mxu0 }
 0x151   :  { %14385 = vst [vmem:[#allocation27_spill] sm:$0xff] %v11850_v11  ;;  %v621_v45 = vmul.f32 0.2, %v462_v15  ;;  %v3241_v38 = vcombine.low %v11834_v18, %v11850_v11  ;;  %v8264_v20 = vcombine.high %v11834_v18, %v11850_v11 }
 0x152   :  { %14383 = vst [vmem:[#allocation25_spill] sm:$0xff] %v11839_v30  ;;  %14386 = vst [vmem:[#allocation28_spill] sm:$0xff] %v11859_v37  ;;  %v11866_v30 = vpack.c.bf16 %v11720_v28, %v14387_v5  ;;  %v11869_v19 = vrot.slane %v8198_v16, %v11349_v59  ;;  %v622_v50 = vmul.f32 0.2, %v465_v36 }
 0x153   :  { %v674_v57 = vmax.f32 %v462_v15, %v621_v45  ;;  %v11885_v16 = vrot.slane %v3241_v38, %v11349_v59  ;;  %v11888_v5 = vrot.slane %v8264_v20, %v11349_v59  ;;  %v14392_v45 = vcombine.low %v11724_v47, %v11736_v27 }
 0x154   :  { %14388 = vst [vmem:[#allocation29_spill] sm:$0xff] %v11866_v30  ;;  %14389 = vst [vmem:[#allocation30_spill] sm:$0xff] %v11869_v19  ;;  %v2943_v28 = vcombine.low %v11823_v21, %v11869_v19  ;;  %v675_v15 = vmax.f32 %v465_v36, %v622_v50  ;;  %v14393_v19 = vcombine.low %v11736_v27, %v11764_v51 }
 0x155   :  { %14390 = vst [vmem:[#allocation31_spill] sm:$0xff] %v11885_v16  ;;  %14391 = vst [vmem:[#allocation32_spill] sm:$0xff] %v11888_v5  ;;  %v1130_v34 = vcombine.high %v674_v57, %v674_v57  ;;  %v1137_v30 = vrot.slane %v674_v57, %v11349_v59  ;;  %v11895_v54 = vrot.slane %v14392_v45, %v11349_v59  ;;  %v469_v46 = vpop.f32.mrb[48].mxu0 }
 0x156   :  { %v11901_v38 = vrot.slane %v14393_v19, %v11349_v59  ;;  %v14394_v20 = vcombine.low %v11649_v24, %v11652_v9  ;;  %v3256_v36 = vcombine.low %v11826_v0, %v11885_v16  ;;  %v3569_v47 = vcombine.low %v11831_v29, %v11888_v5  ;;  %v9384_v51 = vpop.f32.mrb[49].mxu0 }
 0x157   :  { %v1144_v57 = vrot.slane %v1130_v34, %v11349_v59  ;;  %v11914_v50 = vcombine.low %v11859_v37, %v1137_v30  ;;  %v1146_v45 = vcombine.high %v675_v15, %v675_v15  ;;  %v11917_v19 = vrot.slane %v675_v15, %v11349_v59 }
 0x158   :  { %v11906_v55 = vpack.c.bf16 %v2943_v28, %v14394_v20  ;;  %v470_v27 = vadd.f32 %v11345_v49, %v469_v46  ;;  %v472_v28 = vpop.f32.mrb[50].mxu0  ;;  %v14398_v20 = vcombine.low %v11683_v8, %v11686_v14  ;;  %v3849_v34 = vcombine.low %v11592_v60, %v11609_v12 }
 0x159   :  { %14396 = vst [vmem:[#allocation34_spill] sm:$0xff] %v11914_v50  ;;  %14397 = vst [vmem:[#allocation35_spill] sm:$0xff] %v11917_v19  ;;  %v11930_v30 = vrot.slane %v1146_v45, %v11349_v59  ;;  %v473_v15 = vadd.f32 %v11345_v49, %v472_v28  ;;  %v9385_v5 = vpop.f32.mrb[51].mxu0  ;;  %v8084_v51 = vcombine.high %v1144_v57, %v11917_v19 }
 0x15a   :  { %14395 = vst [vmem:[#allocation33_spill] sm:$0xff] %v11906_v55  ;;  %v11923_v16 = vpack.c.bf16 %v3256_v36, %v14398_v20  ;;  %v11925_v55 = vpack.c.bf16 %v3569_v47, %v3552_v53  ;;  %v1712_v46 = vcombine.low %v1144_v57, %v11917_v19  ;;  %v623_v50 = vmul.f32 0.2, %v470_v27 }
 0x15b   :  { %14401 = vst [vmem:[#allocation38_spill] sm:$0xff] %v11930_v30  ;;  %v11936_v37 = vrot.slane %v3849_v34, %v11349_v59  ;;  %v14403_v53 = vcombine.low %v11645_v39, %v11662_v32  ;;  %v3866_v60 = vcombine.low %v11792_v4, %v11834_v18  ;;  %v624_v12 = vmul.f32 0.2, %v473_v15 }
 0x15c   :  { %14399 = vst [vmem:[#allocation36_spill] sm:$0xff] %v11923_v16  ;;  %14400 = vst [vmem:[#allocation37_spill] sm:$0xff] %v11925_v55  ;;  %v11947_v5 = vrot.slane %v8084_v51, %v11349_v59  ;;  %v11950_v47 = vrot.slane %v1712_v46, %v11349_v59  ;;  %v2319_v57 = vcombine.low %v11917_v19, %v11930_v30 }
 0x15d   :  { %14402 = vst [vmem:[#allocation39_spill] sm:$0xff] %v11936_v37  ;;  %v11942_v36 = vrot.slane %v14403_v53, %v11349_v59  ;;  %v676_v45 = vmax.f32 %v470_v27, %v623_v50  ;;  %v3867_v32 = vcombine.low %v11850_v11, %v11844_v2  ;;  %v677_v4 = vmax.f32 %v473_v15, %v624_v12  ;;  %v477_v51 = vpop.f32.mrb[52].mxu0 }
 0x15e   :  { %v1910_v18 = vcombine.low %v11880_v56, %v11947_v5  ;;  %v1727_v20 = vcombine.low %v11895_v54, %v11950_v47  ;;  %v11965_v34 = vrot.slane %v2319_v57, %v11349_v59  ;;  %v478_v15 = vadd.f32 %v11345_v49, %v477_v51  ;;  %v9388_v12 = vpop.f32.mrb[53].mxu0 }
 0x15f   :  { %14404 = vst [vmem:[#allocation40_spill] sm:$0xff] %v11942_v36  ;;  %v1163_v27 = vcombine.high %v676_v45, %v676_v45  ;;  %v11968_v50 = vrot.slane %v676_v45, %v11349_v59  ;;  %v1180_v46 = vcombine.high %v677_v4, %v677_v4  ;;  %v11971_v53 = vrot.slane %v677_v4, %v11349_v59  ;;  %v480_v57 = vpop.f32.mrb[54].mxu0 }
 0x160   :  { %v2334_v28 = vcombine.low %v11901_v38, %v11965_v34  ;;  %v625_v4 = vmul.f32 0.2, %v478_v15  ;;  %v481_v51 = vadd.f32 %v11345_v49, %v480_v57  ;;  %v9389_v12 = vpop.f32.mrb[55].mxu0  ;;  %v12037_v8 = vrot.slane %v3867_v32, %v11349_v59 }
 0x161   :  { %14405 = vst [vmem:[#allocation41_spill] sm:$0xff] %v11968_v50  ;;  %14406 = vst [vmem:[#allocation42_spill] sm:$0xff] %v11971_v53  ;;  %v11977_v39 = vrot.slane %v1163_v27, %v11349_v59  ;;  %v8085_v55 = vcombine.high %v11930_v30, %v11968_v50  ;;  %v1728_v45 = vcombine.low %v11930_v30, %v11968_v50 }
 0x162   :  { %v11984_v16 = vrot.slane %v1180_v46, %v11349_v59  ;;  %v12001_v57 = vmax.f32 %v478_v15, %v625_v4  ;;  %v626_v12 = vmul.f32 0.2, %v481_v51  ;;  %14413 = vst [vmem:[#allocation49_spill] sm:$0xff] %v12037_v8  ;;  %v12041_v9 = vrot.slane %v3866_v60, %v11349_v59 }
 0x163   :  { %14407 = vst [vmem:[#allocation43_spill] sm:$0xff] %v11977_v39  ;;  %v8086_v2 = vcombine.high %v11977_v39, %v11971_v53  ;;  %v11990_v27 = vrot.slane %v8085_v55, %v11349_v59  ;;  %v1729_v11 = vcombine.low %v11977_v39, %v11971_v53  ;;  %v11995_v19 = vrot.slane %v1728_v45, %v11349_v59 }
 0x164   :  { %14408 = vst [vmem:[#allocation44_spill] sm:$0xff] %v11984_v16  ;;  %v2336_v46 = vcombine.low %v11971_v53, %v11984_v16  ;;  %14409 = vst [vmem:[#allocation45_spill] sm:$0xff] %v12001_v57  ;;  %v2335_v3 = vcombine.low %v11968_v50, %v11977_v39  ;;  %v1197_v33 = vcombine.high %v12001_v57, %v12001_v57 }
 0x165   :  { %v12004_v29 = vrot.slane %v8086_v2, %v11349_v59  ;;  %v12007_v55 = vrot.slane %v1729_v11, %v11349_v59  ;;  %v679_v0 = vmax.f32 %v481_v51, %v626_v12  ;;  %v485_v4 = vpop.f32.mrb[56].mxu0  ;;  %14414 = vst [vmem:[#allocation50_spill] sm:$0xff] %v12041_v9 }
 0x166   :  { %v12016_v15 = vrot.slane %v2336_v46, %v11349_v59  ;;  %v12023_v30 = vrot.slane %v2335_v3, %v11349_v59  ;;  %v12026_v14 = vrot.slane %v1197_v33, %v11349_v59  ;;  %v486_v51 = vadd.f32 %v11345_v49, %v485_v4  ;;  %v9392_v46 = vpop.f32.mrb[57].mxu0 }
 0x167   :  { %v1927_v2 = vcombine.low %v11990_v27, %v12004_v29  ;;  %v1744_v11 = vcombine.low %v11995_v19, %v12007_v55  ;;  %v12029_v45 = vrot.slane %v679_v0, %v11349_v59  ;;  %v488_v12 = vpop.f32.mrb[58].mxu0  ;;  %v1214_v24 = vcombine.high %v679_v0, %v679_v0 }
 0x168   :  { %14410 = vst [vmem:[#allocation46_spill] sm:$0xff] %v12026_v14  ;;  %v2351_v50 = vcombine.low %v12023_v30, %v12016_v15  ;;  %v627_v3 = vmul.f32 0.2, %v486_v51  ;;  %v489_v33 = vadd.f32 %v11345_v49, %v488_v12  ;;  %v9393_v21 = vpop.f32.mrb[59].mxu0 }
 0x169   :  { %14411 = vst [vmem:[#allocation47_spill] sm:$0xff] %v12029_v45  ;;  %v1990_v57 = vpack.c.bf16 %v1927_v2, %v1910_v18  ;;  %v12032_v39 = vpack.c.bf16 %v1744_v11, %v1727_v20  ;;  %v3882_v21 = vcombine.low %v12041_v9, %v12037_v8  ;;  %v14417_v11 = vcombine.low %v11936_v37, %v11942_v36 }
 0x16a   :  { %v12043_v4 = vpack.c.bf16 %v2351_v50, %v2334_v28  ;;  %v680_v2 = vmax.f32 %v486_v51, %v627_v3  ;;  %v628_v32 = vmul.f32 0.2, %v489_v33  ;;  %v12057_v50 = vrot.slane %v1214_v24, %v11349_v59 }
 0x16b   :  { %14412 = vst [vmem:[#allocation48_spill] sm:$0xff] %v12032_v39  ;;  %9475 = vmatmul.mubr.bf16.gmra.mrb[24].mxu1 %v1990_v57  ;;  %v12062_v51 = vpack.c.bf16 %v3882_v21, %v14417_v11 }
 0x16c   :  { %14415 = vst [vmem:[#allocation51_spill] sm:$0xff] %v12043_v4  ;;  %9478 = vmatprep.mubr.msk.bf16.mxu1 %vm11057_vm0, %v14378_v17  ;;  %v1231_v60 = vcombine.high %v680_v2, %v680_v2  ;;  %v12054_v0 = vrot.slane %v680_v2, %v11349_v59  ;;  %v681_v28 = vmax.f32 %v489_v33, %v628_v32  ;;  %14416 = vst [vmem:[#allocation52_spill] sm:$0xff] %v12057_v50  ;;  %v12089_v32 = vld [vmem:[%s14296_s2] ss:$0 sm:$0xff] }
 0x16d   :  { %v493_v57 = vpop.f32.mrb[60].mxu0  ;;  %14418 = vst [vmem:[#allocation53_spill] sm:$0xff] %v12062_v51 }
 0x16e   :  { %v12065_v46 = vrot.slane %v1231_v60, %v11349_v59  ;;  %v1248_v12 = vcombine.high %v681_v28, %v681_v28  ;;  %v12068_v3 = vrot.slane %v681_v28, %v11349_v59  ;;  %v494_v2 = vadd.f32 %v11345_v49, %v493_v57  ;;  %v9396_v20 = vpop.f32.mrb[61].mxu0 }
 0x16f   :  { %v496_v33 = vpop.f32.mrb[62].mxu0 }
 0x170   :  { %14419 = vst [vmem:[#allocation54_spill] sm:$0xff] %v12068_v3  ;;  %v12080_v11 = vrot.slane %v1248_v12, %v11349_v59  ;;  %v629_v28 = vmul.f32 0.2, %v494_v2  ;;  %v9397_v57 = vpop.f32.mrb[63].mxu0  ;;  %v497_v24 = vadd.f32 %v12089_v32, %v496_v33 }
 0x172   :  { %14420 = vst [vmem:[#allocation55_spill] sm:$0xff] %v12080_v11  ;;  %v682_v12 = vmax.f32 %v494_v2, %v629_v28  ;;  %v630_v60 = vmul.f32 0.2, %v497_v24 }
 0x174   :  { %v1264_v49 = vcombine.high %v682_v12, %v682_v12  ;;  %v683_v8 = vmax.f32 %v497_v24, %v630_v60  ;;  %v1271_v51 = vrot.slane %v682_v12, %v11349_v59 }
 0x175   :  { %v501_v20 = vpop.f32.mrb[64].mxu0 }
 0x176   :  { %v1278_v14 = vrot.slane %v1264_v49, %v11349_v59  ;;  %v502_v33 = vadd.f32 %v12089_v32, %v501_v20  ;;  %v9400_v4 = vpop.f32.mrb[65].mxu0  ;;  %v1281_v9 = vcombine.high %v683_v8, %v683_v8  ;;  %v1288_v2 = vrot.slane %v683_v8, %v11349_v59 }
 0x177   :  { %v504_v28 = vpop.f32.mrb[66].mxu0 }
 0x178   :  { %v1745_v18 = vcombine.low %v1271_v51, %v1278_v14  ;;  %v8087_v36 = vcombine.high %v1271_v51, %v1278_v14  ;;  %v631_v21 = vmul.f32 0.2, %v502_v33  ;;  %v505_v24 = vadd.f32 %v12089_v32, %v504_v28  ;;  %v9401_v60 = vpop.f32.mrb[67].mxu0 }
 0x179   :  { %v1295_v45 = vrot.slane %v1281_v9, %v11349_v59  ;;  %v2352_v57 = vcombine.low %v1278_v14, %v1288_v2  ;;  %v8161_v50 = vcombine.high %v1278_v14, %v1288_v2 }
 0x17a   :  { %v684_v12 = vmax.f32 %v502_v33, %v631_v21  ;;  %v632_v37 = vmul.f32 0.2, %v505_v24  ;;  %v12105_v20 = vrot.slane %v8087_v36, %v11349_v59  ;;  %v12111_v11 = vrot.slane %v1745_v18, %v11349_v59 }
 0x17b   :  { %v8088_v49 = vcombine.high %v1288_v2, %v1295_v45  ;;  %v1746_v4 = vcombine.low %v1288_v2, %v1295_v45  ;;  %v14421_v36 = vcombine.low %v11493_v41, %v11536_v31  ;;  %v14422_v21 = vcombine.low %v11550_v62, %v11714_v25 }
 0x17c   :  { %v1298_v44 = vcombine.high %v684_v12, %v684_v12  ;;  %v12108_v8 = vrot.slane %v684_v12, %v11349_v59  ;;  %v685_v51 = vmax.f32 %v505_v24, %v632_v37  ;;  %v4130_v37 = vcombine.low %v11754_v26, %v11895_v54 }
 0x17d   :  { %v509_v28 = vpop.f32.mrb[68].mxu0  ;;  %v12114_v9 = vrot.slane %v8088_v49, %v11349_v59  ;;  %v12117_v14 = vrot.slane %v1746_v4, %v11349_v59  ;;  %v12125_v33 = vpack.c.bf16 %v14422_v21, %v14421_v36  ;;  %v12150_v21 = vrot.slane %v2352_v57, %v11349_v59 }
 0x17e   :  { %v12130_v18 = vrot.slane %v1298_v44, %v11349_v59  ;;  %v12133_v2 = vrot.slane %v685_v51, %v11349_v59  ;;  %v510_v24 = vadd.f32 %v12089_v32, %v509_v28  ;;  %v9404_v60 = vpop.f32.mrb[69].mxu0  ;;  %v2353_v62 = vcombine.low %v1295_v45, %v12108_v8 }
 0x17f   :  { %14423 = vst [vmem:[#allocation56_spill] sm:$0xff] %v12125_v33  ;;  %v512_v12 = vpop.f32.mrb[70].mxu0  ;;  %v8162_v25 = vcombine.high %v1295_v45, %v12108_v8  ;;  %v1315_v26 = vcombine.high %v685_v51, %v685_v51  ;;  %v12156_v51 = vrot.slane %v8161_v50, %v11349_v59 }
 0x180   :  { %v633_v49 = vmul.f32 0.2, %v510_v24  ;;  %v9405_v4 = vpop.f32.mrb[71].mxu0  ;;  %v513_v28 = vadd.f32 %v12089_v32, %v512_v12  ;;  %v1762_v36 = vcombine.low %v12108_v8, %v12130_v18  ;;  %v12153_v60 = vrot.slane %v2353_v62, %v11349_v59 }
 0x181   :  { %v12159_v31 = vrot.slane %v8162_v25, %v11349_v59  ;;  %v1329_v57 = vrot.slane %v1315_v26, %v11349_v59  ;;  %v4131_v25 = vcombine.low %v11950_v47, %v11995_v19 }
 0x182   :  { %v686_v45 = vmax.f32 %v510_v24, %v633_v49  ;;  %v634_v41 = vmul.f32 0.2, %v513_v28  ;;  %v12162_v4 = vrot.slane %v1762_v36, %v11349_v59  ;;  %v4132_v36 = vcombine.low %v12007_v55, %v12111_v11 }
 0x184   :  { %v1332_v54 = vcombine.high %v686_v45, %v686_v45  ;;  %v1339_v62 = vrot.slane %v686_v45, %v11349_v59  ;;  %v687_v50 = vmax.f32 %v513_v28, %v634_v41  ;;  %v4133_v44 = vcombine.low %v12117_v14, %v12162_v4 }
 0x185   :  { %v517_v49 = vpop.f32.mrb[72].mxu0  ;;  %v12179_v28 = vpack.c.bf16 %v4131_v25, %v4130_v37 }
 0x186   :  { %v1346_v12 = vrot.slane %v1332_v54, %v11349_v59  ;;  %v8203_v26 = vcombine.high %v1329_v57, %v1339_v62  ;;  %v518_v33 = vadd.f32 %v12089_v32, %v517_v49  ;;  %v9408_v45 = vpop.f32.mrb[73].mxu0  ;;  %v1349_v3 = vcombine.high %v687_v50, %v687_v50 }
 0x187   :  { %v1356_v24 = vrot.slane %v687_v50, %v11349_v59  ;;  %v520_v41 = vpop.f32.mrb[74].mxu0  ;;  %14424 = vst [vmem:[#allocation57_spill] sm:$0xff] %v12179_v28  ;;  %v12181_v16 = vpack.c.bf16 %v4133_v44, %v4132_v36  ;;  %v8089_v50 = vcombine.high %v12108_v8, %v12130_v18  ;;  %v14426_v8 = vcombine.low %v11496_v35, %v11512_v43 }
 0x188   :  { %v3291_v19 = vcombine.low %v1339_v62, %v1346_v12  ;;  %v8269_v47 = vcombine.high %v1339_v62, %v1346_v12  ;;  %v635_v55 = vmul.f32 0.2, %v518_v33  ;;  %v521_v53 = vadd.f32 %v12089_v32, %v520_v41  ;;  %v9409_v39 = vpop.f32.mrb[75].mxu0 }
 0x189   :  { %14425 = vst [vmem:[#allocation58_spill] sm:$0xff] %v12181_v16  ;;  %v12185_v54 = vrot.slane %v1349_v3, %v11349_v59  ;;  %v8204_v57 = vcombine.high %v1346_v12, %v1356_v24  ;;  %v3917_v49 = vcombine.low %v1346_v12, %v1356_v24  ;;  %v12190_v37 = vrot.slane %v8203_v26, %v11349_v59 }
 0x18a   :  { %v688_v45 = vmax.f32 %v518_v33, %v635_v55  ;;  %v636_v48 = vmul.f32 0.2, %v521_v53  ;;  %v12197_v39 = vrot.slane %v3291_v19, %v11349_v59  ;;  %v14427_v36 = vcombine.low %v11546_v61, %v11707_v10 }
 0x18b   :  { %v12193_v44 = vrot.slane %v8204_v57, %v11349_v59  ;;  %v3292_v62 = vcombine.low %v1356_v24, %v12185_v54  ;;  %v8270_v3 = vcombine.high %v1356_v24, %v12185_v54  ;;  %v12217_v24 = vrot.slane %v8269_v47, %v11349_v59 }
 0x18c   :  { %v1366_v25 = vcombine.high %v688_v45, %v688_v45  ;;  %v12201_v33 = vrot.slane %v688_v45, %v11349_v59  ;;  %v689_v12 = vmax.f32 %v521_v53, %v636_v48  ;;  %v12209_v26 = vpack.c.bf16 %v14427_v36, %v14426_v8 }
 0x18d   :  { %v525_v41 = vpop.f32.mrb[76].mxu0  ;;  %v12214_v55 = vrot.slane %v3292_v62, %v11349_v59  ;;  %v12220_v48 = vrot.slane %v8270_v3, %v11349_v59  ;;  %v12243_v47 = vrot.slane %v3917_v49, %v11349_v59  ;;  %v4325_v49 = vcombine.low %v12004_v29, %v12105_v20 }
 0x18e   :  { %14428 = vst [vmem:[#allocation59_spill] sm:$0xff] %v12209_v26  ;;  %v12223_v35 = vrot.slane %v1366_v25, %v11349_v59  ;;  %v1383_v43 = vcombine.high %v689_v12, %v689_v12  ;;  %v1390_v61 = vrot.slane %v689_v12, %v11349_v59  ;;  %v526_v10 = vadd.f32 %v12089_v32, %v525_v41  ;;  %v9412_v53 = vpop.f32.mrb[77].mxu0 }
 0x18f   :  { %v528_v57 = vpop.f32.mrb[78].mxu0  ;;  %v3918_v3 = vcombine.low %v12185_v54, %v12201_v33  ;;  %v1953_v41 = vrot.slane %v8089_v50, %v11349_v59  ;;  %v4516_v29 = vcombine.low %v11759_v42, %v11901_v38 }
 0x190   :  { %v12236_v25 = vcombine.low %v12223_v35, %v1390_v61  ;;  %v637_v12 = vmul.f32 0.2, %v526_v10  ;;  %v529_v8 = vadd.f32 %v12089_v32, %v528_v57  ;;  %v9413_v36 = vpop.f32.mrb[79].mxu0  ;;  %v4323_v61 = vcombine.low %v11751_v58, %v11880_v56 }
 0x191   :  { %v12246_v62 = vrot.slane %v3918_v3, %v11349_v59  ;;  %v4324_v57 = vcombine.low %v11947_v5, %v11990_v27  ;;  %v1397_v36 = vrot.slane %v1383_v43, %v11349_v59  ;;  %v4326_v58 = vcombine.low %v12114_v9, %v1953_v41 }
 0x192   :  { %v690_v19 = vmax.f32 %v526_v10, %v637_v12  ;;  %v638_v45 = vmul.f32 0.2, %v529_v8  ;;  %v14431_v56 = vcombine.low %v11503_v63, %v11576_v52  ;;  %v14432_v5 = vcombine.low %v11566_v7, %v11747_v23 }
 0x193   :  { %14429 = vst [vmem:[#allocation60_spill] sm:$0xff] %v12246_v62  ;;  %v12258_v10 = vpack.c.bf16 %v4324_v57, %v4323_v61  ;;  %v12278_v23 = vpack.c.bf16 %v4326_v58, %v4325_v49 }
 0x194   :  { %v1399_v53 = vcombine.high %v690_v19, %v690_v19  ;;  %v1406_v3 = vrot.slane %v690_v19, %v11349_v59  ;;  %v691_v26 = vmax.f32 %v529_v8, %v638_v45  ;;  %v12267_v27 = vpack.c.bf16 %v14432_v5, %v14431_v56 }
 0x195   :  { %14430 = vst [vmem:[#allocation61_spill] sm:$0xff] %v12258_v10  ;;  %v533_v12 = vpop.f32.mrb[80].mxu0  ;;  %v4517_v19 = vcombine.low %v11965_v34, %v12023_v30  ;;  %14434 = vst [vmem:[#allocation63_spill] sm:$0xff] %v12278_v23  ;;  %v14447_v10 = vcombine.high %v12185_v54, %v12201_v33 }
 0x196   :  { %14433 = vst [vmem:[#allocation62_spill] sm:$0xff] %v12267_v27  ;;  %v1413_v43 = vrot.slane %v1399_v53, %v11349_v59  ;;  %v1416_v45 = vcombine.high %v691_v26, %v691_v26  ;;  %v12275_v8 = vrot.slane %v691_v26, %v11349_v59  ;;  %v534_v61 = vadd.f32 %v12089_v32, %v533_v12  ;;  %v9416_v63 = vpop.f32.mrb[81].mxu0 }
 0x197   :  { %v536_v52 = vpop.f32.mrb[82].mxu0  ;;  %v8090_v57 = vcombine.high %v1397_v36, %v1406_v3  ;;  %v1763_v7 = vcombine.low %v1397_v36, %v1406_v3  ;;  %v12280_v56 = vpack.c.bf16 %v4517_v19, %v4516_v29  ;;  %v14436_v29 = vcombine.low %v12130_v18, %v12133_v2 }
 0x198   :  { %v1430_v42 = vrot.slane %v1416_v45, %v11349_v59  ;;  %v639_v38 = vmul.f32 0.2, %v534_v61  ;;  %v537_v30 = vadd.f32 %v12089_v32, %v536_v52  ;;  %v9417_v34 = vpop.f32.mrb[83].mxu0  ;;  %v8091_v53 = vcombine.high %v1413_v43, %v12275_v8 }
 0x199   :  { %14435 = vst [vmem:[#allocation64_spill] sm:$0xff] %v12280_v56  ;;  %v12286_v26 = vrot.slane %v8090_v57, %v11349_v59  ;;  %v12289_v12 = vrot.slane %v1763_v7, %v11349_v59  ;;  %v1779_v36 = vcombine.low %v1413_v43, %v12275_v8  ;;  %v2370_v49 = vcombine.low %v1406_v3, %v1413_v43 }
 0x19a   :  { %v692_v58 = vmax.f32 %v534_v61, %v639_v38  ;;  %v640_v5 = vmul.f32 0.2, %v537_v30  ;;  %v12296_v19 = vrot.slane %v14436_v29, %v11349_v59  ;;  %v2386_v45 = vcombine.low %v12275_v8, %v1430_v42 }
 0x19b   :  { %v1961_v63 = vcombine.low %v1953_v41, %v12286_v26  ;;  %v1778_v52 = vcombine.low %v12162_v4, %v12289_v12  ;;  %v12303_v57 = vrot.slane %v2370_v49, %v11349_v59  ;;  %v14437_v61 = vcombine.high %v12130_v18, %v12133_v2 }
 0x19c   :  { %v1433_v38 = vcombine.high %v692_v58, %v692_v58  ;;  %v1440_v34 = vrot.slane %v692_v58, %v11349_v59  ;;  %v693_v29 = vmax.f32 %v537_v30, %v640_v5  ;;  %v12313_v50 = vrot.slane %v8091_v53, %v11349_v59 }
 0x19d   :  { %v12309_v7 = vrot.slane %v14437_v61, %v11349_v59  ;;  %v541_v41 = vpop.f32.mrb[84].mxu0  ;;  %v14438_v4 = vcombine.low %v12105_v20, %v12114_v9  ;;  %v14439_v49 = vcombine.low %v12111_v11, %v12117_v14  ;;  %v2385_v18 = vcombine.low %v12296_v19, %v12303_v57 }
 0x19e   :  { %v8164_v2 = vcombine.high %v1406_v3, %v1413_v43  ;;  %v1447_v58 = vrot.slane %v1433_v38, %v11349_v59  ;;  %v1450_v30 = vcombine.high %v693_v29, %v693_v29  ;;  %v542_v53 = vadd.f32 %v12089_v32, %v541_v41  ;;  %v9420_v5 = vpop.f32.mrb[85].mxu0 }
 0x19f   :  { %v1991_v56 = vpack.c.bf16 %v1961_v63, %v14438_v4  ;;  %v12321_v27 = vpack.c.bf16 %v1778_v52, %v14439_v49  ;;  %v12328_v61 = vrot.slane %v1779_v36, %v11349_v59  ;;  %v544_v20 = vpop.f32.mrb[86].mxu0  ;;  %v8092_v9 = vcombine.high %v1430_v42, %v1440_v34 }
 0x1a0   :  { %v1780_v63 = vcombine.low %v1430_v42, %v1440_v34  ;;  %v14440_v11 = vcombine.low %v12150_v21, %v12153_v60  ;;  %v12336_v3 = vrot.slane %v8164_v2, %v11349_v59  ;;  %v1457_v43 = vrot.slane %v693_v29, %v11349_v59  ;;  %v9421_v41 = vpop.f32.mrb[87].mxu0 }
 0x1a1   :  { %9479 = vmatmul.mubr.bf16.gmra.mrb[28].mxu1 %v1991_v56  ;;  %v1464_v52 = vrot.slane %v1450_v30, %v11349_v59  ;;  %v641_v38 = vmul.f32 0.2, %v542_v53  ;;  %v2387_v56 = vcombine.low %v1440_v34, %v1447_v58  ;;  %v12343_v36 = vrot.slane %v8092_v9, %v11349_v59 }
 0x1a2   :  { %v12333_v14 = vpack.c.bf16 %v2385_v18, %v14440_v11  ;;  %9482 = vmatprep.mubr.msk.bf16.mxu1 %vm11057_vm0, %v14378_v17  ;;  %v12346_v4 = vrot.slane %v1780_v63, %v11349_v59  ;;  %v2698_v49 = vcombine.low %v12309_v7, %v12336_v3  ;;  %v8165_v18 = vcombine.high %v12275_v8, %v1430_v42 }
 0x1a3   :  { %v8206_v29 = vcombine.high %v1457_v43, %v1464_v52  ;;  %v694_v2 = vmax.f32 %v542_v53, %v641_v38  ;;  %v12352_v30 = vrot.slane %v2386_v45, %v11349_v59  ;;  %v12355_v5 = vrot.slane %v2387_v56, %v11349_v59 }
 0x1a4   :  { %14441 = vst [vmem:[#allocation65_spill] sm:$0xff] %v12333_v14  ;;  %v1978_v9 = vcombine.low %v12313_v50, %v12343_v36  ;;  %v12361_v63 = vcombine.low %v12328_v61, %v12346_v4  ;;  %v14443_v11 = vcombine.low %v12156_v51, %v12159_v31  ;;  %v8166_v8 = vcombine.high %v1440_v34, %v1447_v58 }
 0x1a5   :  { %v12369_v42 = vrot.slane %v694_v2, %v11349_v59  ;;  %v12373_v45 = vcombine.low %v12352_v30, %v12355_v5  ;;  %v3308_v53 = vcombine.low %v12201_v33, %v12223_v35  ;;  %v1467_v43 = vcombine.high %v694_v2, %v694_v2  ;;  %v549_v38 = vpop.f32.mrb[88].mxu0 }
 0x1a6   :  { %14442 = vst [vmem:[#allocation66_spill] sm:$0xff] %v12361_v63  ;;  %v12366_v41 = vpack.c.bf16 %v2698_v49, %v14443_v11  ;;  %v1992_v56 = vpack.c.bf16 %v1978_v9, %v1978_v9  ;;  %v12378_v23 = vrot.slane %v8165_v18, %v11349_v59  ;;  %v12381_v49 = vrot.slane %v8166_v8, %v11349_v59  ;;  %v9424_v34 = vpop.f32.mrb[89].mxu0 }
 0x1a7   :  { %14445 = vst [vmem:[#allocation68_spill] sm:$0xff] %v12373_v45  ;;  %v552_v58 = vpop.f32.mrb[90].mxu0  ;;  %v12391_v2 = vrot.slane %v14447_v10, %v11349_v59  ;;  %v12394_v9 = vrot.slane %v8206_v29, %v11349_v59  ;;  %v3309_v18 = vcombine.low %v1464_v52, %v12369_v42  ;;  %v12406_v54 = vrot.slane %v3308_v53, %v11349_v59  ;;  %v10798_v53 = vld [vmem:[%s14295_s3 + $0x80] sm:$0xff]  }
 0x1a8   :  { %14444 = vst [vmem:[#allocation67_spill] sm:$0xff] %v12366_v41  ;;  %v12385_v11 = vcombine.low %v12378_v23, %v12381_v49  ;;  %v553_v8 = vadd.f32 %v12089_v32, %v552_v58  ;;  %v9425_v34 = vpop.f32.mrb[91].mxu0  ;;  %v545_v28 = vadd.f32 %v12089_v32, %v544_v20  ;;  %v14448_v58 = vcombine.low %v12190_v37, %v12193_v44 }
 0x1a9   :  { %9483 = vmatmul.mubr.bf16.gmra.mrb[32].mxu1 %v1992_v56  ;;  %v12401_v56 = vrot.slane %v1467_v43, %v11349_v59  ;;  %v3011_v16 = vcombine.low %v12391_v2, %v12394_v9  ;;  %v12409_v10 = vrot.slane %v3309_v18, %v11349_v59  ;;  %v14450_v45 = vcombine.low %v12197_v39, %v12214_v55 }
 0x1aa   :  { %14446 = vst [vmem:[#allocation69_spill] sm:$0xff] %v12385_v11  ;;  %9502 = vmatprep.mubr.msk.bf16.mxu1 %vm11057_vm0, %v14378_v17  ;;  %v644_v29 = vmul.f32 0.2, %v553_v8  ;;  %v8272_v11 = vcombine.high %v1464_v52, %v12369_v42 }
 0x1ab   :  { %v12415_v34 = vpack.c.bf16 %v3011_v16, %v14448_v58  ;;  %v3324_v43 = vcombine.low %v12406_v54, %v12409_v10  ;;  %v14452_v16 = vcombine.high %v12201_v33, %v12223_v35  ;;  %v3935_v52 = vcombine.low %v12369_v42, %v12401_v56  ;;  %v12444_v33 = vpop.f32.mrb[0].mxu1 }
 0x1ac   :  { %v697_v41 = vmax.f32 %v553_v8, %v644_v29  ;;  %14455 = vst [vmem:[#allocation74_spill] sm:$0xff] %v12444_v33 }
 0x1ad   :  { %14449 = vst [vmem:[#allocation70_spill] sm:$0xff] %v12415_v34  ;;  %v557_v18 = vpop.f32.mrb[92].mxu0  ;;  %v12426_v20 = vpack.c.bf16 %v3324_v43, %v14450_v45  ;;  %v12432_v58 = vrot.slane %v14452_v16, %v11349_v59  ;;  %v12435_v34 = vrot.slane %v8272_v11, %v11349_v59  ;;  %v642_v45 = vmul.f32 0.2, %v545_v28 }
 0x1ae   :  { %v1517_v8 = vcombine.high %v697_v41, %v697_v41  ;;  %v1524_v29 = vrot.slane %v697_v41, %v11349_v59  ;;  %v558_v14 = vadd.f32 %v12089_v32, %v557_v18  ;;  %v9428_v63 = vpop.f32.mrb[93].mxu0  ;;  %v10799_v41 = vld [vmem:[%s14295_s3 + $0x88] sm:$0xff]  }
 0x1af   :  { %14451 = vst [vmem:[#allocation71_spill] sm:$0xff] %v12426_v20  ;;  %14453 = vst [vmem:[#allocation72_spill] sm:$0xff] %v12435_v34  ;;  %v12442_v43 = vpop.f32.mrb[94].mxu0  ;;  %v3637_v35 = vcombine.low %v12432_v58, %v12435_v34  ;;  %v550_v20 = vadd.f32 %v12089_v32, %v549_v38  ;;  %v695_v34 = vmax.f32 %v545_v28, %v642_v45 }
 0x1b0   :  { %14454 = vst [vmem:[#allocation73_spill] sm:$0xff] %v12442_v43  ;;  %v12449_v11 = vrot.slane %v1517_v8, %v11349_v59  ;;  %v9429_v18 = vpop.f32.mrb[95].mxu0  ;;  %v645_v63 = vmul.f32 0.2, %v558_v14  ;;  %v14457_v43 = vcombine.low %v12217_v24, %v12220_v48  ;;  %v14461_v28 = vcombine.low %v12243_v47, %v12246_v62 }
 0x1b1   :  { %9503 = vmatmul.mubr.bf16.vlgmr.msra.gmra.mrb[16].mxu1 %v11523_v6  ;;  %v9436_v6 = vpop.f32.mrb[1].mxu1  ;;  %v12469_v18 = vrot.slane %v3935_v52, %v11349_v59  ;;  %v12498_v62 = vrot.slane %v695_v34, %v11349_v59 }
 0x1b2   :  { %9523 = vmatpush3.bf16.msra.mxu1 %v10798_v53  ;;  %9506 = vmatprep.mubr.msk.bf16.mxu1 %vm11057_vm0, %v14378_v17  ;;  %v12457_v16 = vpop.f32.mrb[2].mxu1  ;;  %v12462_v8 = vpack.c.bf16 %v3637_v35, %v14457_v43  ;;  %v12466_v53 = vrot.slane %v12236_v25, %v11349_v59  ;;  %v4135_v6 = vcombine.low %v1524_v29, %v12449_v11  ;;  %v10800_v25 = vld [vmem:[%s14295_s3 + $0x90] sm:$0xff]  }
 0x1b3   :  { %9524 = vmatprep.subr.bf16.mxu1 %v14378_v17  ;;  %14456 = vst [vmem:[#allocation75_spill] sm:$0xff] %v12457_v16  ;;  %14459 = vst [vmem:[#allocation77_spill] sm:$0xff] %v12469_v18  ;;  %v9437_v33 = vpop.f32.mrb[3].mxu1  ;;  %v4134_v43 = vcombine.low %v12289_v12, %v12328_v61  ;;  %v1484_v35 = vcombine.high %v695_v34, %v695_v34  ;;  %v4327_v12 = vcombine.low %v12286_v26, %v12313_v50  ;;  %v10801_v50 = vld [vmem:[%s14295_s3 + $0x98] sm:$0xff]  }
 0x1b4   :  { %14458 = vst [vmem:[#allocation76_spill] sm:$0xff] %v12462_v8  ;;  %v3950_v16 = vcombine.low %v12466_v53, %v12469_v18  ;;  %v4142_v52 = vrot.slane %v4135_v6, %v11349_v59  ;;  %v12481_v8 = vmax.f32 %v558_v14, %v645_v63  ;;  %v643_v61 = vmul.f32 0.2, %v550_v20  ;;  %v12494_v63 = vpop.f32.mrb[4].mxu1 }
 0x1b5   :  { %v565_v38 = vpop.f32.mrb[96].mxu0  ;;  %v8347_v33 = vcombine.high %v1524_v29, %v12449_v11  ;;  %v12507_v29 = vrot.slane %v1484_v35, %v11349_v59  ;;  %v8202_v35 = vcombine.high %v12054_v0, %v12065_v46 }
 0x1b6   :  { %9525 = vmatpush3.bf16.msra.mxu1 %v10799_v41  ;;  %14460 = vst [vmem:[#allocation78_spill] sm:$0xff] %v12481_v8  ;;  %v12487_v45 = vpack.c.bf16 %v3950_v16, %v14461_v28  ;;  %v566_v41 = vadd.f32 %v12089_v32, %v565_v38  ;;  %v9432_v6 = vpop.f32.mrb[97].mxu0  ;;  %v4143_v18 = vcombine.low %v12346_v4, %v4142_v52 }
 0x1b7   :  { %9526 = vmatprep.subr.bf16.mxu1 %v14378_v17  ;;  %v568_v14 = vpop.f32.mrb[98].mxu0  ;;  %v12511_v4 = vrot.slane %v12481_v8, %v11349_v59  ;;  %v12516_v52 = vmax.f32 %v550_v20, %v643_v61  ;;  %v4518_v8 = vcombine.low %v12016_v15, %v12150_v21  ;;  %v4520_v20 = vcombine.low %v12303_v57, %v12352_v30  ;;  %v10802_v61 = vld [vmem:[%s14295_s3 + $0xa0] sm:$0xff]  }
 0x1b8   :  { %v647_v16 = vmul.f32 0.2, %v566_v41  ;;  %v569_v28 = vadd.f32 %v12089_v32, %v568_v14  ;;  %v9433_v26 = vpop.f32.mrb[99].mxu0  ;;  %v3325_v15 = vcombine.low %v12401_v56, %v12498_v62  ;;  %v14462_v30 = vcombine.low %v11506_v1, %v11623_v40  ;;  %v14465_v1 = vld [vmem:[#allocation48_spill] sm:$0xff] }
 0x1b9   :  { %9507 = vmatmul.mubr.bf16.gmra.mrb[20].mxu1 %v11789_v13  ;;  %v9440_v13 = vpop.f32.mrb[5].mxu1  ;;  %v4521_v57 = vcombine.low %v12449_v11, %v12511_v4 }
 0x1ba   :  { %9527 = vmatpush3.bf16.msra.mxu1 %v10800_v25  ;;  %9510 = vmatprep.mubr.msk.bf16.mxu1 %vm11057_vm0, %v14378_v17  ;;  %v584_v34 = vpop.f32.mrb[6].mxu1  ;;  %v12514_v25 = vpack.c.bf16 %v4143_v18, %v4134_v43  ;;  %v12518_v38 = vmax.f32 %v566_v41, %v647_v16  ;;  %v648_v6 = vmul.f32 0.2, %v569_v28  ;;  %v4335_v13 = vrot.slane %v8347_v33, %v11349_v59  ;;  %v14463_v16 = vld [vmem:[#allocation20_spill] sm:$0xff] }
 0x1bb   :  { %9528 = vmatprep.subr.bf16.mxu1 %v14378_v17  ;;  %v9441_v14 = vpop.f32.mrb[7].mxu1  ;;  %v4519_v34 = vcombine.low %v12153_v60, %v12296_v19  ;;  %v8207_v33 = vcombine.high %v12369_v42, %v12401_v56  ;;  %v14464_v42 = vcombine.low %v11584_v22, %v14463_v16 }
 0x1bc   :  { %v588_v26 = vpop.f32.mrb[8].mxu1  ;;  %v1568_v18 = vcombine.high %v12518_v38, %v12518_v38  ;;  %v701_v43 = vmax.f32 %v569_v28, %v648_v6  ;;  %v4336_v60 = vcombine.low %v12343_v36, %v4335_v13 }
 0x1bd   :  { %v9444_v41 = vpop.f32.mrb[9].mxu1  ;;  %v12540_v19 = vpack.c.bf16 %v4519_v34, %v4518_v8  ;;  %v12550_v28 = vpack.c.bf16 %v14464_v42, %v14462_v30  ;;  %v8208_v8 = vcombine.high %v12498_v62, %v12507_v29  ;;  %v4528_v26 = vrot.slane %v4521_v57, %v11349_v59 }
 0x1be   :  { %9529 = vmatpush3.bf16.msra.mxu1 %v10801_v50  ;;  %v590_v21 = vpop.f32.mrb[10].mxu1  ;;  %v12554_v50 = vrot.slane %v12516_v52, %v11349_v59  ;;  %v1582_v6 = vrot.slane %v1568_v18, %v11349_v59  ;;  %v1585_v36 = vcombine.high %v701_v43, %v701_v43  ;;  %v12560_v13 = vrot.slane %v701_v43, %v11349_v59  ;;  %v10803_v18 = vld [vmem:[%s14295_s3 + $0xa8] sm:$0xff]   ;;  %v14466_v43 = vld [vmem:[#allocation42_spill] sm:$0xff]  ;;  %v14467_v41 = vld [vmem:[#allocation44_spill] sm:$0xff] }
 0x1bf   :  { %9530 = vmatprep.subr.bf16.mxu1 %v14378_v17  ;;  %v9445_v14 = vpop.f32.mrb[11].mxu1  ;;  %v12563_v22 = vpack.c.bf16 %v4336_v60, %v4327_v12  ;;  %v14468_v21 = vcombine.high %v14466_v43, %v14467_v41  ;;  %v14469_v60 = vld [vmem:[#allocation54_spill] sm:$0xff]  ;;  %v12589_v42 = vrot.slane %v8202_v35, %v11349_v59  ;;  %v8273_v35 = vcombine.high %v12401_v56, %v12498_v62 }
 0x1c0   :  { %v594_v40 = vpop.f32.mrb[12].mxu1  ;;  %v12567_v34 = vrot.slane %v1585_v36, %v11349_v59  ;;  %v14470_v57 = vcombine.low %v12065_v46, %v14469_v60  ;;  %v12592_v36 = vrot.slane %v8207_v33, %v11349_v59  ;;  %v3326_v41 = vcombine.low %v12507_v29, %v12554_v50 }
 0x1c1   :  { %9511 = vmatmul.mubr.bf16.gmra.mrb[24].mxu1 %v14465_v1  ;;  %v12578_v30 = vrot.slane %v14468_v21, %v11349_v59  ;;  %v9448_v12 = vpop.f32.mrb[13].mxu1  ;;  %v4529_v1 = vcombine.low %v12355_v5, %v4528_v26  ;;  %v12596_v40 = vrot.slane %v8208_v8, %v11349_v59  ;;  %v4712_v5 = vcombine.low %v12159_v31, %v12309_v7  ;;  %v14474_v7 = vld [vmem:[#allocation10_spill] sm:$0xff] }
 0x1c2   :  { %9531 = vmatpush3.bf16.msra.mxu1 %v10802_v61  ;;  %9514 = vmatprep.mubr.msk.bf16.mxu1 %vm11057_vm0, %v14378_v17  ;;  %v12584_v16 = vrot.slane %v14470_v57, %v11349_v59  ;;  %v8425_v61 = vcombine.high %v1582_v6, %v12560_v13  ;;  %v596_v14 = vpop.f32.mrb[14].mxu1  ;;  %v12601_v6 = vrot.slane %v3325_v15, %v11349_v59  ;;  %v10804_v15 = vld [vmem:[%s14295_s3 + $0xb0] sm:$0xff]   ;;  %v14472_v12 = vld [vmem:[#allocation9_spill] sm:$0xff]  ;;  %v14475_v57 = vld [vmem:[#allocation22_spill] sm:$0xff] }
 0x1c3   :  { %9532 = vmatprep.subr.bf16.mxu1 %v14378_v17  ;;  %v9449_v43 = vpop.f32.mrb[15].mxu1  ;;  %v12605_v21 = vpack.c.bf16 %v4529_v1, %v4520_v20  ;;  %v4711_v33 = vcombine.low %v12578_v30, %v12156_v51  ;;  %v4713_v8 = vcombine.low %v12336_v3, %v12378_v23  ;;  %v5100_v26 = vcombine.low %v12560_v13, %v12567_v34  ;;  %v14471_v20 = vld [vmem:[#allocation3_spill] sm:$0xff] }
 0x1c4   :  { %v8274_v56 = vcombine.high %v12507_v29, %v12554_v50  ;;  %v8398_v51 = vcombine.high %v12449_v11, %v12511_v4  ;;  %v14473_v31 = vcombine.low %v14471_v20, %v14472_v12  ;;  %v14476_v23 = vcombine.low %v14474_v7, %v14475_v57  ;;  %v14478_v7 = vld [vmem:[#allocation12_spill] sm:$0xff]  ;;  %v14481_v57 = vld [vmem:[#allocation23_spill] sm:$0xff] }
 0x1c5   :  { %v4904_v14 = vcombine.low %v12589_v42, %v12190_v37  ;;  %v4905_v1 = vcombine.low %v12193_v44, %v12391_v2  ;;  %v4906_v11 = vcombine.low %v12394_v9, %v12592_v36  ;;  %v12640_v43 = vrot.slane %v8273_v35, %v11349_v59  ;;  %v10805_v35 = vld [vmem:[%s14295_s3 + $0xb8] sm:$0xff]  }
 0x1c6   :  { %9533 = vmatpush3.bf16.msra.mxu1 %v10803_v18  ;;  %v12628_v3 = vpack.c.bf16 %v14476_v23, %v14473_v31  ;;  %v12631_v18 = vpack.c.bf16 %v4712_v5, %v4711_v33  ;;  %v4721_v20 = vrot.slane %v8398_v51, %v11349_v59  ;;  %v4914_v12 = vrot.slane %v8425_v61, %v11349_v59  ;;  %v14477_v31 = vld [vmem:[#allocation4_spill] sm:$0xff]  ;;  %v14480_v5 = vld [vmem:[#allocation13_spill] sm:$0xff] }
 0x1c7   :  { %9534 = vmatprep.subr.bf16.mxu1 %v14378_v17  ;;  %v14479_v33 = vcombine.low %v14477_v31, %v14478_v7  ;;  %v14482_v23 = vcombine.low %v14480_v5, %v14481_v57  ;;  %v8476_v44 = vcombine.high %v12560_v13, %v12567_v34  ;;  %v12656_v2 = vrot.slane %v3326_v41, %v11349_v59  ;;  %v14488_v31 = vld [vmem:[#allocation24_spill] sm:$0xff] }
 0x1c8   :  { %v12658_v9 = vpack.c.bf16 %v4905_v1, %v4904_v14  ;;  %v5097_v61 = vcombine.low %v12584_v16, %v12197_v39  ;;  %v4722_v13 = vcombine.low %v12381_v49, %v4721_v20  ;;  %v5098_v41 = vcombine.low %v12214_v55, %v12406_v54  ;;  %v14484_v1 = vld [vmem:[#allocation5_spill] sm:$0xff] }
 0x1c9   :  { %v12650_v37 = vpack.c.bf16 %v14482_v23, %v14479_v33  ;;  %9515 = vmatmul.mubr.bf16.gmra.mrb[28].mxu1 %v12321_v27  ;;  %v4915_v27 = vcombine.low %v12596_v40, %v4914_v12  ;;  %v14483_v39 = vcombine.high %v12065_v46, %v14469_v60  ;;  %v5099_v51 = vcombine.low %v12409_v10, %v12601_v6  ;;  %v14485_v49 = vld [vmem:[#allocation17_spill] sm:$0xff]  ;;  %v14487_v12 = vld [vmem:[#allocation19_spill] sm:$0xff] }
 0x1ca   :  { %9535 = vmatpush3.bf16.msra.mxu1 %v10804_v15  ;;  %9518 = vmatprep.mubr.msk.bf16.mxu1 %vm11057_vm0, %v14378_v17  ;;  %v5107_v14 = vrot.slane %v5100_v26, %v11349_v59  ;;  %v14486_v20 = vcombine.low %v14484_v1, %v14485_v49  ;;  %v14489_v7 = vcombine.low %v14487_v12, %v14488_v31  ;;  %v14501_v31 = vld [vmem:[#allocation60_spill] sm:$0xff] }
 0x1cb   :  { %9536 = vmatprep.subr.bf16.mxu1 %v14378_v17  ;;  %v12676_v15 = vrot.slane %v14483_v39, %v11349_v59  ;;  %v12690_v54 = vrot.slane %v8274_v56, %v11349_v59  ;;  %v12692_v33 = vpack.c.bf16 %v4722_v13, %v4713_v8  ;;  %v12694_v5 = vpack.c.bf16 %v4915_v27, %v4906_v11  ;;  %v14490_v39 = vld [vmem:[#allocation72_spill] sm:$0xff]  ;;  %v14491_v8 = vld [vmem:[#allocation66_spill] sm:$0xff]  ;;  %v14494_v27 = vld [vmem:[#allocation7_spill] sm:$0xff] }
 0x1cc   :  { %v12687_v55 = vpack.c.bf16 %v14489_v7, %v14486_v20  ;;  %v12696_v57 = vpack.c.bf16 %v5098_v41, %v5097_v61  ;;  %v5108_v10 = vcombine.low %v12656_v2, %v5107_v14  ;;  %v5291_v23 = vcombine.low %v12220_v48, %v12432_v58  ;;  %v14492_v61 = vld [vmem:[#allocation55_spill] sm:$0xff]  ;;  %v14497_v41 = vld [vmem:[#allocation40_spill] sm:$0xff]  ;;  %v14498_v14 = vld [vmem:[#allocation50_spill] sm:$0xff] }
 0x1cd   :  { %v5290_v26 = vcombine.low %v12676_v15, %v12217_v24  ;;  %v5292_v1 = vcombine.low %v14490_v39, %v12640_v43  ;;  %v5300_v56 = vrot.slane %v8476_v44, %v11349_v59  ;;  %v1809_v11 = vpack.c.bf16 %v14491_v8, %v14491_v8  ;;  %v14495_v48 = vld [vmem:[#allocation39_spill] sm:$0xff]  ;;  %v14504_v39 = vld [vmem:[#allocation18_spill] sm:$0xff] }
 0x1ce   :  { %9537 = vmatpush3.bf16.msra.mxu1 %v10805_v35  ;;  %v14493_v35 = vcombine.low %v14469_v60, %v14492_v61  ;;  %v12715_v24 = vpack.c.bf16 %v5108_v10, %v5099_v51  ;;  %v14496_v58 = vcombine.low %v14494_v27, %v14495_v48  ;;  %v14499_v49 = vcombine.low %v14497_v41, %v14498_v14  ;;  %v14505_v8 = vld [vmem:[#allocation51_spill] sm:$0xff]  ;;  %v10812_v61 = vld [vmem:[%s14295_s3 + $0xf0] sm:$0xff]   ;;  %v10813_v27 = vld [vmem:[%s14295_s3 + $0xf8] sm:$0xff]  }
 0x1cf   :  { %9558 = vmatprep.subr.bf16.mxu1 %v14378_v17  ;;  %v12725_v20 = vpack.c.bf16 %v5291_v23, %v5290_v26  ;;  %v5301_v12 = vcombine.low %v12690_v54, %v5300_v56  ;;  %v5484_v51 = vcombine.low %v14501_v31, %v12466_v53  ;;  %v10806_v26 = vld [vmem:[%s14295_s3 + $0xc0] sm:$0xff]   ;;  %v10808_v53 = vld [vmem:[%s14295_s3 + $0xd0] sm:$0xff]   ;;  %v14510_v31 = vld [vmem:[#allocation35_spill] sm:$0xff] }
 0x1d0   :  { %v12713_v13 = vrot.slane %v14493_v35, %v11349_v59  ;;  %v12723_v44 = vpack.c.bf16 %v14499_v49, %v14496_v58  ;;  %v14503_v23 = vld [vmem:[#allocation2_spill] sm:$0xff]  ;;  %v14506_v35 = vld [vmem:[#allocation65_spill] sm:$0xff]  ;;  %v14507_v48 = vld [vmem:[#allocation68_spill] sm:$0xff] }
 0x1d1   :  { %9519 = vmatmul.mubr.bf16.gmra.mrb[32].mxu1 %v1809_v11  ;;  %v12734_v7 = vpack.c.bf16 %v5301_v12, %v5292_v1  ;;  %v10809_v1 = vld [vmem:[%s14295_s3 + $0xd8] sm:$0xff]   ;;  %v10810_v56 = vld [vmem:[%s14295_s3 + $0xe0] sm:$0xff]   ;;  %v10811_v11 = vld [vmem:[%s14295_s3 + $0xe8] sm:$0xff]   ;;  %v2416_v58 = vpack.c.bf16 %v14507_v48, %v14507_v48 }
 0x1d2   :  { %14500 = vst [vmem:[#allocation20_spill] sm:$0xff] %v12723_v44  ;;  %v5483_v60 = vcombine.low %v12713_v13, %v12243_v47  ;;  %9538 = vmatprep.mubr.msk.bf16.mxu1 %vm11057_vm0, %v14378_v17  ;;  %v10807_v47 = vld [vmem:[%s14295_s3 + $0xc8] sm:$0xff]   ;;  %v10814_v41 = vld [vmem:[%s14295_s3 + $0x100] sm:$0xff]   ;;  %v10816_v12 = vld [vmem:[%s14295_s3 + $0x110] sm:$0xff]  }
 0x1d3   :  { %v14508_v14 = vld [vmem:[#allocation6_spill] sm:$0xff]  ;;  %v10815_v49 = vld [vmem:[%s14295_s3 + $0x108] sm:$0xff]  }
 0x1d4   :  { %v12736_v10 = vpack.c.bf16 %v5484_v51, %v5483_v60  ;;  %v14509_v60 = vld [vmem:[#allocation25_spill] sm:$0xff]  ;;  %v14511_v51 = vld [vmem:[#allocation38_spill] sm:$0xff] }
 0x1d6   :  { %14502 = vst [vmem:[#allocation48_spill] sm:$0xff] %v12736_v10 }
 0x1d9   :  { %9539 = vmatmul.mubr.bf16.vlgmr.msra.gmra.mrb[16].mxu1 %v14503_v23 }
 0x1da   :  { %9559 = vmatpush3.bf16.msra.mxu1 %v10806_v26  ;;  %9542 = vmatprep.mubr.msk.bf16.mxu1 %vm11057_vm0, %v14378_v17  ;;  %v14512_v26 = vcombine.high %v14510_v31, %v14511_v51  ;;  %v14521_v51 = vld [vmem:[#allocation74_spill] sm:$0xff] }
 0x1db   :  { %9560 = vmatprep.subr.bf16.mxu1 %v14378_v17 }
 0x1dc   :  { %v12805_v23 = vrot.slane %v14512_v26, %v11349_v59  ;;  %v574_v26 = vadd.f32 %v12089_v32, %v14521_v51  ;;  %v10824_v51 = vld [vmem:[%s14295_s3 + $0x150] sm:$0xff]  }
 0x1de   :  { %9561 = vmatpush3.bf16.msra.mxu1 %v10807_v47  ;;  %v14513_v47 = vld [vmem:[#allocation41_spill] sm:$0xff] }
 0x1df   :  { %9562 = vmatprep.subr.bf16.mxu1 %v14378_v17 }
 0x1e1   :  { %9543 = vmatmul.mubr.bf16.gmra.mrb[20].mxu1 %v14504_v39 }
 0x1e2   :  { %9563 = vmatpush3.bf16.msra.mxu1 %v10808_v53  ;;  %9546 = vmatprep.mubr.msk.bf16.mxu1 %vm11057_vm0, %v14378_v17  ;;  %v14514_v53 = vld [vmem:[#allocation43_spill] sm:$0xff] }
 0x1e3   :  { %9564 = vmatprep.subr.bf16.mxu1 %v14378_v17  ;;  %v14515_v39 = vcombine.high %v14513_v47, %v14514_v53  ;;  %v10822_v47 = vld [vmem:[%s14295_s3 + $0x140] sm:$0xff]   ;;  %v14522_v53 = vld [vmem:[#allocation75_spill] sm:$0xff] }
 0x1e6   :  { %9565 = vmatpush3.bf16.msra.mxu1 %v10809_v1  ;;  %v12811_v1 = vrot.slane %v14515_v39, %v11349_v59  ;;  %v577_v39 = vadd.f32 %v12089_v32, %v14522_v53 }
 0x1e7   :  { %9566 = vmatprep.subr.bf16.mxu1 %v14378_v17 }
 0x1e9   :  { %9547 = vmatmul.mubr.bf16.gmra.mrb[24].mxu1 %v14505_v8  ;;  %v14516_v8 = vld [vmem:[#allocation15_spill] sm:$0xff] }
 0x1ea   :  { %9567 = vmatpush3.bf16.msra.mxu1 %v10810_v56  ;;  %9550 = vmatprep.mubr.msk.bf16.mxu1 %vm11057_vm0, %v14378_v17  ;;  %v10817_v56 = vld [vmem:[%s14295_s3 + $0x118] sm:$0xff]  }
 0x1eb   :  { %9568 = vmatprep.subr.bf16.mxu1 %v14378_v17 }
 0x1ee   :  { %9569 = vmatpush3.bf16.msra.mxu1 %v10811_v11  ;;  %v14517_v11 = vld [vmem:[#allocation16_spill] sm:$0xff] }
 0x1ef   :  { %9570 = vmatprep.subr.bf16.mxu1 %v14378_v17 }
 0x1f1   :  { %9551 = vmatmul.mubr.bf16.gmra.mrb[28].mxu1 %v14506_v35 }
 0x1f2   :  { %9571 = vmatpush3.bf16.msra.mxu1 %v10812_v61  ;;  %9554 = vmatprep.mubr.msk.bf16.mxu1 %vm11057_vm0, %v14378_v17  ;;  %v14518_v61 = vcombine.high %v14516_v8, %v14517_v11  ;;  %v649_v8 = vmul.f32 0.2, %v574_v26  ;;  %v14523_v11 = vld [vmem:[#allocation8_spill] sm:$0xff] }
 0x1f3   :  { %9572 = vmatprep.subr.bf16.mxu1 %v14378_v17 }
 0x1f4   :  { %v12823_v35 = vrot.slane %v14518_v61, %v11349_v59  ;;  %v14524_v61 = vld [vmem:[#allocation45_spill] sm:$0xff] }
 0x1f6   :  { %9573 = vmatpush3.bf16.msra.mxu1 %v10813_v27  ;;  %v2664_v27 = vcombine.low %v12811_v1, %v12578_v30  ;;  %v2647_v48 = vcombine.low %v12823_v35, %v12805_v23  ;;  %v10819_v30 = vld [vmem:[%s14295_s3 + $0x128] sm:$0xff]  }
 0x1f7   :  { %9594 = vmatprep.subr.bf16.mxu1 %v14378_v17 }
 0x1f9   :  { %9555 = vmatmul.mubr.bf16.gmra.mrb[32].mxu1 %v2416_v58  ;;  %v10818_v58 = vld [vmem:[%s14295_s3 + $0x120] sm:$0xff]  }
 0x1fa   :  { %9574 = vmatprep.mubr.msk.bf16.mxu1 %vm11057_vm0, %v14378_v17 }
 0x201   :  { %9575 = vmatmul.mubr.bf16.vlgmr.msra.gmra.mrb[16].mxu1 %v14508_v14  ;;  %v10820_v14 = vld [vmem:[%s14295_s3 + $0x130] sm:$0xff]  }
 0x202   :  { %9595 = vmatpush3.bf16.msra.mxu1 %v10814_v41  ;;  %9578 = vmatprep.mubr.msk.bf16.mxu1 %vm11057_vm0, %v14378_v17  ;;  %v2727_v41 = vpack.c.bf16 %v2664_v27, %v2647_v48  ;;  %v1204_v27 = vrot.slane %v14524_v61, %v11349_v59  ;;  %v10823_v48 = vld [vmem:[%s14295_s3 + $0x148] sm:$0xff]   ;;  %v14530_v61 = vld [vmem:[#allocation26_spill] sm:$0xff] }
 0x203   :  { %9596 = vmatprep.subr.bf16.mxu1 %v14378_v17 }
 0x206   :  { %9597 = vmatpush3.bf16.msra.mxu1 %v10815_v49  ;;  %v14519_v49 = vld [vmem:[#allocation67_spill] sm:$0xff] }
 0x207   :  { %9598 = vmatprep.subr.bf16.mxu1 %v14378_v17 }
 0x209   :  { %9579 = vmatmul.mubr.bf16.gmra.mrb[20].mxu1 %v14509_v60  ;;  %v14520_v60 = vld [vmem:[#allocation69_spill] sm:$0xff] }
 0x20a   :  { %9599 = vmatpush3.bf16.msra.mxu1 %v10816_v12  ;;  %9582 = vmatprep.mubr.msk.bf16.mxu1 %vm11057_vm0, %v14378_v17  ;;  %v10821_v12 = vld [vmem:[%s14295_s3 + $0x138] sm:$0xff]   ;;  %v2729_v31 = vpack.c.bf16 %v14520_v60, %v14520_v60  ;;  %v14527_v60 = vld [vmem:[#allocation47_spill] sm:$0xff] }
 0x20b   :  { %9600 = vmatprep.subr.bf16.mxu1 %v14378_v17 }
 0x20e   :  { %9601 = vmatpush3.bf16.msra.mxu1 %v10817_v56  ;;  %v1501_v56 = vcombine.high %v12516_v52, %v12516_v52 }
 0x20f   :  { %9602 = vmatprep.subr.bf16.mxu1 %v14378_v17 }
 0x210   :  { %v1515_v52 = vrot.slane %v1501_v56, %v11349_v59 }
 0x211   :  { %9583 = vmatmul.mubr.bf16.gmra.mrb[24].mxu1 %v2727_v41  ;;  %v582_v41 = vadd.f32 %v12089_v32, %v12494_v63  ;;  %v3951_v32 = vcombine.low %v12498_v62, %v12507_v29  ;;  %v10825_v62 = vld [vmem:[%s14295_s3 + $0x158] sm:$0xff]  }
 0x212   :  { %9603 = vmatpush3.bf16.msra.mxu1 %v10818_v58  ;;  %9586 = vmatprep.mubr.msk.bf16.mxu1 %vm11057_vm0, %v14378_v17  ;;  %v650_v58 = vmul.f32 0.2, %v577_v39  ;;  %v3952_v63 = vcombine.low %v12554_v50, %v1515_v52 }
 0x213   :  { %9604 = vmatprep.subr.bf16.mxu1 %v14378_v17  ;;  %v651_v53 = vmul.f32 0.2, %v582_v41 }
 0x215   :  { %v704_v50 = vmax.f32 %v582_v41, %v651_v53 }
 0x216   :  { %9605 = vmatpush3.bf16.msra.mxu1 %v10819_v30  ;;  %v702_v30 = vmax.f32 %v574_v26, %v649_v8  ;;  %v14528_v8 = vld [vmem:[#allocation33_spill] sm:$0xff] }
 0x217   :  { %9606 = vmatprep.subr.bf16.mxu1 %v14378_v17  ;;  %v1642_v41 = vrot.slane %v704_v50, %v11349_v59 }
 0x218   :  { %v1602_v52 = vcombine.high %v702_v30, %v702_v30 }
 0x219   :  { %9587 = vmatmul.mubr.bf16.gmra.mrb[28].mxu1 %v14519_v49 }
 0x21a   :  { %9607 = vmatpush3.bf16.msra.mxu1 %v10820_v14  ;;  %9590 = vmatprep.mubr.msk.bf16.mxu1 %vm11057_vm0, %v14378_v17  ;;  %v14525_v14 = vld [vmem:[#allocation46_spill] sm:$0xff]  ;;  %v1616_v53 = vrot.slane %v1602_v52, %v11349_v59 }
 0x21b   :  { %9608 = vmatprep.subr.bf16.mxu1 %v14378_v17  ;;  %v8200_v49 = vcombine.high %v1204_v27, %v14525_v14 }
 0x21d   :  { %v12888_v26 = vrot.slane %v8200_v49, %v11349_v59  ;;  %v12909_v49 = vrot.slane %v3951_v32, %v11349_v59 }
 0x21e   :  { %9609 = vmatpush3.bf16.msra.mxu1 %v10821_v12  ;;  %v14526_v12 = vld [vmem:[#allocation52_spill] sm:$0xff] }
 0x21f   :  { %9630 = vmatprep.subr.bf16.mxu1 %v14378_v17 }
 0x221   :  { %9591 = vmatmul.mubr.bf16.gmra.mrb[32].mxu1 %v2729_v31  ;;  %v8201_v31 = vcombine.high %v14527_v60, %v14526_v12 }
 0x222   :  { %9610 = vmatprep.mubr.msk.bf16.mxu1 %vm11057_vm0, %v14378_v17 }
 0x223   :  { %v12891_v56 = vrot.slane %v8201_v31, %v11349_v59  ;;  %v12912_v31 = vrot.slane %v3952_v63, %v11349_v59  ;;  %v14532_v63 = vld [vmem:[#allocation77_spill] sm:$0xff] }
 0x224   :  { %v5485_v10 = vcombine.low %v14532_v63, %v12909_v49 }
 0x225   :  { %v2977_v29 = vcombine.low %v12891_v56, %v12589_v42 }
 0x229   :  { %9611 = vmatmul.mubr.bf16.vlgmr.msra.gmra.mrb[16].mxu1 %v14523_v11  ;;  %v1609_v11 = vrot.slane %v702_v30, %v11349_v59  ;;  %v10826_v30 = vld [vmem:[%s14295_s3 + $0x160] sm:$0xff]  }
 0x22a   :  { %9631 = vmatpush3.bf16.msra.mxu1 %v10822_v47  ;;  %9614 = vmatprep.mubr.msk.bf16.mxu1 %vm11057_vm0, %v14378_v17  ;;  %v703_v47 = vmax.f32 %v577_v39, %v650_v58  ;;  %v14529_v39 = vld [vmem:[#allocation27_spill] sm:$0xff] }
 0x22b   :  { %9632 = vmatprep.subr.bf16.mxu1 %v14378_v17  ;;  %v14531_v27 = vcombine.high %v14529_v39, %v14530_v61  ;;  %v5109_v52 = vcombine.low %v1609_v11, %v1616_v53 }
 0x22c   :  { %v1619_v58 = vcombine.high %v703_v47, %v703_v47  ;;  %v1626_v32 = vrot.slane %v703_v47, %v11349_v59  ;;  %v8426_v47 = vcombine.high %v12567_v34, %v1609_v11 }
 0x22d   :  { %v5117_v63 = vrot.slane %v5109_v52, %v11349_v59  ;;  %v3028_v52 = vcombine.low %v12592_v36, %v12596_v40  ;;  %v10831_v36 = vld [vmem:[%s14295_s3 + $0x188] sm:$0xff]   ;;  %v10832_v40 = vld [vmem:[%s14295_s3 + $0x190] sm:$0xff]  }
 0x22e   :  { %9633 = vmatpush3.bf16.msra.mxu1 %v10823_v48  ;;  %v12898_v48 = vrot.slane %v14531_v27, %v11349_v59  ;;  %v1633_v27 = vrot.slane %v1619_v58, %v11349_v59  ;;  %v8427_v50 = vcombine.high %v1616_v53, %v1626_v32 }
 0x22f   :  { %9634 = vmatprep.subr.bf16.mxu1 %v14378_v17 }
 0x231   :  { %9615 = vmatmul.mubr.bf16.gmra.mrb[20].mxu1 %v14528_v8  ;;  %v2960_v8 = vcombine.low %v12898_v48, %v12888_v26 }
 0x232   :  { %9635 = vmatpush3.bf16.msra.mxu1 %v10824_v51  ;;  %9618 = vmatprep.mubr.msk.bf16.mxu1 %vm11057_vm0, %v14378_v17  ;;  %v5486_v51 = vcombine.low %v12567_v34, %v1609_v11 }
 0x233   :  { %9636 = vmatprep.subr.bf16.mxu1 %v14378_v17  ;;  %v3040_v42 = vpack.c.bf16 %v2977_v29, %v2960_v8  ;;  %v10827_v29 = vld [vmem:[%s14295_s3 + $0x168] sm:$0xff]   ;;  %v5110_v8 = vcombine.low %v1626_v32, %v1633_v27 }
 0x234   :  { %v5493_v39 = vrot.slane %v5486_v51, %v11349_v59 }
 0x236   :  { %9637 = vmatpush3.bf16.msra.mxu1 %v10825_v62  ;;  %v5494_v51 = vcombine.low %v12912_v31, %v5493_v39  ;;  %v5496_v62 = vcombine.low %v1633_v27, %v1642_v41  ;;  %v8477_v39 = vcombine.high %v1609_v11, %v1616_v53  ;;  %v4924_v41 = vrot.slane %v8426_v47, %v11349_v59 }
 0x237   :  { %9638 = vmatprep.subr.bf16.mxu1 %v14378_v17 }
 0x238   :  { %v12929_v58 = vpack.c.bf16 %v5494_v51, %v5485_v10  ;;  %v5495_v10 = vcombine.low %v1616_v53, %v1626_v32  ;;  %v5124_v51 = vrot.slane %v5110_v8, %v11349_v59  ;;  %v5310_v34 = vrot.slane %v8477_v39, %v11349_v59  ;;  %v14535_v8 = vld [vmem:[#allocation11_spill] sm:$0xff]  ;;  %v14536_v39 = vld [vmem:[#allocation28_spill] sm:$0xff] }
 0x239   :  { %9619 = vmatmul.mubr.bf16.gmra.mrb[24].mxu1 %v3040_v42  ;;  %v8478_v42 = vcombine.high %v1626_v32, %v1633_v27  ;;  %v5510_v27 = vrot.slane %v5496_v62, %v11349_v59  ;;  %v10829_v62 = vld [vmem:[%s14295_s3 + $0x178] sm:$0xff]  }
 0x23a   :  { %14533 = vst [vmem:[#allocation42_spill] sm:$0xff] %v12929_v58  ;;  %9639 = vmatpush3.bf16.msra.mxu1 %v10826_v30  ;;  %9622 = vmatprep.mubr.msk.bf16.mxu1 %vm11057_vm0, %v14378_v17  ;;  %v4931_v30 = vrot.slane %v8427_v50, %v11349_v59  ;;  %v10828_v58 = vld [vmem:[%s14295_s3 + $0x170] sm:$0xff]   ;;  %v5503_v11 = vrot.slane %v5495_v10, %v11349_v59  ;;  %v14534_v50 = vld [vmem:[#allocation70_spill] sm:$0xff] }
 0x23b   :  { %9640 = vmatprep.subr.bf16.mxu1 %v14378_v17  ;;  %v5317_v44 = vrot.slane %v8478_v42, %v11349_v59  ;;  %v12952_v32 = vcombine.low %v5117_v63, %v5124_v51  ;;  %v3257_v42 = vcombine.low %v14530_v61, %v14536_v39  ;;  %v14537_v10 = vld [vmem:[#allocation36_spill] sm:$0xff]  ;;  %v14539_v63 = vcombine.low %v14526_v12, %v12054_v0 }
 0x23c   :  { %v12950_v53 = vcombine.low %v4924_v41, %v4931_v30  ;;  %v14538_v41 = vcombine.low %v14525_v14, %v14527_v60 }
 0x23d   :  { %v12954_v47 = vcombine.low %v5310_v34, %v5317_v44  ;;  %v3042_v44 = vpack.c.bf16 %v3028_v52, %v3028_v52  ;;  %v12997_v51 = vrot.slane %v14539_v63, %v11349_v59  ;;  %v10833_v34 = vld [vmem:[%s14295_s3 + $0x198] sm:$0xff]   ;;  %v14543_v63 = vcombine.high %v14525_v14, %v14527_v60 }
 0x23e   :  { %9641 = vmatpush3.bf16.msra.mxu1 %v10827_v29  ;;  %v12956_v29 = vcombine.low %v5503_v11, %v5510_v27  ;;  %v12991_v30 = vrot.slane %v14538_v41, %v11349_v59  ;;  %v13006_v11 = vrot.slane %v3257_v42, %v11349_v59  ;;  %v10838_v42 = vld [vmem:[%s14295_s3 + $0x1c0] sm:$0xff]   ;;  %v14542_v41 = vld [vmem:[#allocation37_spill] sm:$0xff]  ;;  %v14545_v14 = vcombine.high %v14530_v61, %v14536_v39  ;;  %v10844_v61 = vld [vmem:[%s14295_s3 + $0x1f0] sm:$0xff]  }
 0x23f   :  { %9642 = vmatprep.subr.bf16.mxu1 %v14378_v17  ;;  %v3290_v27 = vcombine.low %v12997_v51, %v12584_v16  ;;  %v10835_v16 = vld [vmem:[%s14295_s3 + $0x1a8] sm:$0xff]   ;;  %v14546_v39 = vld [vmem:[#allocation76_spill] sm:$0xff] }
 0x241   :  { %9623 = vmatmul.mubr.bf16.gmra.mrb[28].mxu1 %v14534_v50  ;;  %v3273_v50 = vcombine.low %v13006_v11, %v12991_v30 }
 0x242   :  { %9643 = vmatpush3.bf16.msra.mxu1 %v10828_v58  ;;  %9626 = vmatprep.mubr.msk.bf16.mxu1 %vm11057_vm0, %v14378_v17  ;;  %v10830_v58 = vld [vmem:[%s14295_s3 + $0x180] sm:$0xff]  }
 0x243   :  { %9644 = vmatprep.subr.bf16.mxu1 %v14378_v17  ;;  %v3353_v52 = vpack.c.bf16 %v3290_v27, %v3273_v50  ;;  %v14544_v27 = vcombine.high %v14526_v12, %v12054_v0 }
 0x245   :  { %v13063_v50 = vrot.slane %v14544_v27, %v11349_v59  ;;  %v14550_v27 = vcombine.low %v12054_v0, %v12065_v46  ;;  %v10850_v46 = vld [vmem:[%s14295_s3 + $0x220] sm:$0xff]  }
 0x246   :  { %9645 = vmatpush3.bf16.msra.mxu1 %v10829_v62  ;;  %v10834_v62 = vld [vmem:[%s14295_s3 + $0x1a0] sm:$0xff]  }
 0x247   :  { %9666 = vmatprep.subr.bf16.mxu1 %v14378_v17 }
 0x249   :  { %9627 = vmatmul.mubr.bf16.gmra.mrb[32].mxu1 %v3042_v44  ;;  %v10836_v44 = vld [vmem:[%s14295_s3 + $0x1b0] sm:$0xff]  }
 0x24a   :  { %9646 = vmatprep.mubr.msk.bf16.mxu1 %vm11057_vm0, %v14378_v17 }
 0x251   :  { %9647 = vmatmul.mubr.bf16.vlgmr.msra.gmra.mrb[16].mxu1 %v14535_v8  ;;  %v10837_v8 = vld [vmem:[%s14295_s3 + $0x1b8] sm:$0xff]  }
 0x252   :  { %9667 = vmatpush3.bf16.msra.mxu1 %v10830_v58  ;;  %9650 = vmatprep.mubr.msk.bf16.mxu1 %vm11057_vm0, %v14378_v17  ;;  %v14540_v58 = vld [vmem:[#allocation71_spill] sm:$0xff] }
 0x253   :  { %9668 = vmatprep.subr.bf16.mxu1 %v14378_v17 }
 0x256   :  { %9669 = vmatpush3.bf16.msra.mxu1 %v10831_v36  ;;  %v3341_v36 = vcombine.low %v12601_v6, %v12656_v2  ;;  %v10839_v6 = vld [vmem:[%s14295_s3 + $0x1c8] sm:$0xff]   ;;  %v10840_v2 = vld [vmem:[%s14295_s3 + $0x1d0] sm:$0xff]  }
 0x257   :  { %9670 = vmatprep.subr.bf16.mxu1 %v14378_v17 }
 0x259   :  { %9651 = vmatmul.mubr.bf16.gmra.mrb[20].mxu1 %v14537_v10  ;;  %v14541_v10 = vld [vmem:[#allocation14_spill] sm:$0xff] }
 0x25a   :  { %9671 = vmatpush3.bf16.msra.mxu1 %v10832_v40  ;;  %9654 = vmatprep.mubr.msk.bf16.mxu1 %vm11057_vm0, %v14378_v17  ;;  %v3355_v40 = vpack.c.bf16 %v3341_v36, %v3341_v36  ;;  %v10845_v36 = vld [vmem:[%s14295_s3 + $0x1f8] sm:$0xff]  }
 0x25b   :  { %9672 = vmatprep.subr.bf16.mxu1 %v14378_v17 }
 0x25e   :  { %9673 = vmatpush3.bf16.msra.mxu1 %v10833_v34  ;;  %v13057_v34 = vrot.slane %v14543_v63, %v11349_v59 }
 0x25f   :  { %9674 = vmatprep.subr.bf16.mxu1 %v14378_v17 }
 0x261   :  { %9655 = vmatmul.mubr.bf16.gmra.mrb[24].mxu1 %v3353_v52  ;;  %v13075_v52 = vrot.slane %v14545_v14, %v11349_v59  ;;  %v10849_v14 = vld [vmem:[%s14295_s3 + $0x218] sm:$0xff]  }
 0x262   :  { %9675 = vmatpush3.bf16.msra.mxu1 %v10834_v62  ;;  %9658 = vmatprep.mubr.msk.bf16.mxu1 %vm11057_vm0, %v14378_v17  ;;  %v10841_v62 = vld [vmem:[%s14295_s3 + $0x1d8] sm:$0xff]  }
 0x263   :  { %9676 = vmatprep.subr.bf16.mxu1 %v14378_v17 }
 0x266   :  { %9677 = vmatpush3.bf16.msra.mxu1 %v10835_v16  ;;  %v3603_v16 = vcombine.low %v13063_v50, %v12676_v15  ;;  %v10843_v15 = vld [vmem:[%s14295_s3 + $0x1e8] sm:$0xff]  }
 0x267   :  { %9678 = vmatprep.subr.bf16.mxu1 %v14378_v17 }
 0x269   :  { %9659 = vmatmul.mubr.bf16.gmra.mrb[28].mxu1 %v14540_v58  ;;  %v10842_v58 = vld [vmem:[%s14295_s3 + $0x1e0] sm:$0xff]  }
 0x26a   :  { %9679 = vmatpush3.bf16.msra.mxu1 %v10836_v44  ;;  %9662 = vmatprep.mubr.msk.bf16.mxu1 %vm11057_vm0, %v14378_v17  ;;  %v3586_v44 = vcombine.low %v13075_v52, %v13057_v34 }
 0x26b   :  { %9680 = vmatprep.subr.bf16.mxu1 %v14378_v17 }
 0x26e   :  { %9681 = vmatpush3.bf16.msra.mxu1 %v10837_v8  ;;  %v3666_v8 = vpack.c.bf16 %v3603_v16, %v3586_v44 }
 0x26f   :  { %9702 = vmatprep.subr.bf16.mxu1 %v14378_v17 }
 0x271   :  { %9663 = vmatmul.mubr.bf16.gmra.mrb[32].mxu1 %v3355_v40  ;;  %v3654_v40 = vcombine.low %v12640_v43, %v12690_v54  ;;  %v10847_v43 = vld [vmem:[%s14295_s3 + $0x208] sm:$0xff]   ;;  %v10848_v54 = vld [vmem:[%s14295_s3 + $0x210] sm:$0xff]  }
 0x272   :  { %9682 = vmatprep.mubr.msk.bf16.mxu1 %vm11057_vm0, %v14378_v17 }
 0x279   :  { %9683 = vmatmul.mubr.bf16.vlgmr.msra.gmra.mrb[16].mxu1 %v14541_v10  ;;  %v10846_v10 = vld [vmem:[%s14295_s3 + $0x200] sm:$0xff]  }
 0x27a   :  { %9703 = vmatpush3.bf16.msra.mxu1 %v10838_v42  ;;  %9686 = vmatprep.mubr.msk.bf16.mxu1 %vm11057_vm0, %v14378_v17  ;;  %v3668_v42 = vpack.c.bf16 %v3654_v40, %v3654_v40  ;;  %v10855_v40 = vld [vmem:[%s14295_s3 + $0x248] sm:$0xff]  }
 0x27b   :  { %9704 = vmatprep.subr.bf16.mxu1 %v14378_v17 }
 0x27e   :  { %9705 = vmatpush3.bf16.msra.mxu1 %v10839_v6  ;;  %v14547_v6 = vld [vmem:[#allocation29_spill] sm:$0xff] }
 0x27f   :  { %9706 = vmatprep.subr.bf16.mxu1 %v14378_v17 }
 0x281   :  { %9687 = vmatmul.mubr.bf16.gmra.mrb[20].mxu1 %v14542_v41  ;;  %v14549_v41 = vcombine.low %v14527_v60, %v14526_v12  ;;  %v14551_v12 = vld [vmem:[#allocation34_spill] sm:$0xff] }
 0x282   :  { %9707 = vmatpush3.bf16.msra.mxu1 %v10840_v2  ;;  %9690 = vmatprep.mubr.msk.bf16.mxu1 %vm11057_vm0, %v14378_v17  ;;  %v14548_v2 = vld [vmem:[#allocation53_spill] sm:$0xff]  ;;  %v13142_v60 = vrot.slane %v14551_v12, %v11349_v59 }
 0x283   :  { %9708 = vmatprep.subr.bf16.mxu1 %v14378_v17  ;;  %v13126_v63 = vrot.slane %v14549_v41, %v11349_v59 }
 0x285   :  { %v3899_v0 = vcombine.low %v13142_v60, %v13126_v63 }
 0x286   :  { %9709 = vmatpush3.bf16.msra.mxu1 %v10841_v62  ;;  %v13132_v62 = vrot.slane %v14550_v27, %v11349_v59 }
 0x287   :  { %9710 = vmatprep.subr.bf16.mxu1 %v14378_v17 }
 0x288   :  { %v3916_v16 = vcombine.low %v13132_v62, %v12713_v13  ;;  %v10851_v13 = vld [vmem:[%s14295_s3 + $0x228] sm:$0xff]  }
 0x289   :  { %9691 = vmatmul.mubr.bf16.gmra.mrb[24].mxu1 %v3666_v8  ;;  %v10853_v8 = vld [vmem:[%s14295_s3 + $0x238] sm:$0xff]  }
 0x28a   :  { %9711 = vmatpush3.bf16.msra.mxu1 %v10842_v58  ;;  %9694 = vmatprep.mubr.msk.bf16.mxu1 %vm11057_vm0, %v14378_v17  ;;  %v3979_v44 = vpack.c.bf16 %v3916_v16, %v3899_v0  ;;  %v10852_v58 = vld [vmem:[%s14295_s3 + $0x230] sm:$0xff]  }
 0x28b   :  { %9712 = vmatprep.subr.bf16.mxu1 %v14378_v17 }
 0x28e   :  { %9713 = vmatpush3.bf16.msra.mxu1 %v10843_v15  ;;  %v3967_v15 = vcombine.low %v12909_v49, %v12912_v31  ;;  %v14553_v31 = vld [vmem:[#allocation56_spill] sm:$0xff] }
 0x28f   :  { %9714 = vmatprep.subr.bf16.mxu1 %v14378_v17 }
 0x291   :  { %9695 = vmatmul.mubr.bf16.gmra.mrb[28].mxu1 %v14546_v39  ;;  %v11055_v39 = vld [vmem:[%s14296_s2] ss:$0 sm:$0xff] }
 0x292   :  { %9715 = vmatpush3.bf16.msra.mxu1 %v10844_v61  ;;  %9698 = vmatprep.mubr.msk.bf16.mxu1 %vm11057_vm0, %v14378_v17  ;;  %v3981_v61 = vpack.c.bf16 %v3967_v15, %v3967_v15 }
 0x293   :  { %9716 = vmatprep.subr.bf16.mxu1 %v14378_v17 }
 0x296   :  { %9717 = vmatpush3.bf16.msra.mxu1 %v10845_v36  ;;  %v14552_v36 = vld [vmem:[#allocation73_spill] sm:$0xff] }
 0x297   :  { %9738 = vmatprep.subr.bf16.mxu1 %v14378_v17  ;;  %v561_v49 = vadd.f32 %v11055_v39, %v14552_v36 }
 0x299   :  { %9699 = vmatmul.mubr.bf16.gmra.mrb[32].mxu1 %v3668_v42  ;;  %v646_v42 = vmul.f32 0.2, %v561_v49 }
 0x29a   :  { %9718 = vmatprep.mubr.msk.bf16.mxu1 %vm11057_vm0, %v14378_v17 }
 0x2a1   :  { %9719 = vmatmul.mubr.bf16.vlgmr.msra.gmra.mrb[16].mxu1 %v14547_v6  ;;  %v699_v6 = vmax.f32 %v561_v49, %v646_v42  ;;  %v14557_v49 = vld [vmem:[#allocation59_spill] sm:$0xff]  ;;  %v14558_v42 = vld [vmem:[#allocation61_spill] sm:$0xff] }
 0x2a2   :  { %9739 = vmatpush3.bf16.msra.mxu1 %v10846_v10  ;;  %9722 = vmatprep.mubr.msk.bf16.mxu1 %vm11057_vm0, %v14378_v17  ;;  %v10856_v10 = vld [vmem:[%s14295_s3 + $0x250] sm:$0xff]  }
 0x2a3   :  { %9740 = vmatprep.subr.bf16.mxu1 %v14378_v17  ;;  %v1551_v27 = vcombine.high %v699_v6, %v699_v6  ;;  %v13208_v16 = vrot.slane %v699_v6, %v11349_v59  ;;  %v10866_v6 = vld [vmem:[%s14295_s3 + $0x2a0] sm:$0xff]  }
 0x2a5   :  { %v13211_v0 = vrot.slane %v1551_v27, %v11349_v59  ;;  %v10868_v27 = vld [vmem:[%s14295_s3 + $0x2b0] sm:$0xff]  }
 0x2a6   :  { %9741 = vmatpush3.bf16.msra.mxu1 %v10847_v43  ;;  %v14554_v43 = vld [vmem:[#allocation57_spill] sm:$0xff] }
 0x2a7   :  { %9742 = vmatprep.subr.bf16.mxu1 %v14378_v17 }
 0x2a9   :  { %9723 = vmatmul.mubr.bf16.gmra.mrb[20].mxu1 %v14548_v2  ;;  %v14555_v2 = vld [vmem:[#allocation78_spill] sm:$0xff] }
 0x2aa   :  { %9743 = vmatpush3.bf16.msra.mxu1 %v10848_v54  ;;  %9726 = vmatprep.mubr.msk.bf16.mxu1 %vm11057_vm0, %v14378_v17  ;;  %v10857_v54 = vld [vmem:[%s14295_s3 + $0x258] sm:$0xff]   ;;  %v1534_v41 = vcombine.high %v14555_v2, %v14555_v2 }
 0x2ab   :  { %9744 = vmatprep.subr.bf16.mxu1 %v14378_v17 }
 0x2ac   :  { %v13205_v12 = vrot.slane %v1534_v41, %v11349_v59  ;;  %v8349_v41 = vcombine.high %v13208_v16, %v13211_v0 }
 0x2ae   :  { %9745 = vmatpush3.bf16.msra.mxu1 %v10849_v14  ;;  %v10858_v14 = vld [vmem:[%s14295_s3 + $0x260] sm:$0xff]   ;;  %v8348_v2 = vcombine.high %v12511_v4, %v13205_v12 }
 0x2af   :  { %9746 = vmatprep.subr.bf16.mxu1 %v14378_v17 }
 0x2b1   :  { %9727 = vmatmul.mubr.bf16.gmra.mrb[24].mxu1 %v3979_v44  ;;  %v10859_v44 = vld [vmem:[%s14295_s3 + $0x268] sm:$0xff]  }
 0x2b2   :  { %9747 = vmatpush3.bf16.msra.mxu1 %v10850_v46  ;;  %9730 = vmatprep.mubr.msk.bf16.mxu1 %vm11057_vm0, %v14378_v17  ;;  %v14556_v46 = vld [vmem:[#allocation58_spill] sm:$0xff] }
 0x2b3   :  { %9748 = vmatprep.subr.bf16.mxu1 %v14378_v17 }
 0x2b6   :  { %9749 = vmatpush3.bf16.msra.mxu1 %v10851_v13  ;;  %v4144_v13 = vcombine.low %v12511_v4, %v13205_v12  ;;  %v10869_v4 = vld [vmem:[%s14295_s3 + $0x2b8] sm:$0xff]  }
 0x2b7   :  { %9750 = vmatprep.subr.bf16.mxu1 %v14378_v17 }
 0x2b8   :  { %v4152_v15 = vrot.slane %v4144_v13, %v11349_v59 }
 0x2b9   :  { %9731 = vmatmul.mubr.bf16.gmra.mrb[28].mxu1 %v12487_v45  ;;  %v10854_v45 = vld [vmem:[%s14295_s3 + $0x240] sm:$0xff]  }
 0x2ba   :  { %9751 = vmatpush3.bf16.msra.mxu1 %v10852_v58  ;;  %9734 = vmatprep.mubr.msk.bf16.mxu1 %vm11057_vm0, %v14378_v17  ;;  %v4145_v58 = vcombine.low %v13208_v16, %v13211_v0 }
 0x2bb   :  { %9752 = vmatprep.subr.bf16.mxu1 %v14378_v17 }
 0x2be   :  { %9753 = vmatpush3.bf16.msra.mxu1 %v10853_v8  ;;  %v10860_v8 = vld [vmem:[%s14295_s3 + $0x270] sm:$0xff]  }
 0x2bf   :  { %9774 = vmatprep.subr.bf16.mxu1 %v14378_v17 }
 0x2c1   :  { %9735 = vmatmul.mubr.bf16.gmra.mrb[32].mxu1 %v3981_v61  ;;  %v4159_v61 = vrot.slane %v4145_v58, %v11349_v59  ;;  %v14560_v58 = vld [vmem:[#allocation62_spill] sm:$0xff] }
 0x2c2   :  { %9754 = vmatprep.mubr.msk.bf16.mxu1 %vm11057_vm0, %v14378_v17 }
 0x2c3   :  { %v4160_v39 = vcombine.low %v4152_v15, %v4159_v61  ;;  %v10872_v15 = vld [vmem:[%s14295_s3 + $0x2d0] sm:$0xff]  }
 0x2c4   :  { %v14561_v61 = vld [vmem:[#allocation64_spill] sm:$0xff] }
 0x2c5   :  { %v4174_v36 = vpack.c.bf16 %v4160_v39, %v4160_v39  ;;  %v10874_v39 = vld [vmem:[%s14295_s3 + $0x2e0] sm:$0xff]  }
 0x2c9   :  { %9755 = vmatmul.mubr.bf16.vlgmr.msra.gmra.mrb[16].mxu1 %v14553_v31  ;;  %v10863_v31 = vld [vmem:[%s14295_s3 + $0x288] sm:$0xff]  }
 0x2ca   :  { %9775 = vmatpush3.bf16.msra.mxu1 %v10854_v45  ;;  %9758 = vmatprep.mubr.msk.bf16.mxu1 %vm11057_vm0, %v14378_v17  ;;  %v10861_v45 = vld [vmem:[%s14295_s3 + $0x278] sm:$0xff]  }
 0x2cb   :  { %9776 = vmatprep.subr.bf16.mxu1 %v14378_v17 }
 0x2ce   :  { %9777 = vmatpush3.bf16.msra.mxu1 %v10855_v40  ;;  %v10864_v40 = vld [vmem:[%s14295_s3 + $0x290] sm:$0xff]  }
 0x2cf   :  { %9778 = vmatprep.subr.bf16.mxu1 %v14378_v17 }
 0x2d1   :  { %9759 = vmatmul.mubr.bf16.gmra.mrb[20].mxu1 %v14554_v43  ;;  %v14559_v43 = vld [vmem:[#allocation63_spill] sm:$0xff] }
 0x2d2   :  { %9779 = vmatpush3.bf16.msra.mxu1 %v10856_v10  ;;  %9762 = vmatprep.mubr.msk.bf16.mxu1 %vm11057_vm0, %v14378_v17  ;;  %v10865_v10 = vld [vmem:[%s14295_s3 + $0x298] sm:$0xff]  }
 0x2d3   :  { %9780 = vmatprep.subr.bf16.mxu1 %v14378_v17 }
 0x2d6   :  { %9781 = vmatpush3.bf16.msra.mxu1 %v10857_v54  ;;  %v10867_v54 = vld [vmem:[%s14295_s3 + $0x2a8] sm:$0xff]  }
 0x2d7   :  { %9782 = vmatprep.subr.bf16.mxu1 %v14378_v17 }
 0x2d9   :  { %9763 = vmatmul.mubr.bf16.gmra.mrb[24].mxu1 %v14556_v46  ;;  %v4352_v46 = vrot.slane %v8349_v41, %v11349_v59 }
 0x2da   :  { %9783 = vmatpush3.bf16.msra.mxu1 %v10858_v14  ;;  %9766 = vmatprep.mubr.msk.bf16.mxu1 %vm11057_vm0, %v14378_v17  ;;  %v4345_v14 = vrot.slane %v8348_v2, %v11349_v59  ;;  %v14562_v2 = vld [vmem:[#allocation21_spill] sm:$0xff] }
 0x2db   :  { %9784 = vmatprep.subr.bf16.mxu1 %v14378_v17  ;;  %v4709_v41 = vcombine.low %v14562_v2, %v12823_v35  ;;  %v10883_v35 = vld [vmem:[%s14295_s3 + $0x328] sm:$0xff]  }
 0x2de   :  { %9785 = vmatpush3.bf16.msra.mxu1 %v10859_v44  ;;  %v4353_v44 = vcombine.low %v4345_v14, %v4352_v46  ;;  %v8399_v46 = vcombine.high %v13205_v12, %v13208_v16 }
 0x2df   :  { %9786 = vmatprep.subr.bf16.mxu1 %v14378_v17 }
 0x2e0   :  { %v4367_v13 = vpack.c.bf16 %v4353_v44, %v4353_v44 }
 0x2e1   :  { %9767 = vmatmul.mubr.bf16.gmra.mrb[28].mxu1 %v12514_v25  ;;  %v10862_v25 = vld [vmem:[%s14295_s3 + $0x280] sm:$0xff]  }
 0x2e2   :  { %9787 = vmatpush3.bf16.msra.mxu1 %v10860_v8  ;;  %9770 = vmatprep.mubr.msk.bf16.mxu1 %vm11057_vm0, %v14378_v17  ;;  %v10871_v8 = vld [vmem:[%s14295_s3 + $0x2c8] sm:$0xff]  }
 0x2e3   :  { %9788 = vmatprep.subr.bf16.mxu1 %v14378_v17 }
 0x2e6   :  { %9789 = vmatpush3.bf16.msra.mxu1 %v10861_v45  ;;  %v10873_v45 = vld [vmem:[%s14295_s3 + $0x2d8] sm:$0xff]  }
 0x2e7   :  { %9810 = vmatprep.subr.bf16.mxu1 %v14378_v17 }
 0x2e9   :  { %9771 = vmatmul.mubr.bf16.gmra.mrb[32].mxu1 %v4174_v36  ;;  %v1575_v36 = vrot.slane %v12518_v38, %v11349_v59  ;;  %v10876_v38 = vld [vmem:[%s14295_s3 + $0x2f0] sm:$0xff]  }
 0x2ea   :  { %9790 = vmatprep.mubr.msk.bf16.mxu1 %vm11057_vm0, %v14378_v17 }
 0x2eb   :  { %v8400_v14 = vcombine.high %v13211_v0, %v1575_v36 }
 0x2ed   :  { %v4738_v44 = vrot.slane %v8400_v14, %v11349_v59  ;;  %v10917_v14 = vld [vmem:[%s14297_s6 + $0x78] sm:$0xff]  }
 0x2f1   :  { %9791 = vmatmul.mubr.bf16.vlgmr.msra.gmra.mrb[16].mxu1 %v14557_v49  ;;  %v4531_v49 = vcombine.low %v13211_v0, %v1575_v36  ;;  %v4946_v36 = vpack.c.bf16 %v12950_v53, %v12950_v53  ;;  %v10895_v53 = vld [vmem:[%s14295_s3 + $0x388] sm:$0xff]  }
 0x2f2   :  { %9811 = vmatpush3.bf16.msra.mxu1 %v10862_v25  ;;  %9794 = vmatprep.mubr.msk.bf16.mxu1 %vm11057_vm0, %v14378_v17  ;;  %v10875_v25 = vld [vmem:[%s14295_s3 + $0x2e8] sm:$0xff]  }
 0x2f3   :  { %9812 = vmatprep.subr.bf16.mxu1 %v14378_v17 }
 0x2f6   :  { %9813 = vmatpush3.bf16.msra.mxu1 %v10863_v31  ;;  %v4530_v31 = vcombine.low %v13205_v12, %v13208_v16  ;;  %v10885_v12 = vld [vmem:[%s14295_s3 + $0x338] sm:$0xff]  }
 0x2f7   :  { %9814 = vmatprep.subr.bf16.mxu1 %v14378_v17 }
 0x2f9   :  { %9795 = vmatmul.mubr.bf16.gmra.mrb[20].mxu1 %v14558_v42  ;;  %v10877_v42 = vld [vmem:[%s14295_s3 + $0x2f8] sm:$0xff]  }
 0x2fa   :  { %9815 = vmatpush3.bf16.msra.mxu1 %v10864_v40  ;;  %9798 = vmatprep.mubr.msk.bf16.mxu1 %vm11057_vm0, %v14378_v17  ;;  %v4545_v40 = vrot.slane %v4531_v49, %v11349_v59  ;;  %v10894_v49 = vld [vmem:[%s14295_s3 + $0x380] sm:$0xff]  }
 0x2fb   :  { %9816 = vmatprep.subr.bf16.mxu1 %v14378_v17 }
 0x2fe   :  { %9817 = vmatpush3.bf16.msra.mxu1 %v10865_v10 }
 0x2ff   :  { %9818 = vmatprep.subr.bf16.mxu1 %v14378_v17 }
 0x301   :  { %9799 = vmatmul.mubr.bf16.gmra.mrb[24].mxu1 %v14559_v43  ;;  %v10879_v43 = vld [vmem:[%s14295_s3 + $0x308] sm:$0xff]  }
 0x302   :  { %9819 = vmatpush3.bf16.msra.mxu1 %v10866_v6  ;;  %9802 = vmatprep.mubr.msk.bf16.mxu1 %vm11057_vm0, %v14378_v17 }
 0x303   :  { %9820 = vmatprep.subr.bf16.mxu1 %v14378_v17 }
 0x306   :  { %9821 = vmatpush3.bf16.msra.mxu1 %v10867_v54  ;;  %v4710_v54 = vcombine.low %v12805_v23, %v12811_v1  ;;  %v10881_v23 = vld [vmem:[%s14295_s3 + $0x318] sm:$0xff]   ;;  %v10882_v1 = vld [vmem:[%s14295_s3 + $0x320] sm:$0xff]  }
 0x307   :  { %9822 = vmatprep.subr.bf16.mxu1 %v14378_v17 }
 0x309   :  { %9803 = vmatmul.mubr.bf16.gmra.mrb[28].mxu1 %v12563_v22  ;;  %v10870_v22 = vld [vmem:[%s14295_s3 + $0x2c0] sm:$0xff]  }
 0x30a   :  { %9823 = vmatpush3.bf16.msra.mxu1 %v10868_v27  ;;  %9806 = vmatprep.mubr.msk.bf16.mxu1 %vm11057_vm0, %v14378_v17  ;;  %v4750_v27 = vpack.c.bf16 %v4710_v54, %v4709_v41  ;;  %v10909_v41 = vld [vmem:[%s14295_s3 + $0x3f8] sm:$0xff]  }
 0x30b   :  { %9824 = vmatprep.subr.bf16.mxu1 %v14378_v17 }
 0x30e   :  { %9825 = vmatpush3.bf16.msra.mxu1 %v10869_v4  ;;  %v4731_v4 = vrot.slane %v8399_v46, %v11349_v59 }
 0x30f   :  { %9846 = vmatprep.subr.bf16.mxu1 %v14378_v17 }
 0x310   :  { %v4739_v16 = vcombine.low %v4731_v4, %v4738_v44 }
 0x311   :  { %9807 = vmatmul.mubr.bf16.gmra.mrb[32].mxu1 %v4367_v13  ;;  %v10887_v13 = vld [vmem:[%s14295_s3 + $0x348] sm:$0xff]  }
 0x312   :  { %9826 = vmatprep.mubr.msk.bf16.mxu1 %vm11057_vm0, %v14378_v17  ;;  %v4753_v0 = vpack.c.bf16 %v4739_v16, %v4739_v16 }
 0x319   :  { %9827 = vmatmul.mubr.bf16.vlgmr.msra.gmra.mrb[16].mxu1 %v14560_v58  ;;  %v14563_v58 = vld [vmem:[#allocation30_spill] sm:$0xff] }
 0x31a   :  { %9847 = vmatpush3.bf16.msra.mxu1 %v10870_v22  ;;  %9830 = vmatprep.mubr.msk.bf16.mxu1 %vm11057_vm0, %v14378_v17  ;;  %v4903_v22 = vcombine.low %v12888_v26, %v12891_v56  ;;  %v10889_v26 = vld [vmem:[%s14295_s3 + $0x358] sm:$0xff]   ;;  %v10890_v56 = vld [vmem:[%s14295_s3 + $0x360] sm:$0xff]  }
 0x31b   :  { %9848 = vmatprep.subr.bf16.mxu1 %v14378_v17 }
 0x31e   :  { %9849 = vmatpush3.bf16.msra.mxu1 %v10871_v8  ;;  %v4902_v8 = vcombine.low %v14563_v58, %v12898_v48  ;;  %v10891_v48 = vld [vmem:[%s14295_s3 + $0x368] sm:$0xff]  }
 0x31f   :  { %9850 = vmatprep.subr.bf16.mxu1 %v14378_v17 }
 0x321   :  { %9831 = vmatmul.mubr.bf16.gmra.mrb[20].mxu1 %v14561_v61  ;;  %v10892_v61 = vld [vmem:[%s14295_s3 + $0x370] sm:$0xff]  }
 0x322   :  { %9851 = vmatpush3.bf16.msra.mxu1 %v10872_v15  ;;  %9834 = vmatprep.mubr.msk.bf16.mxu1 %vm11057_vm0, %v14378_v17  ;;  %v4943_v15 = vpack.c.bf16 %v4903_v22, %v4902_v8 }
 0x323   :  { %9852 = vmatprep.subr.bf16.mxu1 %v14378_v17 }
 0x326   :  { %9853 = vmatpush3.bf16.msra.mxu1 %v10873_v45  ;;  %v10910_v45 = vld [vmem:[%s14297_s6 + $0x40] sm:$0xff]  }
 0x327   :  { %9854 = vmatprep.subr.bf16.mxu1 %v14378_v17  ;;  %10027 = vmatpush3.bf16.msra.mxu0 %v10910_v45 }
 0x328   :  { %10028 = vmatprep.subr.bf16.mxu0 %v14378_v17 }
 0x329   :  { %9835 = vmatmul.mubr.bf16.gmra.mrb[24].mxu1 %v12540_v19  ;;  %v4538_v19 = vrot.slane %v4530_v31, %v11349_v59  ;;  %v5096_v31 = vcombine.low %v12991_v30, %v12997_v51  ;;  %v10898_v30 = vld [vmem:[%s14295_s3 + $0x3a0] sm:$0xff]   ;;  %v10899_v51 = vld [vmem:[%s14295_s3 + $0x3a8] sm:$0xff]  }
 0x32a   :  { %9855 = vmatpush3.bf16.msra.mxu1 %v10874_v39  ;;  %9838 = vmatprep.mubr.msk.bf16.mxu1 %vm11057_vm0, %v14378_v17  ;;  %v10911_v39 = vld [vmem:[%s14297_s6 + $0x48] sm:$0xff]  }
 0x32b   :  { %9856 = vmatprep.subr.bf16.mxu1 %v14378_v17  ;;  %v4546_v10 = vcombine.low %v4538_v19, %v4545_v40  ;;  %10029 = vmatpush3.bf16.msra.mxu0 %v10911_v39  ;;  %v14564_v19 = vld [vmem:[#allocation31_spill] sm:$0xff] }
 0x32c   :  { %10030 = vmatprep.subr.bf16.mxu0 %v14378_v17  ;;  %v5095_v40 = vcombine.low %v14564_v19, %v13006_v11  ;;  %v10900_v11 = vld [vmem:[%s14295_s3 + $0x3b0] sm:$0xff]  }
 0x32d   :  { %v4560_v6 = vpack.c.bf16 %v4546_v10, %v4546_v10  ;;  %v10901_v10 = vld [vmem:[%s14295_s3 + $0x3b8] sm:$0xff]  }
 0x32e   :  { %9857 = vmatpush3.bf16.msra.mxu1 %v10875_v25  ;;  %v10913_v25 = vld [vmem:[%s14297_s6 + $0x58] sm:$0xff]  }
 0x32f   :  { %9858 = vmatprep.subr.bf16.mxu1 %v14378_v17 }
 0x331   :  { %9839 = vmatmul.mubr.bf16.gmra.mrb[28].mxu1 %v12605_v21  ;;  %v10878_v21 = vld [vmem:[%s14295_s3 + $0x300] sm:$0xff]  }
 0x332   :  { %9859 = vmatpush3.bf16.msra.mxu1 %v10876_v38  ;;  %9842 = vmatprep.mubr.msk.bf16.mxu1 %vm11057_vm0, %v14378_v17  ;;  %v10896_v38 = vld [vmem:[%s14295_s3 + $0x390] sm:$0xff]  }
 0x333   :  { %9860 = vmatprep.subr.bf16.mxu1 %v14378_v17 }
 0x336   :  { %9861 = vmatpush3.bf16.msra.mxu1 %v10877_v42  ;;  %v10897_v42 = vld [vmem:[%s14295_s3 + $0x398] sm:$0xff]  }
 0x337   :  { %9882 = vmatprep.subr.bf16.mxu1 %v14378_v17 }
 0x339   :  { %9843 = vmatmul.mubr.bf16.gmra.mrb[32].mxu1 %v4560_v6  ;;  %v10903_v6 = vld [vmem:[%s14295_s3 + $0x3c8] sm:$0xff]  }
 0x33a   :  { %9862 = vmatprep.mubr.msk.bf16.mxu1 %vm11057_vm0, %v14378_v17 }
 0x341   :  { %9863 = vmatmul.mubr.bf16.vlgmr.msra.gmra.mrb[16].mxu1 %v12550_v28  ;;  %v10880_v28 = vld [vmem:[%s14295_s3 + $0x310] sm:$0xff]  }
 0x342   :  { %9883 = vmatpush3.bf16.msra.mxu1 %v10878_v21  ;;  %9866 = vmatprep.mubr.msk.bf16.mxu1 %vm11057_vm0, %v14378_v17  ;;  %v10904_v21 = vld [vmem:[%s14295_s3 + $0x3d0] sm:$0xff]  }
 0x343   :  { %9884 = vmatprep.subr.bf16.mxu1 %v14378_v17 }
 0x346   :  { %9885 = vmatpush3.bf16.msra.mxu1 %v10879_v43  ;;  %v14565_v43 = vld [vmem:[#allocation32_spill] sm:$0xff] }
 0x347   :  { %9886 = vmatprep.subr.bf16.mxu1 %v14378_v17  ;;  %v5288_v54 = vcombine.low %v14565_v43, %v13075_v52  ;;  %v10908_v52 = vld [vmem:[%s14295_s3 + $0x3f0] sm:$0xff]  }
 0x349   :  { %9867 = vmatmul.mubr.bf16.gmra.mrb[20].mxu1 %v4750_v27  ;;  %v14567_v27 = vld [vmem:[#allocation49_spill] sm:$0xff] }
 0x34a   :  { %9887 = vmatpush3.bf16.msra.mxu1 %v10880_v28  ;;  %9870 = vmatprep.mubr.msk.bf16.mxu1 %vm11057_vm0, %v14378_v17  ;;  %v14566_v28 = vld [vmem:[#allocation20_spill] sm:$0xff] }
 0x34b   :  { %9888 = vmatprep.subr.bf16.mxu1 %v14378_v17 }
 0x34e   :  { %9889 = vmatpush3.bf16.msra.mxu1 %v10881_v23  ;;  %v5481_v23 = vcombine.low %v14567_v27, %v13142_v60  ;;  %v10915_v60 = vld [vmem:[%s14297_s6 + $0x68] sm:$0xff]  }
 0x34f   :  { %9890 = vmatprep.subr.bf16.mxu1 %v14378_v17 }
 0x351   :  { %9871 = vmatmul.mubr.bf16.gmra.mrb[24].mxu1 %v12631_v18  ;;  %v10884_v18 = vld [vmem:[%s14295_s3 + $0x330] sm:$0xff]  }
 0x352   :  { %9891 = vmatpush3.bf16.msra.mxu1 %v10882_v1  ;;  %9874 = vmatprep.mubr.msk.bf16.mxu1 %vm11057_vm0, %v14378_v17 }
 0x353   :  { %9892 = vmatprep.subr.bf16.mxu1 %v14378_v17 }
 0x356   :  { %9893 = vmatpush3.bf16.msra.mxu1 %v10883_v35  ;;  %v14569_v35 = vld [vmem:[#allocation42_spill] sm:$0xff] }
 0x357   :  { %9894 = vmatprep.subr.bf16.mxu1 %v14378_v17 }
 0x359   :  { %9875 = vmatmul.mubr.bf16.gmra.mrb[28].mxu1 %v12692_v33  ;;  %v10886_v33 = vld [vmem:[%s14295_s3 + $0x340] sm:$0xff]  }
 0x35a   :  { %9895 = vmatpush3.bf16.msra.mxu1 %v10884_v18  ;;  %9878 = vmatprep.mubr.msk.bf16.mxu1 %vm11057_vm0, %v14378_v17 }
 0x35b   :  { %9896 = vmatprep.subr.bf16.mxu1 %v14378_v17 }
 0x35e   :  { %9897 = vmatpush3.bf16.msra.mxu1 %v10885_v12 }
 0x35f   :  { %9918 = vmatprep.subr.bf16.mxu1 %v14378_v17 }
 0x361   :  { %9879 = vmatmul.mubr.bf16.gmra.mrb[32].mxu1 %v4753_v0 }
 0x362   :  { %9898 = vmatprep.mubr.msk.bf16.mxu1 %vm11057_vm0, %v14378_v17 }
 0x369   :  { %9899 = vmatmul.mubr.bf16.vlgmr.msra.gmra.mrb[16].mxu1 %v12628_v3  ;;  %v10888_v3 = vld [vmem:[%s14295_s3 + $0x350] sm:$0xff]  }
 0x36a   :  { %9919 = vmatpush3.bf16.msra.mxu1 %v10886_v33  ;;  %9902 = vmatprep.mubr.msk.bf16.mxu1 %vm11057_vm0, %v14378_v17 }
 0x36b   :  { %9920 = vmatprep.subr.bf16.mxu1 %v14378_v17 }
 0x36e   :  { %9921 = vmatpush3.bf16.msra.mxu1 %v10887_v13 }
 0x36f   :  { %9922 = vmatprep.subr.bf16.mxu1 %v14378_v17 }
 0x371   :  { %9903 = vmatmul.mubr.bf16.gmra.mrb[20].mxu1 %v4943_v15 }
 0x372   :  { %9923 = vmatpush3.bf16.msra.mxu1 %v10888_v3  ;;  %9906 = vmatprep.mubr.msk.bf16.mxu1 %vm11057_vm0, %v14378_v17 }
 0x373   :  { %9924 = vmatprep.subr.bf16.mxu1 %v14378_v17 }
 0x376   :  { %9925 = vmatpush3.bf16.msra.mxu1 %v10889_v26 }
 0x377   :  { %9926 = vmatprep.subr.bf16.mxu1 %v14378_v17 }
 0x379   :  { %9907 = vmatmul.mubr.bf16.gmra.mrb[24].mxu1 %v12658_v9  ;;  %v10893_v9 = vld [vmem:[%s14295_s3 + $0x378] sm:$0xff]  }
 0x37a   :  { %9927 = vmatpush3.bf16.msra.mxu1 %v10890_v56  ;;  %9910 = vmatprep.mubr.msk.bf16.mxu1 %vm11057_vm0, %v14378_v17 }
 0x37b   :  { %9928 = vmatprep.subr.bf16.mxu1 %v14378_v17 }
 0x37e   :  { %9929 = vmatpush3.bf16.msra.mxu1 %v10891_v48 }
 0x37f   :  { %9930 = vmatprep.subr.bf16.mxu1 %v14378_v17 }
 0x381   :  { %9911 = vmatmul.mubr.bf16.gmra.mrb[28].mxu1 %v12694_v5  ;;  %v10912_v5 = vld [vmem:[%s14297_s6 + $0x50] sm:$0xff]  }
 0x382   :  { %9931 = vmatpush3.bf16.msra.mxu1 %v10892_v61  ;;  %9914 = vmatprep.mubr.msk.bf16.mxu1 %vm11057_vm0, %v14378_v17 }
 0x383   :  { %9932 = vmatprep.subr.bf16.mxu1 %v14378_v17  ;;  %10031 = vmatpush3.bf16.msra.mxu0 %v10912_v5 }
 0x384   :  { %10032 = vmatprep.subr.bf16.mxu0 %v14378_v17 }
 0x386   :  { %9933 = vmatpush3.bf16.msra.mxu1 %v10893_v9 }
 0x387   :  { %9954 = vmatprep.subr.bf16.mxu1 %v14378_v17  ;;  %10033 = vmatpush3.bf16.msra.mxu0 %v10913_v25 }
 0x388   :  { %10034 = vmatprep.subr.bf16.mxu0 %v14378_v17 }
 0x389   :  { %9915 = vmatmul.mubr.bf16.gmra.mrb[32].mxu1 %v4946_v36 }
 0x38a   :  { %9934 = vmatprep.mubr.msk.bf16.mxu1 %vm11057_vm0, %v14378_v17 }
 0x391   :  { %9935 = vmatmul.mubr.bf16.vlgmr.msra.gmra.mrb[16].mxu1 %v12650_v37  ;;  %v5136_v37 = vpack.c.bf16 %v5096_v31, %v5095_v40 }
 0x392   :  { %9955 = vmatpush3.bf16.msra.mxu1 %v10894_v49  ;;  %9938 = vmatprep.mubr.msk.bf16.mxu1 %vm11057_vm0, %v14378_v17 }
 0x393   :  { %9956 = vmatprep.subr.bf16.mxu1 %v14378_v17 }
 0x396   :  { %9957 = vmatpush3.bf16.msra.mxu1 %v10895_v53 }
 0x397   :  { %9958 = vmatprep.subr.bf16.mxu1 %v14378_v17 }
 0x399   :  { %9939 = vmatmul.mubr.bf16.gmra.mrb[20].mxu1 %v5136_v37 }
 0x39a   :  { %9959 = vmatpush3.bf16.msra.mxu1 %v10896_v38  ;;  %9942 = vmatprep.mubr.msk.bf16.mxu1 %vm11057_vm0, %v14378_v17 }
 0x39b   :  { %9960 = vmatprep.subr.bf16.mxu1 %v14378_v17 }
 0x39e   :  { %9961 = vmatpush3.bf16.msra.mxu1 %v10897_v42 }
 0x39f   :  { %9962 = vmatprep.subr.bf16.mxu1 %v14378_v17 }
 0x3a1   :  { %9943 = vmatmul.mubr.bf16.gmra.mrb[24].mxu1 %v12696_v57  ;;  %v5139_v57 = vpack.c.bf16 %v12952_v32, %v12952_v32  ;;  %v5289_v32 = vcombine.low %v13057_v34, %v13063_v50  ;;  %v10906_v34 = vld [vmem:[%s14295_s3 + $0x3e0] sm:$0xff]   ;;  %v10907_v50 = vld [vmem:[%s14295_s3 + $0x3e8] sm:$0xff]  }
 0x3a2   :  { %9963 = vmatpush3.bf16.msra.mxu1 %v10898_v30  ;;  %9946 = vmatprep.mubr.msk.bf16.mxu1 %vm11057_vm0, %v14378_v17 }
 0x3a3   :  { %9964 = vmatprep.subr.bf16.mxu1 %v14378_v17  ;;  %v5329_v2 = vpack.c.bf16 %v5289_v32, %v5288_v54 }
 0x3a6   :  { %9965 = vmatpush3.bf16.msra.mxu1 %v10899_v51 }
 0x3a7   :  { %9966 = vmatprep.subr.bf16.mxu1 %v14378_v17 }
 0x3a9   :  { %9947 = vmatmul.mubr.bf16.gmra.mrb[28].mxu1 %v12715_v24  ;;  %v10902_v24 = vld [vmem:[%s14295_s3 + $0x3c0] sm:$0xff]  }
 0x3aa   :  { %9967 = vmatpush3.bf16.msra.mxu1 %v10900_v11  ;;  %9950 = vmatprep.mubr.msk.bf16.mxu1 %vm11057_vm0, %v14378_v17 }
 0x3ab   :  { %9968 = vmatprep.subr.bf16.mxu1 %v14378_v17 }
 0x3ae   :  { %9969 = vmatpush3.bf16.msra.mxu1 %v10901_v10 }
 0x3af   :  { %9990 = vmatprep.subr.bf16.mxu1 %v14378_v17 }
 0x3b1   :  { %9951 = vmatmul.mubr.bf16.gmra.mrb[32].mxu1 %v5139_v57 }
 0x3b2   :  { %9970 = vmatprep.mubr.msk.bf16.mxu1 %vm11057_vm0, %v14378_v17 }
 0x3b9   :  { %9971 = vmatmul.mubr.bf16.vlgmr.msra.gmra.mrb[16].mxu1 %v12687_v55  ;;  %v10905_v55 = vld [vmem:[%s14295_s3 + $0x3d8] sm:$0xff]  }
 0x3ba   :  { %9991 = vmatpush3.bf16.msra.mxu1 %v10902_v24  ;;  %9974 = vmatprep.mubr.msk.bf16.mxu1 %vm11057_vm0, %v14378_v17 }
 0x3bb   :  { %9992 = vmatprep.subr.bf16.mxu1 %v14378_v17 }
 0x3be   :  { %9993 = vmatpush3.bf16.msra.mxu1 %v10903_v6 }
 0x3bf   :  { %9994 = vmatprep.subr.bf16.mxu1 %v14378_v17 }
 0x3c1   :  { %9975 = vmatmul.mubr.bf16.gmra.mrb[20].mxu1 %v5329_v2 }
 0x3c2   :  { %9995 = vmatpush3.bf16.msra.mxu1 %v10904_v21  ;;  %9978 = vmatprep.mubr.msk.bf16.mxu1 %vm11057_vm0, %v14378_v17 }
 0x3c3   :  { %9996 = vmatprep.subr.bf16.mxu1 %v14378_v17 }
 0x3c6   :  { %9997 = vmatpush3.bf16.msra.mxu1 %v10905_v55 }
 0x3c7   :  { %9998 = vmatprep.subr.bf16.mxu1 %v14378_v17 }
 0x3c9   :  { %9979 = vmatmul.mubr.bf16.gmra.mrb[24].mxu1 %v12725_v20  ;;  %v5332_v20 = vpack.c.bf16 %v12954_v47, %v12954_v47  ;;  %v14568_v47 = vld [vmem:[#allocation48_spill] sm:$0xff] }
 0x3ca   :  { %9999 = vmatpush3.bf16.msra.mxu1 %v10906_v34  ;;  %9982 = vmatprep.mubr.msk.bf16.mxu1 %vm11057_vm0, %v14378_v17 }
 0x3cb   :  { %10000 = vmatprep.subr.bf16.mxu1 %v14378_v17 }
 0x3ce   :  { %10001 = vmatpush3.bf16.msra.mxu1 %v10907_v50 }
 0x3cf   :  { %10002 = vmatprep.subr.bf16.mxu1 %v14378_v17 }
 0x3d1   :  { %9983 = vmatmul.mubr.bf16.gmra.mrb[28].mxu1 %v12734_v7  ;;  %v5482_v7 = vcombine.low %v13126_v63, %v13132_v62  ;;  %v5525_v63 = vpack.c.bf16 %v12956_v29, %v12956_v29  ;;  %v10914_v62 = vld [vmem:[%s14297_s6 + $0x60] sm:$0xff]   ;;  %v10916_v29 = vld [vmem:[%s14297_s6 + $0x70] sm:$0xff]  }
 0x3d2   :  { %10003 = vmatpush3.bf16.msra.mxu1 %v10908_v52  ;;  %9986 = vmatprep.mubr.msk.bf16.mxu1 %vm11057_vm0, %v14378_v17 }
 0x3d3   :  { %10004 = vmatprep.subr.bf16.mxu1 %v14378_v17  ;;  %v5522_v1 = vpack.c.bf16 %v5482_v7, %v5481_v23  ;;  %10035 = vmatpush3.bf16.msra.mxu0 %v10914_v62 }
 0x3d4   :  { %10036 = vmatprep.subr.bf16.mxu0 %v14378_v17 }
 0x3d6   :  { %10005 = vmatpush3.bf16.msra.mxu1 %v10909_v41 }
 0x3d7   :  { %10346 = vmatprep.subr.bf16.mxu1 %v14378_v17  ;;  %10037 = vmatpush3.bf16.msra.mxu0 %v10915_v60 }
 0x3d8   :  { %10038 = vmatprep.subr.bf16.mxu0 %v14378_v17 }
 0x3d9   :  { %9987 = vmatmul.mubr.bf16.gmra.mrb[32].mxu1 %v5332_v20 }
 0x3da   :  { %10006 = vmatprep.mubr.msk.bf16.mxu1 %vm11057_vm0, %v14378_v17 }
 0x3db   :  { %10039 = vmatpush3.bf16.msra.mxu0 %v10916_v29 }
 0x3dc   :  { %10040 = vmatprep.subr.bf16.mxu0 %v14378_v17 }
 0x3df   :  { %10041 = vmatpush3.bf16.msra.mxu0 %v10917_v14 }
 0x3e0   :  { %10046 = vmatprep.subr.bf16.mxu0 %v14378_v17 }
 0x3e1   :  { %10007 = vmatmul.mubr.bf16.vlgmr.msra.gmra.mrb[16].mxu1 %v14566_v28 }
 0x3e2   :  { %10010 = vmatprep.mubr.msk.bf16.mxu1 %vm11057_vm0, %v14378_v17 }
 0x3e9   :  { %10011 = vmatmul.mubr.bf16.gmra.mrb[20].mxu1 %v5522_v1 }
 0x3ea   :  { %10014 = vmatprep.mubr.msk.bf16.mxu1 %vm11057_vm0, %v14378_v17 }
 0x3f1   :  { %10015 = vmatmul.mubr.bf16.gmra.mrb[24].mxu1 %v14568_v47 }
 0x3f2   :  { %10018 = vmatprep.mubr.msk.bf16.mxu1 %vm11057_vm0, %v14378_v17 }
 0x3f9   :  { %10019 = vmatmul.mubr.bf16.gmra.mrb[28].mxu1 %v14569_v35 }
 0x3fa   :  { %10022 = vmatprep.mubr.msk.bf16.mxu1 %vm11057_vm0, %v14378_v17 }
 0x401   :  { %10023 = vmatmul.mubr.bf16.gmra.mrb[32].mxu1 %v5525_v63 }
 0x402   :  { %10362 = vmatprep.mubr.msk.bf16.mxu1 %vm11057_vm0, %v14378_v17 }
 0x4b4   :  { %v5625_v46 = vpop.f32.mrb[16].mxu1 }
 0x4b5   :  { %v10008_v18 = vpop.f32.mrb[17].mxu1 }
 0x4b6   :  { %v5628_v4 = vpop.f32.mrb[18].mxu1 }
 0x4b7   :  { %v5672_v44 = vadd.f32 %v5628_v4, %v5625_v46  ;;  %v10009_v12 = vpop.f32.mrb[19].mxu1 }
 0x4bc   :  { %v5633_v16 = vpop.f32.mrb[20].mxu1 }
 0x4bd   :  { %v5673_v0 = vadd.f32 %v5672_v44, %v5633_v16  ;;  %v10012_v33 = vpop.f32.mrb[21].mxu1 }
 0x4be   :  { %v5636_v13 = vpop.f32.mrb[22].mxu1 }
 0x4bf   :  { %v5674_v22 = vadd.f32 %v5673_v0, %v5636_v13  ;;  %v10013_v58 = vpop.f32.mrb[23].mxu1 }
 0x4c4   :  { %v5641_v8 = vpop.f32.mrb[24].mxu1 }
 0x4c5   :  { %v5675_v3 = vadd.f32 %v5674_v22, %v5641_v8  ;;  %v10016_v15 = vpop.f32.mrb[25].mxu1 }
 0x4c6   :  { %v5644_v26 = vpop.f32.mrb[26].mxu1 }
 0x4c7   :  { %v5676_v56 = vadd.f32 %v5675_v3, %v5644_v26  ;;  %v10017_v48 = vpop.f32.mrb[27].mxu1 }
 0x4cc   :  { %v5649_v61 = vpop.f32.mrb[28].mxu1 }
 0x4cd   :  { %v5677_v9 = vadd.f32 %v5676_v56, %v5649_v61  ;;  %v10020_v45 = vpop.f32.mrb[29].mxu1 }
 0x4ce   :  { %v5652_v39 = vpop.f32.mrb[30].mxu1 }
 0x4cf   :  { %v5678_v5 = vadd.f32 %v5677_v9, %v5652_v39  ;;  %v10021_v36 = vpop.f32.mrb[31].mxu1 }
 0x4d4   :  { %v5657_v25 = vpop.f32.mrb[32].mxu1 }
 0x4d5   :  { %v5679_v49 = vadd.f32 %v5678_v5, %v5657_v25  ;;  %v10024_v53 = vpop.f32.mrb[33].mxu1 }
 0x4d6   :  { %v5660_v31 = vpop.f32.mrb[34].mxu1 }
 0x4d7   :  { %v5680_v38 = vrot.slane %v5679_v49, 4  ;;  %v10025_v19 = vpop.f32.mrb[35].mxu1 }
 0x4d9   :  { %v5681_v40 = vadd.f32 %v5680_v38, %v5679_v49 }
 0x4db   :  { %v5682_v37 = vrot.slane %v5681_v40, 2 }
 0x4dd   :  { %v5683_v42 = vadd.f32 %v5682_v37, %v5681_v40 }
 0x4df   :  { %v5684_v30 = vrot.slane %v5683_v42, 1 }
 0x4e1   :  { %v5685_v51 = vadd.f32 %v5684_v30, %v5683_v42 }
 0x4e3   :  { %v5687_v11 = vmul.f32 0.013888889, %v5685_v51 }
 0x4e5   :  { %v5688_v10 = vsub.f32 %v5625_v46, %v5687_v11  ;;  %v5689_v57 = vsub.f32 %v5628_v4, %v5687_v11  ;;  %v5690_v24 = vsub.f32 %v5633_v16, %v5687_v11  ;;  %v5691_v6 = vsub.f32 %v5636_v13, %v5687_v11  ;;  %v8527_v13 = vld [vmem:[%s14298_s4] ss:$0 sm:$0xff] }
 0x4e6   :  { %v5692_v32 = vsub.f32 %v5641_v8, %v5687_v11  ;;  %v5693_v21 = vsub.f32 %v5644_v26, %v5687_v11  ;;  %v5694_v43 = vsub.f32 %v5649_v61, %v5687_v11  ;;  %v5695_v54 = vsub.f32 %v5652_v39, %v5687_v11  ;;  %v8528_v61 = vld [vmem:[%s14299_s5] ss:$0 sm:$0xff] }
 0x4e7   :  { %v5696_v2 = vsub.f32 %v5657_v25, %v5687_v11  ;;  %v5697_v55 = vmul.f32 %v5688_v10, %v5688_v10  ;;  %v5698_v34 = vmul.f32 %v5689_v57, %v5689_v57  ;;  %v5699_v50 = vmul.f32 %v5690_v24, %v5690_v24 }
 0x4e8   :  { %v5700_v41 = vmul.f32 %v5691_v6, %v5691_v6  ;;  %v5701_v28 = vmul.f32 %v5692_v32, %v5692_v32  ;;  %v5702_v27 = vmul.f32 %v5693_v21, %v5693_v21  ;;  %v5703_v1 = vmul.f32 %v5694_v43, %v5694_v43 }
 0x4e9   :  { %v5706_v52 = vadd.f32 %v5698_v34, %v5697_v55  ;;  %v5704_v35 = vmul.f32 %v5695_v54, %v5695_v54  ;;  %v5705_v62 = vmul.f32 %v5696_v2, %v5696_v2 }
 0x4eb   :  { %v5707_v20 = vadd.f32 %v5706_v52, %v5699_v50 }
 0x4ed   :  { %v5708_v7 = vadd.f32 %v5707_v20, %v5700_v41 }
 0x4ef   :  { %v5709_v23 = vadd.f32 %v5708_v7, %v5701_v28 }
 0x4f1   :  { %v5710_v47 = vadd.f32 %v5709_v23, %v5702_v27 }
 0x4f3   :  { %v5711_v63 = vadd.f32 %v5710_v47, %v5703_v1 }
 0x4f5   :  { %v5712_v60 = vadd.f32 %v5711_v63, %v5704_v35 }
 0x4f7   :  { %v5713_v29 = vadd.f32 %v5712_v60, %v5705_v62 }
 0x4f9   :  { %v5714_v14 = vrot.slane %v5713_v29, 4 }
 0x4fb   :  { %v5715_v46 = vadd.f32 %v5714_v14, %v5713_v29 }
 0x4fd   :  { %v5716_v18 = vrot.slane %v5715_v46, 2 }
 0x4ff   :  { %v5717_v4 = vadd.f32 %v5716_v18, %v5715_v46 }
 0x501   :  { %v5718_v44 = vrot.slane %v5717_v4, 1 }
 0x503   :  { %v5719_v12 = vadd.f32 %v5718_v44, %v5717_v4 }
 0x505   :  { %v5720_v16 = vmul.f32 0.013888889, %v5719_v12 }
 0x507   :  { %v5721_v0 = vadd.f32 1e-05, %v5720_v16 }
 0x509   :  { %11046 = vrsqrt.f32 %v5721_v0 }
 0x513   :  { %v11047_v33 = vpop.eup %11046 }
 0x514   :  { %v5723_v22 = vmul.f32 %v11047_v33, %v5688_v10  ;;  %v5725_v58 = vmul.f32 %v11047_v33, %v5690_v24  ;;  %v5726_v8 = vmul.f32 %v11047_v33, %v5691_v6  ;;  %v5727_v3 = vmul.f32 %v11047_v33, %v5692_v32 }
 0x515   :  { %v5728_v15 = vmul.f32 %v11047_v33, %v5693_v21  ;;  %v5729_v26 = vmul.f32 %v11047_v33, %v5694_v43  ;;  %v5730_v56 = vmul.f32 %v11047_v33, %v5695_v54  ;;  %v5731_v48 = vmul.f32 %v11047_v33, %v5696_v2 }
 0x516   :  { %v5741_v9 = vmul.f32 %v8527_v13, %v5725_v58  ;;  %v5742_v45 = vmul.f32 %v8527_v13, %v5726_v8  ;;  %v5739_v39 = vmul.f32 %v8527_v13, %v5723_v22  ;;  %v5724_v5 = vmul.f32 %v11047_v33, %v5689_v57 }
 0x517   :  { %v5744_v36 = vmul.f32 %v8527_v13, %v5728_v15  ;;  %v5745_v25 = vmul.f32 %v8527_v13, %v5729_v26  ;;  %v5746_v49 = vmul.f32 %v8527_v13, %v5730_v56  ;;  %v5747_v53 = vmul.f32 %v8527_v13, %v5731_v48 }
 0x518   :  { %v5755_v31 = vadd.f32 %v8528_v61, %v5739_v39  ;;  %v5758_v38 = vadd.f32 %v8528_v61, %v5742_v45  ;;  %v5740_v19 = vmul.f32 %v8527_v13, %v5724_v5  ;;  %v5743_v40 = vmul.f32 %v8527_v13, %v5727_v3  ;;  %v10918_v39 = vld [vmem:[%s14297_s6] sm:$0xff]  }
 0x519   :  { %v5760_v37 = vadd.f32 %v8528_v61, %v5744_v36  ;;  %v13610_v42 = vadd.f32 %v8528_v61, %v5746_v49  ;;  %v5763_v30 = vadd.f32 %v8528_v61, %v5747_v53  ;;  %v5757_v51 = vadd.f32 %v8528_v61, %v5741_v9 }
 0x51a   :  { %v5764_v11 = vmul.f32 0.2, %v5755_v31  ;;  %v5767_v10 = vmul.f32 0.2, %v5758_v38  ;;  %v5756_v24 = vadd.f32 %v8528_v61, %v5740_v19  ;;  %v5759_v6 = vadd.f32 %v8528_v61, %v5743_v40 }
 0x51b   :  { %v5769_v32 = vmul.f32 0.2, %v5760_v37  ;;  %v5772_v21 = vmul.f32 0.2, %v5763_v30  ;;  %v5766_v57 = vmul.f32 0.2, %v5757_v51  ;;  %v13612_v43 = vadd.f32 %v8528_v61, %v5745_v25 }
 0x51c   :  { %v5773_v54 = vmax.f32 %v5755_v31, %v5764_v11  ;;  %v5776_v2 = vmax.f32 %v5758_v38, %v5767_v10  ;;  %v5765_v55 = vmul.f32 0.2, %v5756_v24  ;;  %v5768_v34 = vmul.f32 0.2, %v5759_v6 }
 0x51d   :  { %v13614_v50 = vmax.f32 %v5763_v30, %v5772_v21  ;;  %v5775_v52 = vmax.f32 %v5757_v51, %v5766_v57  ;;  %v5778_v23 = vmax.f32 %v5760_v37, %v5769_v32  ;;  %v5770_v51 = vmul.f32 0.2, %v13612_v43  ;;  %v10919_v32 = vld [vmem:[%s14297_s6 + $0x8] sm:$0xff]  }
 0x51e   :  { %v5791_v41 = vcombine.high %v5773_v54, %v5773_v54  ;;  %v5842_v20 = vcombine.high %v5776_v2, %v5776_v2  ;;  %v5798_v28 = vrot.slane %v5773_v54, %v11349_v59  ;;  %v5774_v7 = vmax.f32 %v5756_v24, %v5765_v55 }
 0x51f   :  { %v5777_v27 = vmax.f32 %v5759_v6, %v5768_v34  ;;  %v5927_v1 = vcombine.high %v13614_v50, %v13614_v50  ;;  %v5849_v35 = vrot.slane %v5776_v2, %v11349_v59  ;;  %v5832_v14 = vrot.slane %v5775_v52, %v11349_v59 }
 0x520   :  { %v5805_v47 = vrot.slane %v5791_v41, %v11349_v59  ;;  %v5856_v63 = vrot.slane %v5842_v20, %v11349_v59  ;;  %v5815_v62 = vrot.slane %v5774_v7, %v11349_v59  ;;  %v5808_v29 = vcombine.high %v5774_v7, %v5774_v7 }
 0x521   :  { %v5866_v60 = vrot.slane %v5777_v27, %v11349_v59  ;;  %v5859_v45 = vcombine.high %v5777_v27, %v5777_v27  ;;  %v5825_v25 = vcombine.high %v5775_v52, %v5775_v52  ;;  %v5876_v49 = vcombine.high %v5778_v23, %v5778_v23 }
 0x522   :  { %v8529_v46 = vcombine.high %v5798_v28, %v5805_v47  ;;  %v8530_v18 = vcombine.high %v5849_v35, %v5856_v63  ;;  %v5944_v4 = vcombine.low %v5798_v28, %v5805_v47  ;;  %v5945_v44 = vcombine.low %v5849_v35, %v5856_v63 }
 0x523   :  { %v6191_v12 = vcombine.low %v5805_v47, %v5815_v62  ;;  %v6192_v16 = vcombine.low %v5856_v63, %v5866_v60  ;;  %v8587_v0 = vcombine.high %v5805_v47, %v5815_v62  ;;  %v8588_v33 = vcombine.high %v5856_v63, %v5866_v60  ;;  %v10920_v62 = vld [vmem:[%s14297_s6 + $0x10] sm:$0xff]  }
 0x524   :  { %v5987_v13 = vrot.slane %v8529_v46, %v11349_v59  ;;  %v13627_v22 = vrot.slane %v8530_v18, %v11349_v59  ;;  %v5952_v58 = vrot.slane %v5944_v4, %v11349_v59  ;;  %v13631_v8 = vrot.slane %v5945_v44, %v11349_v59 }
 0x525   :  { %v6199_v3 = vrot.slane %v6191_v12, %v11349_v59  ;;  %v13635_v15 = vrot.slane %v6192_v16, %v11349_v59  ;;  %v6324_v26 = vrot.slane %v8587_v0, %v11349_v59  ;;  %v13639_v56 = vrot.slane %v8588_v33, %v11349_v59  ;;  %v10921_v12 = vld [vmem:[%s14297_s6 + $0x18] sm:$0xff]  }
 0x526   :  { %v5995_v48 = vcombine.low %v5987_v13, %v13627_v22  ;;  %v13643_v61 = vcombine.low %v5952_v58, %v13631_v8  ;;  %v5822_v9 = vrot.slane %v5808_v29, %v11349_v59  ;;  %v5873_v31 = vrot.slane %v5859_v45, %v11349_v59 }
 0x527   :  { %v13650_v5 = vcombine.low %v6199_v3, %v13635_v15  ;;  %v13653_v36 = vcombine.low %v6324_v26, %v13639_v56  ;;  %v5883_v38 = vrot.slane %v5778_v23, %v11349_v59  ;;  %v5941_v40 = vrot.slane %v5927_v1, %v11349_v59 }
 0x528   :  { %v5997_v53 = vpack.c.bf16 %v5995_v48, %v5995_v48  ;;  %v6441_v19 = vcombine.low %v5822_v9, %v5832_v14  ;;  %v8637_v37 = vcombine.high %v5822_v9, %v5832_v14  ;;  %v5839_v30 = vrot.slane %v5825_v25, %v11349_v59 }
 0x529   :  { %v6442_v11 = vcombine.low %v5873_v31, %v5883_v38  ;;  %v8638_v24 = vcombine.high %v5873_v31, %v5883_v38  ;;  %v5890_v6 = vrot.slane %v5876_v49, %v11349_v59  ;;  %v5771_v2 = vmul.f32 0.2, %v13610_v42 }
 0x52a   :  { %10043 = vmatmul.mubr.bf16.vlgmr.msra.gmra.mrb[100].mxu0 %v5997_v53  ;;  %v6449_v10 = vrot.slane %v6441_v19, %v11349_v59  ;;  %v6574_v21 = vrot.slane %v8637_v37, %v11349_v59  ;;  %v6691_v57 = vcombine.low %v5832_v14, %v5839_v30  ;;  %v8687_v54 = vcombine.high %v5832_v14, %v5839_v30  ;;  %v10922_v19 = vld [vmem:[%s14297_s6 + $0x20] sm:$0xff]  }
 0x52b   :  { %10047 = vmatpush3.bf16.msra.mxu0 %v10918_v39  ;;  %10062 = vmatprep.mubr.msk.bf16.mxu0 %vm11057_vm0, %v14378_v17  ;;  %v6456_v55 = vrot.slane %v6442_v11, %v11349_v59  ;;  %v6581_v34 = vrot.slane %v8638_v24, %v11349_v59  ;;  %v6692_v52 = vcombine.low %v5883_v38, %v5890_v6  ;;  %v10927_v24 = vld [vmem:[%s14297_s6 + $0x88] sm:$0xff]  }
 0x52c   :  { %10048 = vmatprep.subr.bf16.mxu0 %v14378_v17  ;;  %v8688_v41 = vcombine.high %v5883_v38, %v5890_v6  ;;  %v6699_v20 = vrot.slane %v6691_v57, %v11349_v59  ;;  %v6824_v28 = vrot.slane %v8687_v54, %v11349_v59  ;;  %v5779_v7 = vmax.f32 %v13612_v43, %v5770_v51  ;;  %v10928_v6 = vld [vmem:[%s14297_s6 + $0x90] sm:$0xff]   ;;  %v10933_v54 = vld [vmem:[%s14297_s6 + $0xb8] sm:$0xff]  }
 0x52d   :  { %v5780_v27 = vmax.f32 %v13610_v42, %v5771_v2  ;;  %v13676_v23 = vcombine.low %v6449_v10, %v6456_v55  ;;  %v13678_v1 = vcombine.low %v6574_v21, %v6581_v34  ;;  %v6706_v47 = vrot.slane %v6692_v52, %v11349_v59  ;;  %v10931_v21 = vld [vmem:[%s14297_s6 + $0xa8] sm:$0xff]   ;;  %v10932_v57 = vld [vmem:[%s14297_s6 + $0xb0] sm:$0xff]   ;;  %v10934_v2 = vld [vmem:[%s14297_s6 + $0xc0] sm:$0xff]  }
 0x52e   :  { %v6831_v35 = vrot.slane %v8688_v41, %v11349_v59  ;;  %v5934_v63 = vrot.slane %v13614_v50, %v11349_v59  ;;  %v5893_v60 = vcombine.high %v5779_v7, %v5779_v7  ;;  %v5900_v14 = vrot.slane %v5779_v7, %v11349_v59  ;;  %v10936_v52 = vld [vmem:[%s14297_s6 + $0xd0] sm:$0xff]   ;;  %v10938_v41 = vld [vmem:[%s14297_s6 + $0xe0] sm:$0xff]   ;;  %v10941_v7 = vld [vmem:[%s14297_s6 + $0xf8] sm:$0xff]  }
 0x52f   :  { %10049 = vmatpush3.bf16.msra.mxu0 %v10919_v32  ;;  %v5910_v43 = vcombine.high %v5780_v27, %v5780_v27  ;;  %v13688_v42 = vcombine.low %v6699_v20, %v6706_v47  ;;  %v5917_v46 = vrot.slane %v5780_v27, %v11349_v59  ;;  %v5962_v10 = vpack.c.bf16 %v13643_v61, %v13643_v61  ;;  %v10929_v61 = vld [vmem:[%s14297_s6 + $0x98] sm:$0xff]   ;;  %v10930_v32 = vld [vmem:[%s14297_s6 + $0xa0] sm:$0xff]   ;;  %v10939_v20 = vld [vmem:[%s14297_s6 + $0xe8] sm:$0xff]  }
 0x530   :  { %10050 = vmatprep.subr.bf16.mxu0 %v14378_v17  ;;  %v13690_v29 = vcombine.low %v6824_v28, %v6831_v35  ;;  %v5907_v18 = vrot.slane %v5893_v60, %v11349_v59  ;;  %v7643_v4 = vcombine.low %v5934_v63, %v5941_v40  ;;  %v8884_v44 = vcombine.high %v5934_v63, %v5941_v40  ;;  %v10940_v28 = vld [vmem:[%s14297_s6 + $0xf0] sm:$0xff]   ;;  %v10942_v27 = vld [vmem:[%s14297_s6 + $0x100] sm:$0xff]   ;;  %v10947_v60 = vld [vmem:[%s14297_s6 + $0x128] sm:$0xff]  }
 0x531   :  { %v5924_v50 = vrot.slane %v5910_v43, %v11349_v59  ;;  %v10948_v43 = vld [vmem:[%s14297_s6 + $0x130] sm:$0xff]  }
 0x532   :  { %v6941_v16 = vcombine.low %v5900_v14, %v5907_v18  ;;  %v8737_v0 = vcombine.high %v5900_v14, %v5907_v18  ;;  %v7175_v33 = vcombine.low %v5907_v18, %v5917_v46  ;;  %v8786_v13 = vcombine.high %v5907_v18, %v5917_v46  ;;  %v10949_v14 = vld [vmem:[%s14297_s6 + $0x138] sm:$0xff]   ;;  %v10950_v46 = vld [vmem:[%s14297_s6 + $0x140] sm:$0xff]  }
 0x533   :  { %10051 = vmatpush3.bf16.msra.mxu0 %v10920_v62  ;;  %v7409_v58 = vcombine.low %v5924_v50, %v5934_v63  ;;  %v8835_v3 = vcombine.high %v5924_v50, %v5934_v63  ;;  %v7650_v26 = vrot.slane %v7643_v4, %v11349_v59  ;;  %v7767_v48 = vrot.slane %v8884_v44, %v11349_v59  ;;  %v10944_v63 = vld [vmem:[%s14297_s6 + $0x110] sm:$0xff]   ;;  %v10946_v62 = vld [vmem:[%s14297_s6 + $0x120] sm:$0xff]   ;;  %v10951_v50 = vld [vmem:[%s14297_s6 + $0x148] sm:$0xff]  }
 0x534   :  { %10052 = vmatprep.subr.bf16.mxu0 %v14378_v17  ;;  %v6948_v9 = vrot.slane %v6941_v16, %v11349_v59  ;;  %v7065_v45 = vrot.slane %v8737_v0, %v11349_v59  ;;  %v7182_v39 = vrot.slane %v7175_v33, %v11349_v59  ;;  %v7299_v25 = vrot.slane %v8786_v13, %v11349_v59  ;;  %v10952_v4 = vld [vmem:[%s14297_s6 + $0x150] sm:$0xff]   ;;  %v10954_v44 = vld [vmem:[%s14297_s6 + $0x160] sm:$0xff]   ;;  %v10957_v0 = vld [vmem:[%s14297_s6 + $0x178] sm:$0xff]  }
 0x535   :  { %v7416_v49 = vrot.slane %v7409_v58, %v11349_v59  ;;  %v7533_v53 = vrot.slane %v8835_v3, %v11349_v59  ;;  %v13708_v31 = vcombine.low %v6706_v47, %v7650_v26  ;;  %v13710_v38 = vcombine.low %v6831_v35, %v7767_v48  ;;  %v10943_v35 = vld [vmem:[%s14297_s6 + $0x108] sm:$0xff]   ;;  %v10956_v16 = vld [vmem:[%s14297_s6 + $0x170] sm:$0xff]   ;;  %v10958_v33 = vld [vmem:[%s14297_s6 + $0x180] sm:$0xff]  }
 0x536   :  { %v13716_v40 = vcombine.low %v13631_v8, %v6948_v9  ;;  %v13719_v37 = vcombine.low %v13627_v22, %v7065_v45  ;;  %v13722_v30 = vcombine.low %v13635_v15, %v7182_v39  ;;  %v13725_v59 = vcombine.low %v13639_v56, %v7299_v25  ;;  %v10923_v8 = vld [vmem:[%s14297_s6 + $0x28] sm:$0xff]   ;;  %v10924_v22 = vld [vmem:[%s14297_s6 + $0x30] sm:$0xff]   ;;  %v10925_v15 = vld [vmem:[%s14297_s6 + $0x38] sm:$0xff]  }
 0x537   :  { %10053 = vmatpush3.bf16.msra.mxu0 %v10921_v12  ;;  %v13728_v51 = vcombine.low %v6456_v55, %v7416_v49  ;;  %v13730_v11 = vcombine.low %v6581_v34, %v7533_v53  ;;  %v10926_v56 = vld [vmem:[%s14297_s6 + $0x80] sm:$0xff]   ;;  %v6209_v55 = vpack.c.bf16 %v13650_v5, %v13650_v5  ;;  %v10935_v34 = vld [vmem:[%s14297_s6 + $0xc8] sm:$0xff]   ;;  %v10937_v5 = vld [vmem:[%s14297_s6 + $0xd8] sm:$0xff]   ;;  %v6334_v47 = vpack.c.bf16 %v13653_v36, %v13653_v36 }
 0x538   :  { %10054 = vmatprep.subr.bf16.mxu0 %v14378_v17  ;;  %v10945_v36 = vld [vmem:[%s14297_s6 + $0x118] sm:$0xff]   ;;  %v6459_v18 = vpack.c.bf16 %v13676_v23, %v13676_v23  ;;  %v10955_v12 = vld [vmem:[%s14297_s6 + $0x168] sm:$0xff]   ;;  %v6584_v13 = vpack.c.bf16 %v13678_v1, %v13678_v1  ;;  %v10960_v3 = vld [vmem:[%s14297_s6 + $0x190] sm:$0xff]   ;;  %v6709_v25 = vpack.c.bf16 %v13688_v42, %v13688_v42 }
 0x539   :  { %v10953_v23 = vld [vmem:[%s14297_s6 + $0x158] sm:$0xff]   ;;  %v10959_v58 = vld [vmem:[%s14297_s6 + $0x188] sm:$0xff]   ;;  %v10962_v26 = vld [vmem:[%s14297_s6 + $0x1a0] sm:$0xff]  }
 0x53a   :  { %v10961_v1 = vld [vmem:[%s14297_s6 + $0x198] sm:$0xff]   ;;  %v10963_v48 = vld [vmem:[%s14297_s6 + $0x1a8] sm:$0xff]   ;;  %v10964_v9 = vld [vmem:[%s14297_s6 + $0x1b0] sm:$0xff]  }
 0x53b   :  { %10055 = vmatpush3.bf16.msra.mxu0 %v10922_v19  ;;  %v10965_v45 = vld [vmem:[%s14297_s6 + $0x1b8] sm:$0xff]   ;;  %v10966_v39 = vld [vmem:[%s14297_s6 + $0x1c0] sm:$0xff]   ;;  %v10967_v49 = vld [vmem:[%s14297_s6 + $0x1c8] sm:$0xff]  }
 0x53c   :  { %10056 = vmatprep.subr.bf16.mxu0 %v14378_v17  ;;  %v10968_v53 = vld [vmem:[%s14297_s6 + $0x1d0] sm:$0xff]   ;;  %v10969_v42 = vld [vmem:[%s14297_s6 + $0x1d8] sm:$0xff]   ;;  %v10970_v19 = vld [vmem:[%s14297_s6 + $0x1e0] sm:$0xff]  }
 0x53f   :  { %10057 = vmatpush3.bf16.msra.mxu0 %v10923_v8  ;;  %v10971_v8 = vld [vmem:[%s14297_s6 + $0x1e8] sm:$0xff]  }
 0x540   :  { %10058 = vmatprep.subr.bf16.mxu0 %v14378_v17 }
 0x543   :  { %10059 = vmatpush3.bf16.msra.mxu0 %v10924_v22  ;;  %v10972_v22 = vld [vmem:[%s14297_s6 + $0x1f0] sm:$0xff]  }
 0x544   :  { %10060 = vmatprep.subr.bf16.mxu0 %v14378_v17 }
 0x547   :  { %10061 = vmatpush3.bf16.msra.mxu0 %v10925_v15  ;;  %v10973_v15 = vld [vmem:[%s14297_s6 + $0x1f8] sm:$0xff]  }
 0x548   :  { %10066 = vmatprep.subr.bf16.mxu0 %v14378_v17 }
 0x54a   :  { %10063 = vmatmul.mubr.bf16.vlgmr.msra.gmra.mrb[100].mxu0 %v5962_v10  ;;  %v6834_v10 = vpack.c.bf16 %v13690_v29, %v13690_v29  ;;  %v10977_v29 = vld [vmem:[%s14297_s6 + $0x218] sm:$0xff]  }
 0x54b   :  { %10067 = vmatpush3.bf16.msra.mxu0 %v10926_v56  ;;  %10082 = vmatprep.mubr.msk.bf16.mxu0 %vm11057_vm0, %v14378_v17  ;;  %v10974_v56 = vld [vmem:[%s14297_s6 + $0x200] sm:$0xff]  }
 0x54c   :  { %10068 = vmatprep.subr.bf16.mxu0 %v14378_v17 }
 0x54f   :  { %10069 = vmatpush3.bf16.msra.mxu0 %v10927_v24  ;;  %v10975_v24 = vld [vmem:[%s14297_s6 + $0x208] sm:$0xff]  }
 0x550   :  { %10070 = vmatprep.subr.bf16.mxu0 %v14378_v17 }
 0x553   :  { %10071 = vmatpush3.bf16.msra.mxu0 %v10928_v6  ;;  %v10976_v6 = vld [vmem:[%s14297_s6 + $0x210] sm:$0xff]  }
 0x554   :  { %10072 = vmatprep.subr.bf16.mxu0 %v14378_v17 }
 0x557   :  { %10073 = vmatpush3.bf16.msra.mxu0 %v10929_v61  ;;  %v10978_v61 = vld [vmem:[%s14297_s6 + $0x220] sm:$0xff]  }
 0x558   :  { %10074 = vmatprep.subr.bf16.mxu0 %v14378_v17 }
 0x55b   :  { %10075 = vmatpush3.bf16.msra.mxu0 %v10930_v32  ;;  %v10979_v32 = vld [vmem:[%s14297_s6 + $0x228] sm:$0xff]  }
 0x55c   :  { %10076 = vmatprep.subr.bf16.mxu0 %v14378_v17 }
 0x55f   :  { %10077 = vmatpush3.bf16.msra.mxu0 %v10931_v21  ;;  %v10980_v21 = vld [vmem:[%s14297_s6 + $0x230] sm:$0xff]  }
 0x560   :  { %10078 = vmatprep.subr.bf16.mxu0 %v14378_v17 }
 0x563   :  { %10079 = vmatpush3.bf16.msra.mxu0 %v10932_v57  ;;  %v10981_v57 = vld [vmem:[%s14297_s6 + $0x238] sm:$0xff]  }
 0x564   :  { %10080 = vmatprep.subr.bf16.mxu0 %v14378_v17 }
 0x567   :  { %10081 = vmatpush3.bf16.msra.mxu0 %v10933_v54  ;;  %v10982_v54 = vld [vmem:[%s14297_s6 + $0x240] sm:$0xff]  }
 0x568   :  { %10086 = vmatprep.subr.bf16.mxu0 %v14378_v17 }
 0x56a   :  { %10083 = vmatmul.mubr.bf16.vlgmr.msra.gmra.mrb[100].mxu0 %v6209_v55  ;;  %v10983_v55 = vld [vmem:[%s14297_s6 + $0x248] sm:$0xff]  }
 0x56b   :  { %10087 = vmatpush3.bf16.msra.mxu0 %v10934_v2  ;;  %10102 = vmatprep.mubr.msk.bf16.mxu0 %vm11057_vm0, %v14378_v17  ;;  %v6951_v2 = vpack.c.bf16 %v13716_v40, %v13716_v40  ;;  %v10985_v40 = vld [vmem:[%s14297_s6 + $0x258] sm:$0xff]  }
 0x56c   :  { %10088 = vmatprep.subr.bf16.mxu0 %v14378_v17 }
 0x56f   :  { %10089 = vmatpush3.bf16.msra.mxu0 %v10935_v34  ;;  %v10984_v34 = vld [vmem:[%s14297_s6 + $0x250] sm:$0xff]  }
 0x570   :  { %10090 = vmatprep.subr.bf16.mxu0 %v14378_v17 }
 0x573   :  { %10091 = vmatpush3.bf16.msra.mxu0 %v10936_v52  ;;  %v10986_v52 = vld [vmem:[%s14297_s6 + $0x260] sm:$0xff]  }
 0x574   :  { %10092 = vmatprep.subr.bf16.mxu0 %v14378_v17 }
 0x577   :  { %10093 = vmatpush3.bf16.msra.mxu0 %v10937_v5  ;;  %v10987_v5 = vld [vmem:[%s14297_s6 + $0x268] sm:$0xff]  }
 0x578   :  { %10094 = vmatprep.subr.bf16.mxu0 %v14378_v17 }
 0x57b   :  { %10095 = vmatpush3.bf16.msra.mxu0 %v10938_v41  ;;  %v10988_v41 = vld [vmem:[%s14297_s6 + $0x270] sm:$0xff]  }
 0x57c   :  { %10096 = vmatprep.subr.bf16.mxu0 %v14378_v17 }
 0x57f   :  { %10097 = vmatpush3.bf16.msra.mxu0 %v10939_v20  ;;  %v10989_v20 = vld [vmem:[%s14297_s6 + $0x278] sm:$0xff]  }
 0x580   :  { %10098 = vmatprep.subr.bf16.mxu0 %v14378_v17 }
 0x583   :  { %10099 = vmatpush3.bf16.msra.mxu0 %v10940_v28  ;;  %v10990_v28 = vld [vmem:[%s14297_s6 + $0x280] sm:$0xff]  }
 0x584   :  { %10100 = vmatprep.subr.bf16.mxu0 %v14378_v17 }
 0x587   :  { %10101 = vmatpush3.bf16.msra.mxu0 %v10941_v7  ;;  %v7068_v7 = vpack.c.bf16 %v13719_v37, %v13719_v37  ;;  %v10993_v37 = vld [vmem:[%s14297_s6 + $0x298] sm:$0xff]  }
 0x588   :  { %10106 = vmatprep.subr.bf16.mxu0 %v14378_v17 }
 0x58a   :  { %10103 = vmatmul.mubr.bf16.vlgmr.msra.gmra.mrb[100].mxu0 %v6334_v47  ;;  %v10992_v47 = vld [vmem:[%s14297_s6 + $0x290] sm:$0xff]  }
 0x58b   :  { %10107 = vmatpush3.bf16.msra.mxu0 %v10942_v27  ;;  %10122 = vmatprep.mubr.msk.bf16.mxu0 %vm11057_vm0, %v14378_v17  ;;  %v10991_v27 = vld [vmem:[%s14297_s6 + $0x288] sm:$0xff]  }
 0x58c   :  { %10108 = vmatprep.subr.bf16.mxu0 %v14378_v17 }
 0x58f   :  { %10109 = vmatpush3.bf16.msra.mxu0 %v10943_v35  ;;  %v10994_v35 = vld [vmem:[%s14297_s6 + $0x2a0] sm:$0xff]  }
 0x590   :  { %10110 = vmatprep.subr.bf16.mxu0 %v14378_v17 }
 0x593   :  { %10111 = vmatpush3.bf16.msra.mxu0 %v10944_v63  ;;  %v10995_v63 = vld [vmem:[%s14297_s6 + $0x2a8] sm:$0xff]  }
 0x594   :  { %10112 = vmatprep.subr.bf16.mxu0 %v14378_v17 }
 0x597   :  { %10113 = vmatpush3.bf16.msra.mxu0 %v10945_v36  ;;  %v10996_v36 = vld [vmem:[%s14297_s6 + $0x2b0] sm:$0xff]  }
 0x598   :  { %10114 = vmatprep.subr.bf16.mxu0 %v14378_v17 }
 0x59b   :  { %10115 = vmatpush3.bf16.msra.mxu0 %v10946_v62  ;;  %v10997_v62 = vld [vmem:[%s14297_s6 + $0x2b8] sm:$0xff]  }
 0x59c   :  { %10116 = vmatprep.subr.bf16.mxu0 %v14378_v17 }
 0x59f   :  { %10117 = vmatpush3.bf16.msra.mxu0 %v10947_v60  ;;  %v10998_v60 = vld [vmem:[%s14297_s6 + $0x2c0] sm:$0xff]  }
 0x5a0   :  { %10118 = vmatprep.subr.bf16.mxu0 %v14378_v17 }
 0x5a3   :  { %10119 = vmatpush3.bf16.msra.mxu0 %v10948_v43  ;;  %v7185_v43 = vpack.c.bf16 %v13722_v30, %v13722_v30  ;;  %v11001_v30 = vld [vmem:[%s14297_s6 + $0x2d8] sm:$0xff]  }
 0x5a4   :  { %10120 = vmatprep.subr.bf16.mxu0 %v14378_v17 }
 0x5a7   :  { %10121 = vmatpush3.bf16.msra.mxu0 %v10949_v14  ;;  %v10999_v14 = vld [vmem:[%s14297_s6 + $0x2c8] sm:$0xff]  }
 0x5a8   :  { %10126 = vmatprep.subr.bf16.mxu0 %v14378_v17 }
 0x5aa   :  { %10123 = vmatmul.mubr.bf16.vlgmr.msra.gmra.mrb[100].mxu0 %v6459_v18  ;;  %v11002_v18 = vld [vmem:[%s14297_s6 + $0x2e0] sm:$0xff]  }
 0x5ab   :  { %10127 = vmatpush3.bf16.msra.mxu0 %v10950_v46  ;;  %10142 = vmatprep.mubr.msk.bf16.mxu0 %vm11057_vm0, %v14378_v17  ;;  %v11000_v46 = vld [vmem:[%s14297_s6 + $0x2d0] sm:$0xff]  }
 0x5ac   :  { %10128 = vmatprep.subr.bf16.mxu0 %v14378_v17 }
 0x5af   :  { %10129 = vmatpush3.bf16.msra.mxu0 %v10951_v50  ;;  %v11003_v50 = vld [vmem:[%s14297_s6 + $0x2e8] sm:$0xff]  }
 0x5b0   :  { %10130 = vmatprep.subr.bf16.mxu0 %v14378_v17 }
 0x5b3   :  { %10131 = vmatpush3.bf16.msra.mxu0 %v10952_v4  ;;  %v11004_v4 = vld [vmem:[%s14297_s6 + $0x2f0] sm:$0xff]  }
 0x5b4   :  { %10132 = vmatprep.subr.bf16.mxu0 %v14378_v17 }
 0x5b7   :  { %10133 = vmatpush3.bf16.msra.mxu0 %v10953_v23  ;;  %v11005_v23 = vld [vmem:[%s14297_s6 + $0x2f8] sm:$0xff]  }
 0x5b8   :  { %10134 = vmatprep.subr.bf16.mxu0 %v14378_v17 }
 0x5bb   :  { %10135 = vmatpush3.bf16.msra.mxu0 %v10954_v44  ;;  %v11006_v44 = vld [vmem:[%s14297_s6 + $0x300] sm:$0xff]  }
 0x5bc   :  { %10136 = vmatprep.subr.bf16.mxu0 %v14378_v17 }
 0x5bf   :  { %10137 = vmatpush3.bf16.msra.mxu0 %v10955_v12  ;;  %v7302_v12 = vpack.c.bf16 %v13725_v59, %v13725_v59  ;;  %v11009_v59 = vld [vmem:[%s14297_s6 + $0x318] sm:$0xff]  }
 0x5c0   :  { %10138 = vmatprep.subr.bf16.mxu0 %v14378_v17 }
 0x5c3   :  { %10139 = vmatpush3.bf16.msra.mxu0 %v10956_v16  ;;  %v11007_v16 = vld [vmem:[%s14297_s6 + $0x308] sm:$0xff]  }
 0x5c4   :  { %10140 = vmatprep.subr.bf16.mxu0 %v14378_v17 }
 0x5c7   :  { %10141 = vmatpush3.bf16.msra.mxu0 %v10957_v0  ;;  %v11008_v0 = vld [vmem:[%s14297_s6 + $0x310] sm:$0xff]  }
 0x5c8   :  { %10146 = vmatprep.subr.bf16.mxu0 %v14378_v17 }
 0x5ca   :  { %10143 = vmatmul.mubr.bf16.vlgmr.msra.gmra.mrb[100].mxu0 %v6584_v13  ;;  %v11011_v13 = vld [vmem:[%s14297_s6 + $0x328] sm:$0xff]  }
 0x5cb   :  { %10147 = vmatpush3.bf16.msra.mxu0 %v10958_v33  ;;  %10162 = vmatprep.mubr.msk.bf16.mxu0 %vm11057_vm0, %v14378_v17  ;;  %v11010_v33 = vld [vmem:[%s14297_s6 + $0x320] sm:$0xff]  }
 0x5cc   :  { %10148 = vmatprep.subr.bf16.mxu0 %v14378_v17 }
 0x5cf   :  { %10149 = vmatpush3.bf16.msra.mxu0 %v10959_v58  ;;  %v11012_v58 = vld [vmem:[%s14297_s6 + $0x330] sm:$0xff]  }
 0x5d0   :  { %10150 = vmatprep.subr.bf16.mxu0 %v14378_v17 }
 0x5d3   :  { %10151 = vmatpush3.bf16.msra.mxu0 %v10960_v3  ;;  %v11013_v3 = vld [vmem:[%s14297_s6 + $0x338] sm:$0xff]  }
 0x5d4   :  { %10152 = vmatprep.subr.bf16.mxu0 %v14378_v17 }
 0x5d7   :  { %10153 = vmatpush3.bf16.msra.mxu0 %v10961_v1  ;;  %v11014_v1 = vld [vmem:[%s14297_s6 + $0x340] sm:$0xff]  }
 0x5d8   :  { %10154 = vmatprep.subr.bf16.mxu0 %v14378_v17 }
 0x5db   :  { %10155 = vmatpush3.bf16.msra.mxu0 %v10962_v26  ;;  %v7419_v26 = vpack.c.bf16 %v13728_v51, %v13728_v51  ;;  %v11017_v51 = vld [vmem:[%s14297_s6 + $0x358] sm:$0xff]  }
 0x5dc   :  { %10156 = vmatprep.subr.bf16.mxu0 %v14378_v17 }
 0x5df   :  { %10157 = vmatpush3.bf16.msra.mxu0 %v10963_v48  ;;  %v11015_v48 = vld [vmem:[%s14297_s6 + $0x348] sm:$0xff]  }
 0x5e0   :  { %10158 = vmatprep.subr.bf16.mxu0 %v14378_v17 }
 0x5e3   :  { %10159 = vmatpush3.bf16.msra.mxu0 %v10964_v9  ;;  %v11016_v9 = vld [vmem:[%s14297_s6 + $0x350] sm:$0xff]  }
 0x5e4   :  { %10160 = vmatprep.subr.bf16.mxu0 %v14378_v17 }
 0x5e7   :  { %10161 = vmatpush3.bf16.msra.mxu0 %v10965_v45  ;;  %v11018_v45 = vld [vmem:[%s14297_s6 + $0x360] sm:$0xff]  }
 0x5e8   :  { %10166 = vmatprep.subr.bf16.mxu0 %v14378_v17 }
 0x5ea   :  { %10163 = vmatmul.mubr.bf16.vlgmr.msra.gmra.mrb[100].mxu0 %v6709_v25  ;;  %v11020_v25 = vld [vmem:[%s14297_s6 + $0x370] sm:$0xff]  }
 0x5eb   :  { %10167 = vmatpush3.bf16.msra.mxu0 %v10966_v39  ;;  %10182 = vmatprep.mubr.msk.bf16.mxu0 %vm11057_vm0, %v14378_v17  ;;  %v11019_v39 = vld [vmem:[%s14297_s6 + $0x368] sm:$0xff]  }
 0x5ec   :  { %10168 = vmatprep.subr.bf16.mxu0 %v14378_v17 }
 0x5ef   :  { %10169 = vmatpush3.bf16.msra.mxu0 %v10967_v49  ;;  %v11021_v49 = vld [vmem:[%s14297_s6 + $0x378] sm:$0xff]  }
 0x5f0   :  { %10170 = vmatprep.subr.bf16.mxu0 %v14378_v17 }
 0x5f3   :  { %10171 = vmatpush3.bf16.msra.mxu0 %v10968_v53  ;;  %v11022_v53 = vld [vmem:[%s14297_s6 + $0x380] sm:$0xff]  }
 0x5f4   :  { %10172 = vmatprep.subr.bf16.mxu0 %v14378_v17 }
 0x5f7   :  { %10173 = vmatpush3.bf16.msra.mxu0 %v10969_v42  ;;  %v7536_v42 = vpack.c.bf16 %v13730_v11, %v13730_v11  ;;  %v11025_v11 = vld [vmem:[%s14297_s6 + $0x398] sm:$0xff]  }
 0x5f8   :  { %10174 = vmatprep.subr.bf16.mxu0 %v14378_v17 }
 0x5fb   :  { %10175 = vmatpush3.bf16.msra.mxu0 %v10970_v19  ;;  %v11023_v19 = vld [vmem:[%s14297_s6 + $0x388] sm:$0xff]  }
 0x5fc   :  { %10176 = vmatprep.subr.bf16.mxu0 %v14378_v17 }
 0x5ff   :  { %10177 = vmatpush3.bf16.msra.mxu0 %v10971_v8  ;;  %v11024_v8 = vld [vmem:[%s14297_s6 + $0x390] sm:$0xff]  }
 0x600   :  { %10178 = vmatprep.subr.bf16.mxu0 %v14378_v17 }
 0x603   :  { %10179 = vmatpush3.bf16.msra.mxu0 %v10972_v22  ;;  %v11026_v22 = vld [vmem:[%s14297_s6 + $0x3a0] sm:$0xff]  }
 0x604   :  { %10180 = vmatprep.subr.bf16.mxu0 %v14378_v17 }
 0x607   :  { %10181 = vmatpush3.bf16.msra.mxu0 %v10973_v15  ;;  %v11027_v15 = vld [vmem:[%s14297_s6 + $0x3a8] sm:$0xff]  }
 0x608   :  { %10186 = vmatprep.subr.bf16.mxu0 %v14378_v17 }
 0x60a   :  { %10183 = vmatmul.mubr.bf16.vlgmr.msra.gmra.mrb[100].mxu0 %v6834_v10  ;;  %v11029_v10 = vld [vmem:[%s14297_s6 + $0x3b8] sm:$0xff]  }
 0x60b   :  { %10187 = vmatpush3.bf16.msra.mxu0 %v10974_v56  ;;  %10202 = vmatprep.mubr.msk.bf16.mxu0 %vm11057_vm0, %v14378_v17  ;;  %v11028_v56 = vld [vmem:[%s14297_s6 + $0x3b0] sm:$0xff]  }
 0x60c   :  { %10188 = vmatprep.subr.bf16.mxu0 %v14378_v17 }
 0x60f   :  { %10189 = vmatpush3.bf16.msra.mxu0 %v10975_v24  ;;  %v11030_v24 = vld [vmem:[%s14297_s6 + $0x3c0] sm:$0xff]  }
 0x610   :  { %10190 = vmatprep.subr.bf16.mxu0 %v14378_v17 }
 0x613   :  { %10191 = vmatpush3.bf16.msra.mxu0 %v10976_v6  ;;  %v7653_v6 = vpack.c.bf16 %v13708_v31, %v13708_v31  ;;  %v11033_v31 = vld [vmem:[%s14297_s6 + $0x3d8] sm:$0xff]  }
 0x614   :  { %10192 = vmatprep.subr.bf16.mxu0 %v14378_v17 }
 0x617   :  { %10193 = vmatpush3.bf16.msra.mxu0 %v10977_v29  ;;  %v11031_v29 = vld [vmem:[%s14297_s6 + $0x3c8] sm:$0xff]  }
 0x618   :  { %10194 = vmatprep.subr.bf16.mxu0 %v14378_v17 }
 0x61b   :  { %10195 = vmatpush3.bf16.msra.mxu0 %v10978_v61  ;;  %v11032_v61 = vld [vmem:[%s14297_s6 + $0x3d0] sm:$0xff]  }
 0x61c   :  { %10196 = vmatprep.subr.bf16.mxu0 %v14378_v17 }
 0x61f   :  { %10197 = vmatpush3.bf16.msra.mxu0 %v10979_v32  ;;  %v11034_v32 = vld [vmem:[%s14297_s6 + $0x3e0] sm:$0xff]  }
 0x620   :  { %10198 = vmatprep.subr.bf16.mxu0 %v14378_v17 }
 0x623   :  { %10199 = vmatpush3.bf16.msra.mxu0 %v10980_v21  ;;  %v11035_v21 = vld [vmem:[%s14297_s6 + $0x3e8] sm:$0xff]  }
 0x624   :  { %10200 = vmatprep.subr.bf16.mxu0 %v14378_v17 }
 0x627   :  { %10201 = vmatpush3.bf16.msra.mxu0 %v10981_v57  ;;  %v11036_v57 = vld [vmem:[%s14297_s6 + $0x3f0] sm:$0xff]  }
 0x628   :  { %10206 = vmatprep.subr.bf16.mxu0 %v14378_v17 }
 0x62a   :  { %10203 = vmatmul.mubr.bf16.vlgmr.msra.gmra.mrb[100].mxu0 %v6951_v2  ;;  %v7770_v2 = vpack.c.bf16 %v13710_v38, %v13710_v38  ;;  %v11041_v38 = vld [vmem:[%s14300_s9 + $0x18] sm:$0xff]  }
 0x62b   :  { %10207 = vmatpush3.bf16.msra.mxu0 %v10982_v54  ;;  %10222 = vmatprep.mubr.msk.bf16.mxu0 %vm11057_vm0, %v14378_v17  ;;  %v11037_v54 = vld [vmem:[%s14297_s6 + $0x3f8] sm:$0xff]  }
 0x62c   :  { %10208 = vmatprep.subr.bf16.mxu0 %v14378_v17 }
 0x62f   :  { %10209 = vmatpush3.bf16.msra.mxu0 %v10983_v55  ;;  %v11038_v55 = vld [vmem:[%s14300_s9] sm:$0xff]  }
 0x630   :  { %10210 = vmatprep.subr.bf16.mxu0 %v14378_v17  ;;  %10347 = vmatpush3.bf16.msra.mxu1 %v11038_v55 }
 0x631   :  { %10348 = vmatprep.subr.bf16.mxu1 %v14378_v17 }
 0x633   :  { %10211 = vmatpush3.bf16.msra.mxu0 %v10984_v34  ;;  %v11039_v34 = vld [vmem:[%s14300_s9 + $0x8] sm:$0xff]  }
 0x634   :  { %10212 = vmatprep.subr.bf16.mxu0 %v14378_v17  ;;  %10349 = vmatpush3.bf16.msra.mxu1 %v11039_v34 }
 0x635   :  { %10350 = vmatprep.subr.bf16.mxu1 %v14378_v17 }
 0x637   :  { %10213 = vmatpush3.bf16.msra.mxu0 %v10985_v40  ;;  %v11040_v40 = vld [vmem:[%s14300_s9 + $0x10] sm:$0xff]  }
 0x638   :  { %10214 = vmatprep.subr.bf16.mxu0 %v14378_v17  ;;  %10351 = vmatpush3.bf16.msra.mxu1 %v11040_v40 }
 0x639   :  { %10352 = vmatprep.subr.bf16.mxu1 %v14378_v17 }
 0x63b   :  { %10215 = vmatpush3.bf16.msra.mxu0 %v10986_v52  ;;  %v11042_v52 = vld [vmem:[%s14300_s9 + $0x20] sm:$0xff]  }
 0x63c   :  { %10216 = vmatprep.subr.bf16.mxu0 %v14378_v17  ;;  %10353 = vmatpush3.bf16.msra.mxu1 %v11041_v38 }
 0x63d   :  { %10354 = vmatprep.subr.bf16.mxu1 %v14378_v17 }
 0x63f   :  { %10217 = vmatpush3.bf16.msra.mxu0 %v10987_v5  ;;  %v11043_v5 = vld [vmem:[%s14300_s9 + $0x28] sm:$0xff]  }
 0x640   :  { %10218 = vmatprep.subr.bf16.mxu0 %v14378_v17  ;;  %10355 = vmatpush3.bf16.msra.mxu1 %v11042_v52 }
 0x641   :  { %10356 = vmatprep.subr.bf16.mxu1 %v14378_v17 }
 0x643   :  { %10219 = vmatpush3.bf16.msra.mxu0 %v10988_v41  ;;  %v11044_v41 = vld [vmem:[%s14300_s9 + $0x30] sm:$0xff]  }
 0x644   :  { %10220 = vmatprep.subr.bf16.mxu0 %v14378_v17  ;;  %10357 = vmatpush3.bf16.msra.mxu1 %v11043_v5 }
 0x645   :  { %10358 = vmatprep.subr.bf16.mxu1 %v14378_v17 }
 0x647   :  { %10221 = vmatpush3.bf16.msra.mxu0 %v10989_v20  ;;  %v11045_v20 = vld [vmem:[%s14300_s9 + $0x38] sm:$0xff]  }
 0x648   :  { %10226 = vmatprep.subr.bf16.mxu0 %v14378_v17  ;;  %10359 = vmatpush3.bf16.msra.mxu1 %v11044_v41 }
 0x649   :  { %10360 = vmatprep.subr.bf16.mxu1 %v14378_v17 }
 0x64a   :  { %10223 = vmatmul.mubr.bf16.vlgmr.msra.gmra.mrb[100].mxu0 %v7068_v7 }
 0x64b   :  { %10227 = vmatpush3.bf16.msra.mxu0 %v10990_v28  ;;  %10242 = vmatprep.mubr.msk.bf16.mxu0 %vm11057_vm0, %v14378_v17 }
 0x64c   :  { %10228 = vmatprep.subr.bf16.mxu0 %v14378_v17  ;;  %10361 = vmatpush3.bf16.msra.mxu1 %v11045_v20 }
 0x64f   :  { %10229 = vmatpush3.bf16.msra.mxu0 %v10991_v27 }
 0x650   :  { %10230 = vmatprep.subr.bf16.mxu0 %v14378_v17 }
 0x653   :  { %10231 = vmatpush3.bf16.msra.mxu0 %v10992_v47 }
 0x654   :  { %10232 = vmatprep.subr.bf16.mxu0 %v14378_v17 }
 0x657   :  { %10233 = vmatpush3.bf16.msra.mxu0 %v10993_v37 }
 0x658   :  { %10234 = vmatprep.subr.bf16.mxu0 %v14378_v17 }
 0x65b   :  { %10235 = vmatpush3.bf16.msra.mxu0 %v10994_v35 }
 0x65c   :  { %10236 = vmatprep.subr.bf16.mxu0 %v14378_v17 }
 0x65f   :  { %10237 = vmatpush3.bf16.msra.mxu0 %v10995_v63 }
 0x660   :  { %10238 = vmatprep.subr.bf16.mxu0 %v14378_v17 }
 0x663   :  { %10239 = vmatpush3.bf16.msra.mxu0 %v10996_v36 }
 0x664   :  { %10240 = vmatprep.subr.bf16.mxu0 %v14378_v17 }
 0x667   :  { %10241 = vmatpush3.bf16.msra.mxu0 %v10997_v62 }
 0x668   :  { %10246 = vmatprep.subr.bf16.mxu0 %v14378_v17 }
 0x66a   :  { %10243 = vmatmul.mubr.bf16.vlgmr.msra.gmra.mrb[100].mxu0 %v7185_v43 }
 0x66b   :  { %10247 = vmatpush3.bf16.msra.mxu0 %v10998_v60  ;;  %10262 = vmatprep.mubr.msk.bf16.mxu0 %vm11057_vm0, %v14378_v17 }
 0x66c   :  { %10248 = vmatprep.subr.bf16.mxu0 %v14378_v17 }
 0x66f   :  { %10249 = vmatpush3.bf16.msra.mxu0 %v10999_v14 }
 0x670   :  { %10250 = vmatprep.subr.bf16.mxu0 %v14378_v17 }
 0x673   :  { %10251 = vmatpush3.bf16.msra.mxu0 %v11000_v46 }
 0x674   :  { %10252 = vmatprep.subr.bf16.mxu0 %v14378_v17 }
 0x677   :  { %10253 = vmatpush3.bf16.msra.mxu0 %v11001_v30 }
 0x678   :  { %10254 = vmatprep.subr.bf16.mxu0 %v14378_v17 }
 0x67b   :  { %10255 = vmatpush3.bf16.msra.mxu0 %v11002_v18 }
 0x67c   :  { %10256 = vmatprep.subr.bf16.mxu0 %v14378_v17 }
 0x67f   :  { %10257 = vmatpush3.bf16.msra.mxu0 %v11003_v50 }
 0x680   :  { %10258 = vmatprep.subr.bf16.mxu0 %v14378_v17 }
 0x683   :  { %10259 = vmatpush3.bf16.msra.mxu0 %v11004_v4 }
 0x684   :  { %10260 = vmatprep.subr.bf16.mxu0 %v14378_v17 }
 0x687   :  { %10261 = vmatpush3.bf16.msra.mxu0 %v11005_v23 }
 0x688   :  { %10266 = vmatprep.subr.bf16.mxu0 %v14378_v17 }
 0x68a   :  { %10263 = vmatmul.mubr.bf16.vlgmr.msra.gmra.mrb[100].mxu0 %v7302_v12 }
 0x68b   :  { %10267 = vmatpush3.bf16.msra.mxu0 %v11006_v44  ;;  %10282 = vmatprep.mubr.msk.bf16.mxu0 %vm11057_vm0, %v14378_v17 }
 0x68c   :  { %10268 = vmatprep.subr.bf16.mxu0 %v14378_v17 }
 0x68f   :  { %10269 = vmatpush3.bf16.msra.mxu0 %v11007_v16 }
 0x690   :  { %10270 = vmatprep.subr.bf16.mxu0 %v14378_v17 }
 0x693   :  { %10271 = vmatpush3.bf16.msra.mxu0 %v11008_v0  ;;  %v8909_v0 = vld [vmem:[%s14301_s7] ss:$0 sm:$0xff] }
 0x694   :  { %10272 = vmatprep.subr.bf16.mxu0 %v14378_v17 }
 0x697   :  { %10273 = vmatpush3.bf16.msra.mxu0 %v11009_v59 }
 0x698   :  { %10274 = vmatprep.subr.bf16.mxu0 %v14378_v17 }
 0x69b   :  { %10275 = vmatpush3.bf16.msra.mxu0 %v11010_v33  ;;  %v8910_v33 = vld [vmem:[%s14302_s8] ss:$0 sm:$0xff] }
 0x69c   :  { %10276 = vmatprep.subr.bf16.mxu0 %v14378_v17 }
 0x69f   :  { %10277 = vmatpush3.bf16.msra.mxu0 %v11011_v13 }
 0x6a0   :  { %10278 = vmatprep.subr.bf16.mxu0 %v14378_v17 }
 0x6a3   :  { %10279 = vmatpush3.bf16.msra.mxu0 %v11012_v58 }
 0x6a4   :  { %10280 = vmatprep.subr.bf16.mxu0 %v14378_v17 }
 0x6a7   :  { %10281 = vmatpush3.bf16.msra.mxu0 %v11013_v3 }
 0x6a8   :  { %10286 = vmatprep.subr.bf16.mxu0 %v14378_v17 }
 0x6aa   :  { %10283 = vmatmul.mubr.bf16.vlgmr.msra.gmra.mrb[100].mxu0 %v7419_v26 }
 0x6ab   :  { %10287 = vmatpush3.bf16.msra.mxu0 %v11014_v1  ;;  %10302 = vmatprep.mubr.msk.bf16.mxu0 %vm11057_vm0, %v14378_v17 }
 0x6ac   :  { %10288 = vmatprep.subr.bf16.mxu0 %v14378_v17 }
 0x6af   :  { %10289 = vmatpush3.bf16.msra.mxu0 %v11015_v48  ;;  %v8911_v48 = vld [vmem:[%s14303_s10] ss:$0 sm:$0xff] }
 0x6b0   :  { %10290 = vmatprep.subr.bf16.mxu0 %v14378_v17 }
 0x6b3   :  { %10291 = vmatpush3.bf16.msra.mxu0 %v11016_v9 }
 0x6b4   :  { %10292 = vmatprep.subr.bf16.mxu0 %v14378_v17 }
 0x6b7   :  { %10293 = vmatpush3.bf16.msra.mxu0 %v11017_v51 }
 0x6b8   :  { %10294 = vmatprep.subr.bf16.mxu0 %v14378_v17 }
 0x6bb   :  { %10295 = vmatpush3.bf16.msra.mxu0 %v11018_v45 }
 0x6bc   :  { %10296 = vmatprep.subr.bf16.mxu0 %v14378_v17 }
 0x6bf   :  { %10297 = vmatpush3.bf16.msra.mxu0 %v11019_v39 }
 0x6c0   :  { %10298 = vmatprep.subr.bf16.mxu0 %v14378_v17 }
 0x6c3   :  { %10299 = vmatpush3.bf16.msra.mxu0 %v11020_v25 }
 0x6c4   :  { %10300 = vmatprep.subr.bf16.mxu0 %v14378_v17 }
 0x6c7   :  { %10301 = vmatpush3.bf16.msra.mxu0 %v11021_v49 }
 0x6c8   :  { %10306 = vmatprep.subr.bf16.mxu0 %v14378_v17 }
 0x6ca   :  { %10303 = vmatmul.mubr.bf16.vlgmr.msra.gmra.mrb[100].mxu0 %v7536_v42 }
 0x6cb   :  { %10307 = vmatpush3.bf16.msra.mxu0 %v11022_v53  ;;  %10322 = vmatprep.mubr.msk.bf16.mxu0 %vm11057_vm0, %v14378_v17 }
 0x6cc   :  { %10308 = vmatprep.subr.bf16.mxu0 %v14378_v17 }
 0x6cf   :  { %10309 = vmatpush3.bf16.msra.mxu0 %v11023_v19 }
 0x6d0   :  { %10310 = vmatprep.subr.bf16.mxu0 %v14378_v17 }
 0x6d3   :  { %10311 = vmatpush3.bf16.msra.mxu0 %v11024_v8 }
 0x6d4   :  { %10312 = vmatprep.subr.bf16.mxu0 %v14378_v17 }
 0x6d7   :  { %10313 = vmatpush3.bf16.msra.mxu0 %v11025_v11 }
 0x6d8   :  { %10314 = vmatprep.subr.bf16.mxu0 %v14378_v17 }
 0x6db   :  { %10315 = vmatpush3.bf16.msra.mxu0 %v11026_v22 }
 0x6dc   :  { %10316 = vmatprep.subr.bf16.mxu0 %v14378_v17 }
 0x6df   :  { %10317 = vmatpush3.bf16.msra.mxu0 %v11027_v15 }
 0x6e0   :  { %10318 = vmatprep.subr.bf16.mxu0 %v14378_v17 }
 0x6e3   :  { %10319 = vmatpush3.bf16.msra.mxu0 %v11028_v56 }
 0x6e4   :  { %10320 = vmatprep.subr.bf16.mxu0 %v14378_v17 }
 0x6e7   :  { %10321 = vmatpush3.bf16.msra.mxu0 %v11029_v10 }
 0x6e8   :  { %10326 = vmatprep.subr.bf16.mxu0 %v14378_v17 }
 0x6ea   :  { %10323 = vmatmul.mubr.bf16.vlgmr.msra.gmra.mrb[100].mxu0 %v7653_v6 }
 0x6eb   :  { %10327 = vmatpush3.bf16.msra.mxu0 %v11030_v24  ;;  %10342 = vmatprep.mubr.msk.bf16.mxu0 %vm11057_vm0, %v14378_v17 }
 0x6ec   :  { %10328 = vmatprep.subr.bf16.mxu0 %v14378_v17 }
 0x6ef   :  { %10329 = vmatpush3.bf16.msra.mxu0 %v11031_v29 }
 0x6f0   :  { %10330 = vmatprep.subr.bf16.mxu0 %v14378_v17 }
 0x6f3   :  { %10331 = vmatpush3.bf16.msra.mxu0 %v11032_v61 }
 0x6f4   :  { %10332 = vmatprep.subr.bf16.mxu0 %v14378_v17 }
 0x6f7   :  { %10333 = vmatpush3.bf16.msra.mxu0 %v11033_v31 }
 0x6f8   :  { %10334 = vmatprep.subr.bf16.mxu0 %v14378_v17 }
 0x6fb   :  { %10335 = vmatpush3.bf16.msra.mxu0 %v11034_v32 }
 0x6fc   :  { %10336 = vmatprep.subr.bf16.mxu0 %v14378_v17 }
 0x6ff   :  { %10337 = vmatpush3.bf16.msra.mxu0 %v11035_v21 }
 0x700   :  { %10338 = vmatprep.subr.bf16.mxu0 %v14378_v17 }
 0x703   :  { %10339 = vmatpush3.bf16.msra.mxu0 %v11036_v57 }
 0x704   :  { %10340 = vmatprep.subr.bf16.mxu0 %v14378_v17 }
 0x707   :  { %10341 = vmatpush3.bf16.msra.mxu0 %v11037_v54 }
 0x70a   :  { %10343 = vmatmul.mubr.bf16.vlgmr.msra.gmra.mrb[100].mxu0 %v7770_v2 }
 0x7dd   :  { %v7870_v28 = vpop.f32.mrb[100].mxu0 }
 0x7de   :  { %v7877_v7 = vrot.slane %v7870_v28, 4  ;;  %v10344_v27 = vpop.f32.mrb[101].mxu0 }
 0x7df   :  { %v7873_v47 = vpop.f32.mrb[102].mxu0 }
 0x7e0   :  { %v7878_v37 = vadd.f32 %v7877_v7, %v7870_v28  ;;  %v10345_v35 = vpop.f32.mrb[103].mxu0 }
 0x7e2   :  { %v7879_v63 = vrot.slane %v7878_v37, 2 }
 0x7e4   :  { %v7880_v36 = vadd.f32 %v7879_v63, %v7878_v37 }
 0x7e6   :  { %v7881_v62 = vrot.slane %v7880_v36, 1 }
 0x7e8   :  { %v7882_v60 = vadd.f32 %v7881_v62, %v7880_v36 }
 0x7ea   :  { %v7884_v43 = vmul.f32 0.125, %v7882_v60 }
 0x7ec   :  { %v7885_v14 = vsub.f32 %v7870_v28, %v7884_v43 }
 0x7ee   :  { %v7886_v46 = vmul.f32 %v7885_v14, %v7885_v14 }
 0x7f0   :  { %v7887_v30 = vrot.slane %v7886_v46, 4 }
 0x7f2   :  { %v7888_v18 = vadd.f32 %v7887_v30, %v7886_v46 }
 0x7f4   :  { %v7889_v50 = vrot.slane %v7888_v18, 2 }
 0x7f6   :  { %v7890_v4 = vadd.f32 %v7889_v50, %v7888_v18 }
 0x7f8   :  { %v7891_v23 = vrot.slane %v7890_v4, 1 }
 0x7fa   :  { %v7892_v17 = vadd.f32 %v7891_v23, %v7890_v4 }
 0x7fc   :  { %v7893_v44 = vmul.f32 0.125, %v7892_v17 }
 0x7fe   :  { %v7894_v12 = vadd.f32 1e-05, %v7893_v44 }
 0x800   :  { %11048 = vrsqrt.f32 %v7894_v12 }
 0x80a   :  { %v11049_v16 = vpop.eup %11048 }
 0x80b   :  { %v7896_v59 = vmul.f32 %v11049_v16, %v7885_v14 }
 0x80d   :  { %v7904_v13 = vmul.f32 %v8909_v0, %v7896_v59 }
 0x80f   :  { %v7912_v58 = vadd.f32 %v8910_v33, %v7904_v13 }
 0x811   :  { %v7913_v3 = vmul.f32 0.2, %v7912_v58 }
 0x813   :  { %v7914_v1 = vmax.f32 %v7912_v58, %v7913_v3 }
 0x815   :  { %v7915_v26 = vpack.c.bf16 %v7914_v1, %v7914_v1 }
 0x817   :  { %10363 = vmatmul.mubr.bf16.vlgmr.msra.gmra.mrb[36].mxu1 %v7915_v26 }
 0x8ea   :  { %v8021_v9 = vpop.f32.mrb[36].mxu1 }
 0x8eb   :  { %v8022_v51 = vadd.f32 %v8911_v48, %v8021_v9  ;;  %v10364_v45 = vpop.f32.mrb[37].mxu1 }
 0x8ec   :  { %v8024_v39 = vpop.f32.mrb[38].mxu1 }
 0x8ed   :  { %v8027_v25 = vsub.f32 0.0, %v8022_v51  ;;  %v10365_v49 = vpop.f32.mrb[39].mxu1 }
 0x8ef   :  { %v8028_v53 = vmul.f32 1.442695, %v8027_v25 }
 0x8f1   :  { %11050 = vpow2.f32 %v8028_v53 }
 0x8fb   :  { %v11051_v42 = vpop.eup %11050 }
 0x8fc   :  { %v8030_v19 = vadd.f32 1.0, %v11051_v42 }
 0x8fe   :  { %11052 = vrcp.f32 %v8030_v19 }
 0x908   :  { %v11053_v8 = vpop.eup %11052 }
 0x909   :  { %8032 = vst [vmem:[%s14304_s11] sm:$0xff] %v11053_v8 }

</bundles_post_ra>
